<compile_context>
chip_gen: v6e
topology: v6e:2x2x1
jax: 0.10.0
libtpu: 0.0.40
codegen_flags: <defaults>
</compile_context>

<pallas_src>
import jax
import jax.numpy as jnp
from jax import lax
from jax.experimental import pallas as pl
from jax.experimental.pallas import tpu as pltpu


# ---------------------------------------------------------------------------
# Helpers
# ---------------------------------------------------------------------------
def _round_up(x, m):
    return ((x + m - 1) // m) * m


def _pick_tm(M, KP, CP, vmem_budget=16 << 20):
    """Largest power-of-two row tile whose double-buffered blocks fit the budget."""
    def step_bytes(tm):
        patches = 2 * tm * KP * 2          # bf16 input, 2 buffers
        y_out   = 2 * tm * CP * 4          # f32 output, 2 buffers
        weight  = KP * CP * 2              # resident weight block
        stats   = 4 * 8 * CP * 4           # partial-sum blocks
        return patches + y_out + weight + stats

    tm = 1024
    while tm > 16 and step_bytes(tm) > vmem_budget:
        tm //= 2
    tm = min(tm, _round_up(M, 16))         # don't over-pad tiny problems
    return max(tm, 16)


# ---------------------------------------------------------------------------
# Pallas kernels
# ---------------------------------------------------------------------------
def _conv_mm_kernel(p_ref, w_ref, y_ref, psum_ref, psq_ref):
    """Per M-tile: conv-as-matmul (bf16 in, f32 acc) + per-tile BN partial stats."""
    acc = jnp.dot(p_ref[...], w_ref[...], preferred_element_type=jnp.float32)
    y_ref[...] = acc                                   # lane-dense (TM, 128) store

    s = jnp.sum(acc, axis=0, keepdims=True)            # (1, CP)
    sq = jnp.sum(acc * acc, axis=0, keepdims=True)     # (1, CP)
    rows = lax.broadcasted_iota(jnp.int32, psum_ref.shape, 0)   # (8, CP)
    psum_ref[...] = jnp.where(rows == 0, s, 0.0)
    psq_ref[...] = jnp.where(rows == 0, sq, 0.0)


def _bn_relu_kernel(y_ref, scale_ref, shift_ref, o_ref):
    """Elementwise: y * scale + shift, then ReLU (lane-dense 128-wide)."""
    o_ref[...] = jnp.maximum(y_ref[...] * scale_ref[...] + shift_ref[...], 0.0)


# ---------------------------------------------------------------------------
# Pallas wrappers
# ---------------------------------------------------------------------------
def conv_matmul_with_stats(patches, w_mat, tm):
    """patches: (Mp, KP) bf16, w_mat: (KP, CP) bf16. Returns y(Mp,CP) f32 + BN sums."""
    Mp, KP = patches.shape
    KPw, CP = w_mat.shape
    assert KP == KPw and Mp % tm == 0
    nt = Mp // tm

    y, ps, pq = pl.pallas_call(
        _conv_mm_kernel,
        out_shape=(
            jax.ShapeDtypeStruct((Mp, CP), jnp.float32),
            jax.ShapeDtypeStruct((nt * 8, CP), jnp.float32),
            jax.ShapeDtypeStruct((nt * 8, CP), jnp.float32),
        ),
        grid_spec=pltpu.PrefetchScalarGridSpec(
            num_scalar_prefetch=0,
            grid=(nt,),
            in_specs=[
                pl.BlockSpec((tm, KP), lambda i: (i, 0)),
                pl.BlockSpec((KP, CP), lambda i: (0, 0)),
            ],
            out_specs=(
                pl.BlockSpec((tm, CP), lambda i: (i, 0)),
                pl.BlockSpec((8, CP), lambda i: (i, 0)),
                pl.BlockSpec((8, CP), lambda i: (i, 0)),
            ),
        ),
        compiler_params=pltpu.CompilerParams(
            dimension_semantics=("parallel",),          # no cross-step accumulation
            vmem_limit_bytes=32 * 1024 * 1024,
        ),
    )(patches, w_mat)

    # Reduce per-tile partials in JAX (keeps the Pallas grid fully parallel).
    return y, jnp.sum(ps, axis=0), jnp.sum(pq, axis=0)


def bn_relu(y, scale, shift, tm):
    Mp, CP = y.shape
    assert Mp % tm == 0
    return pl.pallas_call(
        _bn_relu_kernel,
        out_shape=jax.ShapeDtypeStruct((Mp, CP), jnp.float32),
        grid_spec=pltpu.PrefetchScalarGridSpec(
            num_scalar_prefetch=0,
            grid=(Mp // tm,),
            in_specs=[
                pl.BlockSpec((tm, CP), lambda i: (i, 0)),
                pl.BlockSpec((1, CP), lambda i: (0, 0)),
                pl.BlockSpec((1, CP), lambda i: (0, 0)),
            ],
            out_specs=pl.BlockSpec((tm, CP), lambda i: (i, 0)),
        ),
        compiler_params=pltpu.CompilerParams(
            dimension_semantics=("parallel",),
            vmem_limit_bytes=32 * 1024 * 1024,
        ),
        input_output_aliases={0: 0},     # overwrite y in place, no extra HBM alloc
    )(y, scale.reshape(1, CP), shift.reshape(1, CP))


# ---------------------------------------------------------------------------
# Glue (im2col, parameter packing) in plain JAX
# ---------------------------------------------------------------------------
def im2col_3d(x_ndhwc, k, stride):
    """x already padded. Returns [N*Do*Ho*Wo, k^3*C], K-axis order (kd,kh,kw,c)."""
    N, Dp, Hp, Wp, C = x_ndhwc.shape
    Do = (Dp - k) // stride + 1
    Ho = (Hp - k) // stride + 1
    Wo = (Wp - k) // stride + 1
    cols = []
    for kd in range(k):
        for kh in range(k):
            for kw in range(k):
                cols.append(x_ndhwc[:, kd:kd + Do * stride:stride,
                                    kh:kh + Ho * stride:stride,
                                    kw:kw + Wo * stride:stride, :])
    p = jnp.stack(cols, axis=-2)                      # [N,Do,Ho,Wo,k^3,C]
    return p.reshape(N * Do * Ho * Wo, k * k * k * C), (N, Do, Ho, Wo)


def conv3d_bn_relu_layer(x_ndhwc, w, b, gamma, beta, k, stride, eps=1e-5):
    """w: PyTorch Conv3d weight [Cout, Cin, k, k, k]. Training-mode BN (batch stats)."""
    Cout, Cin = w.shape[0], w.shape[1]
    pad = k // 2
    xp = jnp.pad(x_ndhwc, ((0, 0), (pad, pad), (pad, pad), (pad, pad), (0, 0)))
    patches, (N, Do, Ho, Wo) = im2col_3d(xp, k, stride)
    M, K = patches.shape

    KP = _round_up(K, 128)                 # contraction padded to full lanes
    CP = _round_up(Cout, 128)              # output channels padded -> lane-dense stores
    TM = _pick_tm(M, KP, CP)
    Mp = _round_up(M, TM)

    # bf16 MXU operands, zero-padded (rows / K / Cout). Zero rows contribute 0
    # to BN sums since no bias is added in the kernel.
    patches_p = jnp.pad(patches.astype(jnp.bfloat16), ((0, Mp - M), (0, KP - K)))
    w_mat = jnp.transpose(w, (2, 3, 4, 1, 0)).reshape(K, Cout)
    w_p = jnp.pad(w_mat.astype(jnp.bfloat16), ((0, KP - K), (0, CP - Cout)))

    y, s, ss = conv_matmul_with_stats(patches_p, w_p, TM)

    # Batch-norm statistics over the true M rows (f32). The conv bias is folded
    # away: BN subtracts the batch mean (which would include the bias), so it
    # cancels exactly in training-mode BatchNorm.
    mean = s / M
    var = ss / M - mean * mean             # biased variance (PyTorch training BN)
    gamma_p = jnp.pad(gamma, (0, CP - Cout))
    beta_p = jnp.pad(beta, (0, CP - Cout))
    scale = gamma_p / jnp.sqrt(var + eps)
    shift = beta_p - mean * scale
    del b  # mathematically cancelled by batch-stat BatchNorm

    out = bn_relu(y, scale, shift, TM)
    out = out[:M, :Cout].reshape(N, Do, Ho, Wo, Cout)
    return out


def double_conv_forward(x_ncdhw, params, k, stride):
    x = jnp.transpose(x_ncdhw, (0, 2, 3, 4, 1))        # NCDHW -> NDHWC
    x = conv3d_bn_relu_layer(x, params["w1"], params["b1"],
                             params["g1"], params["be1"], k, stride)
    x = conv3d_bn_relu_layer(x, params["w2"], params["b2"],
                             params["g2"], params["be2"], k, stride)
    return jnp.transpose(x, (0, 4, 1, 2, 3))            # NDHWC -> NCDHW


# ---------------------------------------------------------------------------
# Pure-JAX reference (for a sanity check)
# ---------------------------------------------------------------------------
def _ref_layer(x_ndhwc, w, b, gamma, beta, k, stride, eps=1e-5):
    pad = k // 2
    w_dhwio = jnp.transpose(w, (2, 3, 4, 1, 0))
    y = lax.conv_general_dilated(
        x_ndhwc, w_dhwio, window_strides=(stride,) * 3,
        padding=[(pad, pad)] * 3,
        dimension_numbers=("NDHWC", "DHWIO", "NDHWC"),
        precision=lax.Precision.HIGHEST) + b
    mean = jnp.mean(y, axis=(0, 1, 2, 3))
    var = jnp.var(y, axis=(0, 1, 2, 3))
    return jnp.maximum((y - mean) / jnp.sqrt(var + eps) * gamma + beta, 0.0)


def _ref_forward(x_ncdhw, p, k, stride):
    x = jnp.transpose(x_ncdhw, (0, 2, 3, 4, 1))
    x = _ref_layer(x, p["w1"], p["b1"], p["g1"], p["be1"], k, stride)
    x = _ref_layer(x, p["w2"], p["b2"], p["g2"], p["be2"], k, stride)
    return jnp.transpose(x, (0, 4, 1, 2, 3))


# ---------------------------------------------------------------------------
if __name__ == "__main__":
    # double_conv(in_channels=4, out_channels=8, k_size=3, stride=1, bias=True)
    N, Cin, Cout, D, H, W = 2, 4, 8, 8, 8, 8
    k, stride = 3, 1

    key = jax.random.PRNGKey(0)
    ks = jax.random.split(key, 7)
    params = {
        "w1": 0.1 * jax.random.normal(ks[0], (Cout, Cin, k, k, k), jnp.float32),
        "b1": 0.05 * jax.random.normal(ks[1], (Cout,), jnp.float32),
        "g1": 1.0 + 0.1 * jax.random.normal(ks[2], (Cout,), jnp.float32),
        "be1": 0.1 * jax.random.normal(ks[3], (Cout,), jnp.float32),
        "w2": 0.1 * jax.random.normal(ks[4], (Cout, Cout, k, k, k), jnp.float32),
        "b2": 0.05 * jax.random.normal(ks[5], (Cout,), jnp.float32),
        "g2": jnp.ones((Cout,), jnp.float32),
        "be2": jnp.zeros((Cout,), jnp.float32),
    }
    x = jax.random.normal(ks[6], (N, Cin, D, H, W), jnp.float32)

    out = jax.jit(lambda xx: double_conv_forward(xx, params, k, stride))(x)
    out = jax.block_until_ready(out)
    assert out.shape == (N, Cout, D, H, W)

    ref = jax.block_until_ready(_ref_forward(x, params, k, stride))
    # Tolerance accounts for bf16 MXU operands (f32 accumulation + f32 BN stats).
    assert jnp.allclose(out, ref, atol=3e-2, rtol=3e-2), (
        f"max abs err {jnp.max(jnp.abs(out - ref))}")

    print("KERNEL_OK")
</pallas_src>

<mosaic_0001>
module attributes {stable_mosaic.version = 11 : i64} {
  func.func @_conv_mm_kernel(%arg0: i32, %arg1: memref<1024x128xbf16, #tpu.memory_space<vmem>>, %arg2: memref<128x128xbf16, #tpu.memory_space<vmem>>, %arg3: memref<1024x128xf32, #tpu.memory_space<vmem>>, %arg4: memref<8x128xf32, #tpu.memory_space<vmem>>, %arg5: memref<8x128xf32, #tpu.memory_space<vmem>>) attributes {dimension_semantics = [#tpu.dimension_semantics<parallel>], iteration_bounds = array<i64: 1>, scalar_prefetch = 0 : i64, scratch_operands = 0 : i64, tpu.core_type = #tpu.core_type<tc>, window_params = [{transform_indices = @transform_0, window_bounds = array<i64: 1024, 128>}, {pipeline_mode = #tpu.pipeline_mode<synchronous>, transform_indices = @transform_1, window_bounds = array<i64: 128, 128>}, {transform_indices = @transform_2, window_bounds = array<i64: 1024, 128>}, {transform_indices = @transform_3, window_bounds = array<i64: 8, 128>}, {transform_indices = @transform_4, window_bounds = array<i64: 8, 128>}]} {
    %c0 = arith.constant 0 : index
    %c0_0 = arith.constant 0 : index
    %0 = vector.load %arg1[%c0, %c0_0] : memref<1024x128xbf16, #tpu.memory_space<vmem>>, vector<1024x128xbf16>
    %c0_1 = arith.constant 0 : index
    %c0_2 = arith.constant 0 : index
    %1 = vector.load %arg2[%c0_1, %c0_2] : memref<128x128xbf16, #tpu.memory_space<vmem>>, vector<128x128xbf16>
    %cst = arith.constant dense<0.000000e+00> : vector<1024x128xf32>
    %2 = tpu.matmul %0, %1, %cst {dimension_numbers = #tpu.dot_dimension_numbers<[1], [0], [0], [1], [0, 0, 1, 1], [], []>} : vector<1024x128xbf16>, vector<128x128xbf16>, vector<1024x128xf32> -> vector<1024x128xf32>
    %c0_3 = arith.constant 0 : index
    %c0_4 = arith.constant 0 : index
    %3 = vector.load %arg3[%c0_3, %c0_4] : memref<1024x128xf32, #tpu.memory_space<vmem>>, vector<1024x128xf32>
    tpu.vector_store %arg3[%c0_3, %c0_4], %2 {strides = array<i32>} : memref<1024x128xf32, #tpu.memory_space<vmem>>, vector<1024x128xf32>,
    %cst_5 = arith.constant dense<0.000000e+00> : vector<128xf32>
    %4 = vector.multi_reduction <add>, %2, %cst_5 [0] : vector<1024x128xf32> to vector<128xf32>
    %5 = vector.shape_cast %4 : vector<128xf32> to vector<1x128xf32>
    %6 = arith.mulf %2, %2 : vector<1024x128xf32>
    %cst_6 = arith.constant dense<0.000000e+00> : vector<128xf32>
    %7 = vector.multi_reduction <add>, %6, %cst_6 [0] : vector<1024x128xf32> to vector<128xf32>
    %8 = vector.shape_cast %7 : vector<128xf32> to vector<1x128xf32>
    %9 = tpu.iota {dimensions = array<i32: 0>} : vector<8x128xi32>
    %c0_i32 = arith.constant 0 : i32
    %10 = vector.broadcast %c0_i32 : i32 to vector<8x128xi32>
    %11 = arith.cmpi eq, %9, %10 : vector<8x128xi32>
    %cst_7 = arith.constant 0.000000e+00 : f32
    %12 = vector.shape_cast %5 : vector<1x128xf32> to vector<1x128xf32>
    %13 = vector.broadcast %12 : vector<1x128xf32> to vector<8x128xf32>
    %14 = vector.broadcast %cst_7 : f32 to vector<8x128xf32>
    %15 = arith.select %11, %13, %14 : vector<8x128xi1>, vector<8x128xf32>
    %c0_8 = arith.constant 0 : index
    %c0_9 = arith.constant 0 : index
    %16 = vector.load %arg4[%c0_8, %c0_9] : memref<8x128xf32, #tpu.memory_space<vmem>>, vector<8x128xf32>
    tpu.vector_store %arg4[%c0_8, %c0_9], %15 {strides = array<i32>} : memref<8x128xf32, #tpu.memory_space<vmem>>, vector<8x128xf32>,
    %c0_i32_10 = arith.constant 0 : i32
    %17 = vector.broadcast %c0_i32_10 : i32 to vector<8x128xi32>
    %18 = arith.cmpi eq, %9, %17 : vector<8x128xi32>
    %cst_11 = arith.constant 0.000000e+00 : f32
    %19 = vector.shape_cast %8 : vector<1x128xf32> to vector<1x128xf32>
    %20 = vector.broadcast %19 : vector<1x128xf32> to vector<8x128xf32>
    %21 = vector.broadcast %cst_11 : f32 to vector<8x128xf32>
    %22 = arith.select %18, %20, %21 : vector<8x128xi1>, vector<8x128xf32>
    %c0_12 = arith.constant 0 : index
    %c0_13 = arith.constant 0 : index
    %23 = vector.load %arg5[%c0_12, %c0_13] : memref<8x128xf32, #tpu.memory_space<vmem>>, vector<8x128xf32>
    tpu.vector_store %arg5[%c0_12, %c0_13], %22 {strides = array<i32>} : memref<8x128xf32, #tpu.memory_space<vmem>>, vector<8x128xf32>,
    return
  }
  func.func @transform_0(%arg0: i32) -> (i32, i32) {
    %c0_i32 = arith.constant 0 : i32
    %c0_i32_0 = arith.constant 0 : i32
    return %arg0, %c0_i32 : i32, i32
  }
  func.func @transform_1(%arg0: i32) -> (i32, i32) {
    %c0_i32 = arith.constant 0 : i32
    %c0_i32_0 = arith.constant 0 : i32
    %c0_i32_1 = arith.constant 0 : i32
    return %c0_i32, %c0_i32_0 : i32, i32
  }
  func.func @transform_2(%arg0: i32) -> (i32, i32) {
    %c0_i32 = arith.constant 0 : i32
    %c0_i32_0 = arith.constant 0 : i32
    return %arg0, %c0_i32 : i32, i32
  }
  func.func @transform_3(%arg0: i32) -> (i32, i32) {
    %c0_i32 = arith.constant 0 : i32
    %c0_i32_0 = arith.constant 0 : i32
    return %arg0, %c0_i32 : i32, i32
  }
  func.func @transform_4(%arg0: i32) -> (i32, i32) {
    %c0_i32 = arith.constant 0 : i32
    %c0_i32_0 = arith.constant 0 : i32
    return %arg0, %c0_i32 : i32, i32
  }
}

module attributes {stable_mosaic.version = 11 : i64} {
  func.func @_bn_relu_kernel(%arg0: i32, %arg1: memref<1024x128xf32, #tpu.memory_space<vmem>>, %arg2: memref<1x128xf32, #tpu.memory_space<vmem>>, %arg3: memref<1x128xf32, #tpu.memory_space<vmem>>, %arg4: memref<1024x128xf32, #tpu.memory_space<vmem>>) attributes {dimension_semantics = [#tpu.dimension_semantics<parallel>], iteration_bounds = array<i64: 1>, scalar_prefetch = 0 : i64, scratch_operands = 0 : i64, tpu.core_type = #tpu.core_type<tc>, window_params = [{transform_indices = @transform_0, window_bounds = array<i64: 1024, 128>}, {pipeline_mode = #tpu.pipeline_mode<synchronous>, transform_indices = @transform_1, window_bounds = array<i64: 1, 128>}, {pipeline_mode = #tpu.pipeline_mode<synchronous>, transform_indices = @transform_2, window_bounds = array<i64: 1, 128>}, {transform_indices = @transform_3, window_bounds = array<i64: 1024, 128>}]} {
    %c0 = arith.constant 0 : index
    %c0_0 = arith.constant 0 : index
    %0 = vector.load %arg1[%c0, %c0_0] : memref<1024x128xf32, #tpu.memory_space<vmem>>, vector<1024x128xf32>
    %c0_1 = arith.constant 0 : index
    %c0_2 = arith.constant 0 : index
    %1 = vector.load %arg2[%c0_1, %c0_2] : memref<1x128xf32, #tpu.memory_space<vmem>>, vector<1x128xf32>
    %2 = vector.broadcast %1 : vector<1x128xf32> to vector<1024x128xf32>
    %3 = arith.mulf %0, %2 : vector<1024x128xf32>
    %c0_3 = arith.constant 0 : index
    %c0_4 = arith.constant 0 : index
    %4 = vector.load %arg3[%c0_3, %c0_4] : memref<1x128xf32, #tpu.memory_space<vmem>>, vector<1x128xf32>
    %5 = vector.broadcast %4 : vector<1x128xf32> to vector<1024x128xf32>
    %6 = arith.addf %3, %5 : vector<1024x128xf32>
    %cst = arith.constant 0.000000e+00 : f32
    %7 = vector.broadcast %cst : f32 to vector<1024x128xf32>
    %8 = arith.maximumf %6, %7 : vector<1024x128xf32>
    %c0_5 = arith.constant 0 : index
    %c0_6 = arith.constant 0 : index
    %9 = vector.load %arg4[%c0_5, %c0_6] : memref<1024x128xf32, #tpu.memory_space<vmem>>, vector<1024x128xf32>
    tpu.vector_store %arg4[%c0_5, %c0_6], %8 {strides = array<i32>} : memref<1024x128xf32, #tpu.memory_space<vmem>>, vector<1024x128xf32>,
    return
  }
  func.func @transform_0(%arg0: i32) -> (i32, i32) {
    %c0_i32 = arith.constant 0 : i32
    %c0_i32_0 = arith.constant 0 : i32
    return %arg0, %c0_i32 : i32, i32
  }
  func.func @transform_1(%arg0: i32) -> (i32, i32) {
    %c0_i32 = arith.constant 0 : i32
    %c0_i32_0 = arith.constant 0 : i32
    %c0_i32_1 = arith.constant 0 : i32
    return %c0_i32, %c0_i32_0 : i32, i32
  }
  func.func @transform_2(%arg0: i32) -> (i32, i32) {
    %c0_i32 = arith.constant 0 : i32
    %c0_i32_0 = arith.constant 0 : i32
    %c0_i32_1 = arith.constant 0 : i32
    return %c0_i32, %c0_i32_0 : i32, i32
  }
  func.func @transform_3(%arg0: i32) -> (i32, i32) {
    %c0_i32 = arith.constant 0 : i32
    %c0_i32_0 = arith.constant 0 : i32
    return %arg0, %c0_i32 : i32, i32
  }
}

module attributes {stable_mosaic.version = 11 : i64} {
  func.func @_conv_mm_kernel(%arg0: i32, %arg1: memref<1024x256xbf16, #tpu.memory_space<vmem>>, %arg2: memref<256x128xbf16, #tpu.memory_space<vmem>>, %arg3: memref<1024x128xf32, #tpu.memory_space<vmem>>, %arg4: memref<8x128xf32, #tpu.memory_space<vmem>>, %arg5: memref<8x128xf32, #tpu.memory_space<vmem>>) attributes {dimension_semantics = [#tpu.dimension_semantics<parallel>], iteration_bounds = array<i64: 1>, scalar_prefetch = 0 : i64, scratch_operands = 0 : i64, tpu.core_type = #tpu.core_type<tc>, window_params = [{transform_indices = @transform_0, window_bounds = array<i64: 1024, 256>}, {pipeline_mode = #tpu.pipeline_mode<synchronous>, transform_indices = @transform_1, window_bounds = array<i64: 256, 128>}, {transform_indices = @transform_2, window_bounds = array<i64: 1024, 128>}, {transform_indices = @transform_3, window_bounds = array<i64: 8, 128>}, {transform_indices = @transform_4, window_bounds = array<i64: 8, 128>}]} {
    %c0 = arith.constant 0 : index
    %c0_0 = arith.constant 0 : index
    %0 = vector.load %arg1[%c0, %c0_0] : memref<1024x256xbf16, #tpu.memory_space<vmem>>, vector<1024x256xbf16>
    %c0_1 = arith.constant 0 : index
    %c0_2 = arith.constant 0 : index
    %1 = vector.load %arg2[%c0_1, %c0_2] : memref<256x128xbf16, #tpu.memory_space<vmem>>, vector<256x128xbf16>
    %cst = arith.constant dense<0.000000e+00> : vector<1024x128xf32>
    %2 = tpu.matmul %0, %1, %cst {dimension_numbers = #tpu.dot_dimension_numbers<[1], [0], [0], [1], [0, 0, 1, 1], [], []>} : vector<1024x256xbf16>, vector<256x128xbf16>, vector<1024x128xf32> -> vector<1024x128xf32>
    %c0_3 = arith.constant 0 : index
    %c0_4 = arith.constant 0 : index
    %3 = vector.load %arg3[%c0_3, %c0_4] : memref<1024x128xf32, #tpu.memory_space<vmem>>, vector<1024x128xf32>
    tpu.vector_store %arg3[%c0_3, %c0_4], %2 {strides = array<i32>} : memref<1024x128xf32, #tpu.memory_space<vmem>>, vector<1024x128xf32>,
    %cst_5 = arith.constant dense<0.000000e+00> : vector<128xf32>
    %4 = vector.multi_reduction <add>, %2, %cst_5 [0] : vector<1024x128xf32> to vector<128xf32>
    %5 = vector.shape_cast %4 : vector<128xf32> to vector<1x128xf32>
    %6 = arith.mulf %2, %2 : vector<1024x128xf32>
    %cst_6 = arith.constant dense<0.000000e+00> : vector<128xf32>
    %7 = vector.multi_reduction <add>, %6, %cst_6 [0] : vector<1024x128xf32> to vector<128xf32>
    %8 = vector.shape_cast %7 : vector<128xf32> to vector<1x128xf32>
    %9 = tpu.iota {dimensions = array<i32: 0>} : vector<8x128xi32>
    %c0_i32 = arith.constant 0 : i32
    %10 = vector.broadcast %c0_i32 : i32 to vector<8x128xi32>
    %11 = arith.cmpi eq, %9, %10 : vector<8x128xi32>
    %cst_7 = arith.constant 0.000000e+00 : f32
    %12 = vector.shape_cast %5 : vector<1x128xf32> to vector<1x128xf32>
    %13 = vector.broadcast %12 : vector<1x128xf32> to vector<8x128xf32>
    %14 = vector.broadcast %cst_7 : f32 to vector<8x128xf32>
    %15 = arith.select %11, %13, %14 : vector<8x128xi1>, vector<8x128xf32>
    %c0_8 = arith.constant 0 : index
    %c0_9 = arith.constant 0 : index
    %16 = vector.load %arg4[%c0_8, %c0_9] : memref<8x128xf32, #tpu.memory_space<vmem>>, vector<8x128xf32>
    tpu.vector_store %arg4[%c0_8, %c0_9], %15 {strides = array<i32>} : memref<8x128xf32, #tpu.memory_space<vmem>>, vector<8x128xf32>,
    %c0_i32_10 = arith.constant 0 : i32
    %17 = vector.broadcast %c0_i32_10 : i32 to vector<8x128xi32>
    %18 = arith.cmpi eq, %9, %17 : vector<8x128xi32>
    %cst_11 = arith.constant 0.000000e+00 : f32
    %19 = vector.shape_cast %8 : vector<1x128xf32> to vector<1x128xf32>
    %20 = vector.broadcast %19 : vector<1x128xf32> to vector<8x128xf32>
    %21 = vector.broadcast %cst_11 : f32 to vector<8x128xf32>
    %22 = arith.select %18, %20, %21 : vector<8x128xi1>, vector<8x128xf32>
    %c0_12 = arith.constant 0 : index
    %c0_13 = arith.constant 0 : index
    %23 = vector.load %arg5[%c0_12, %c0_13] : memref<8x128xf32, #tpu.memory_space<vmem>>, vector<8x128xf32>
    tpu.vector_store %arg5[%c0_12, %c0_13], %22 {strides = array<i32>} : memref<8x128xf32, #tpu.memory_space<vmem>>, vector<8x128xf32>,
    return
  }
  func.func @transform_0(%arg0: i32) -> (i32, i32) {
    %c0_i32 = arith.constant 0 : i32
    %c0_i32_0 = arith.constant 0 : i32
    return %arg0, %c0_i32 : i32, i32
  }
  func.func @transform_1(%arg0: i32) -> (i32, i32) {
    %c0_i32 = arith.constant 0 : i32
    %c0_i32_0 = arith.constant 0 : i32
    %c0_i32_1 = arith.constant 0 : i32
    return %c0_i32, %c0_i32_0 : i32, i32
  }
  func.func @transform_2(%arg0: i32) -> (i32, i32) {
    %c0_i32 = arith.constant 0 : i32
    %c0_i32_0 = arith.constant 0 : i32
    return %arg0, %c0_i32 : i32, i32
  }
  func.func @transform_3(%arg0: i32) -> (i32, i32) {
    %c0_i32 = arith.constant 0 : i32
    %c0_i32_0 = arith.constant 0 : i32
    return %arg0, %c0_i32 : i32, i32
  }
  func.func @transform_4(%arg0: i32) -> (i32, i32) {
    %c0_i32 = arith.constant 0 : i32
    %c0_i32_0 = arith.constant 0 : i32
    return %arg0, %c0_i32 : i32, i32
  }
}

</mosaic_0001>

<bundles_post_ra>
// kernel: _lambda_.5
= control target key start
LH: loop header
LB: loop body
LE: loop exit
PB: predicated region body
PF: predicated region fallthrough
CT: control target
= control target key end

     0   :  { %s1740_s0 = inlined_call_operand.vmem [shape: f32[1024,128], index: 0, kind: input, shape index: {}, may-alias: {0,3}]   ;;  %s1741_s1 = inlined_call_operand.vmem [shape: f32[1,128], index: 1, kind: input, shape index: {}]   ;;  %s1742_s2 = inlined_call_operand.vmem [shape: f32[1,128], index: 2, kind: input, shape index: {}]   ;;  %s1743_s3 = inlined_call_operand.vmem [shape: f32[1024,128], index: 3, kind: output, shape index: {}, may-alias: {0,3}]  }
   0x1   :  { %v14_v0 = vld [vmem:[%s1740_s0] sm:$0xff]  ;;  %v15_v4 = vld [vmem:[%s1740_s0 + $0x8] sm:$0xff]  ;;  %v16_v5 = vld [vmem:[%s1740_s0 + $0x10] sm:$0xff] }
   0x2   :  { %v702_v1 = vld [vmem:[%s1741_s1] ss:$0 sm:$0xff]  ;;  %v17_v6 = vld [vmem:[%s1740_s0 + $0x18] sm:$0xff]  ;;  %v19_v11 = vld [vmem:[%s1740_s0 + $0x28] sm:$0xff] }
   0x3   :  { %v707_v2 = vld [vmem:[%s1742_s2] ss:$0 sm:$0xff]  ;;  %v149_v3 = vmul.f32 %v702_v1, %v14_v0  ;;  %v150_v7 = vmul.f32 %v702_v1, %v15_v4  ;;  %v151_v8 = vmul.f32 %v702_v1, %v16_v5  ;;  %v152_v9 = vmul.f32 %v702_v1, %v17_v6  ;;  %v20_v12 = vld [vmem:[%s1740_s0 + $0x30] sm:$0xff]  ;;  %v21_v17 = vld [vmem:[%s1740_s0 + $0x38] sm:$0xff] }
   0x4   :  { %v18_v10 = vld [vmem:[%s1740_s0 + $0x20] sm:$0xff]  ;;  %v154_v15 = vmul.f32 %v702_v1, %v19_v11  ;;  %v155_v16 = vmul.f32 %v702_v1, %v20_v12  ;;  %v156_v21 = vmul.f32 %v702_v1, %v21_v17  ;;  %v23_v27 = vld [vmem:[%s1740_s0 + $0x48] sm:$0xff]  ;;  %v24_v28 = vld [vmem:[%s1740_s0 + $0x50] sm:$0xff] }
   0x5   :  { %v284_v13 = vadd.f32 %v707_v2, %v149_v3  ;;  %v153_v14 = vmul.f32 %v702_v1, %v18_v10  ;;  %v285_v18 = vadd.f32 %v707_v2, %v150_v7  ;;  %v286_v19 = vadd.f32 %v707_v2, %v151_v8  ;;  %v22_v22 = vld [vmem:[%s1740_s0 + $0x40] sm:$0xff]  ;;  %v25_v29 = vld [vmem:[%s1740_s0 + $0x58] sm:$0xff]  ;;  %v27_v35 = vld [vmem:[%s1740_s0 + $0x68] sm:$0xff] }
   0x6   :  { %v287_v20 = vadd.f32 %v707_v2, %v152_v9  ;;  %v289_v25 = vadd.f32 %v707_v2, %v154_v15  ;;  %v290_v26 = vadd.f32 %v707_v2, %v155_v16  ;;  %v291_v33 = vadd.f32 %v707_v2, %v156_v21  ;;  %v26_v34 = vld [vmem:[%s1740_s0 + $0x60] sm:$0xff]  ;;  %v28_v36 = vld [vmem:[%s1740_s0 + $0x70] sm:$0xff] }
   0x7   :  { %v412_v23 = vmax.f32 %v284_v13, 0.0  ;;  %v288_v24 = vadd.f32 %v707_v2, %v153_v14  ;;  %v413_v30 = vmax.f32 %v285_v18, 0.0  ;;  %v414_v31 = vmax.f32 %v286_v19, 0.0 }
   0x8   :  { %v415_v32 = vmax.f32 %v287_v20, 0.0  ;;  %v417_v38 = vmax.f32 %v289_v25, 0.0  ;;  %v418_v39 = vmax.f32 %v290_v26, 0.0  ;;  %v157_v40 = vmul.f32 %v702_v1, %v22_v22 }
   0x9   :  { %540 = vst [vmem:[%s1743_s3] sm:$0xff] %v412_v23  ;;  %v416_v37 = vmax.f32 %v288_v24, 0.0  ;;  %v419_v42 = vmax.f32 %v291_v33, 0.0  ;;  %v158_v43 = vmul.f32 %v702_v1, %v23_v27  ;;  %v159_v44 = vmul.f32 %v702_v1, %v24_v28 }
   0xa   :  { %v160_v45 = vmul.f32 %v702_v1, %v25_v29  ;;  %v292_v46 = vadd.f32 %v707_v2, %v157_v40  ;;  %v161_v47 = vmul.f32 %v702_v1, %v26_v34  ;;  %v162_v48 = vmul.f32 %v702_v1, %v27_v35 }
   0xb   :  { %v163_v49 = vmul.f32 %v702_v1, %v28_v36  ;;  %v293_v50 = vadd.f32 %v707_v2, %v158_v43  ;;  %v294_v51 = vadd.f32 %v707_v2, %v159_v44 }
   0xc   :  { %v295_v52 = vadd.f32 %v707_v2, %v160_v45  ;;  %v420_v55 = vmax.f32 %v292_v46, 0.0  ;;  %v296_v56 = vadd.f32 %v707_v2, %v161_v47  ;;  %v297_v57 = vadd.f32 %v707_v2, %v162_v48 }
   0xd   :  { %v298_v58 = vadd.f32 %v707_v2, %v163_v49  ;;  %v421_v62 = vmax.f32 %v293_v50, 0.0  ;;  %v422_v63 = vmax.f32 %v294_v51, 0.0 }
   0xe   :  { %v423_v0 = vmax.f32 %v295_v52, 0.0  ;;  %v424_v7 = vmax.f32 %v296_v56, 0.0  ;;  %v425_v8 = vmax.f32 %v297_v57, 0.0 }
   0xf   :  { %v426_v9 = vmax.f32 %v298_v58, 0.0 }
  0x10   :  { %v29_v41 = vld [vmem:[%s1740_s0 + $0x78] sm:$0xff] }
  0x11   :  { %541 = vst [vmem:[%s1743_s3 + $0x8] sm:$0xff] %v413_v30  ;;  %542 = vst [vmem:[%s1743_s3 + $0x10] sm:$0xff] %v414_v31  ;;  %v164_v53 = vmul.f32 %v702_v1, %v29_v41 }
  0x12   :  { %543 = vst [vmem:[%s1743_s3 + $0x18] sm:$0xff] %v415_v32  ;;  %544 = vst [vmem:[%s1743_s3 + $0x20] sm:$0xff] %v416_v37 }
  0x13   :  { %545 = vst [vmem:[%s1743_s3 + $0x28] sm:$0xff] %v417_v38  ;;  %546 = vst [vmem:[%s1743_s3 + $0x30] sm:$0xff] %v418_v39  ;;  %v299_v3 = vadd.f32 %v707_v2, %v164_v53 }
  0x14   :  { %547 = vst [vmem:[%s1743_s3 + $0x38] sm:$0xff] %v419_v42 }
  0x15   :  { %v427_v12 = vmax.f32 %v299_v3, 0.0 }
  0x1b   :  { %v30_v54 = vld [vmem:[%s1740_s0 + $0x80] sm:$0xff]  ;;  %v31_v59 = vld [vmem:[%s1740_s0 + $0x88] sm:$0xff]  ;;  %v32_v60 = vld [vmem:[%s1740_s0 + $0x90] sm:$0xff] }
  0x1c   :  { %v33_v61 = vld [vmem:[%s1740_s0 + $0x98] sm:$0xff]  ;;  %v34_v4 = vld [vmem:[%s1740_s0 + $0xa0] sm:$0xff]  ;;  %v35_v5 = vld [vmem:[%s1740_s0 + $0xa8] sm:$0xff]  ;;  %v165_v10 = vmul.f32 %v702_v1, %v30_v54  ;;  %v166_v13 = vmul.f32 %v702_v1, %v31_v59  ;;  %v167_v14 = vmul.f32 %v702_v1, %v32_v60 }
  0x1d   :  { %v36_v6 = vld [vmem:[%s1740_s0 + $0xb0] sm:$0xff]  ;;  %v168_v15 = vmul.f32 %v702_v1, %v33_v61  ;;  %v169_v17 = vmul.f32 %v702_v1, %v34_v4  ;;  %v170_v18 = vmul.f32 %v702_v1, %v35_v5 }
  0x1e   :  { %548 = vst [vmem:[%s1743_s3 + $0x40] sm:$0xff] %v420_v55  ;;  %v300_v16 = vadd.f32 %v707_v2, %v165_v10  ;;  %v171_v19 = vmul.f32 %v702_v1, %v36_v6  ;;  %v301_v20 = vadd.f32 %v707_v2, %v166_v13  ;;  %v302_v21 = vadd.f32 %v707_v2, %v167_v14 }
  0x1f   :  { %v303_v22 = vadd.f32 %v707_v2, %v168_v15  ;;  %v304_v26 = vadd.f32 %v707_v2, %v169_v17  ;;  %v305_v27 = vadd.f32 %v707_v2, %v170_v18 }
  0x20   :  { %v428_v25 = vmax.f32 %v300_v16, 0.0  ;;  %v306_v28 = vadd.f32 %v707_v2, %v171_v19  ;;  %v429_v32 = vmax.f32 %v301_v20, 0.0  ;;  %v430_v33 = vmax.f32 %v302_v21, 0.0 }
  0x21   :  { %v431_v34 = vmax.f32 %v303_v22, 0.0  ;;  %v432_v39 = vmax.f32 %v304_v26, 0.0  ;;  %v433_v40 = vmax.f32 %v305_v27, 0.0 }
  0x22   :  { %v434_v41 = vmax.f32 %v306_v28, 0.0 }
  0x25   :  { %v37_v11 = vld [vmem:[%s1740_s0 + $0xb8] sm:$0xff] }
  0x26   :  { %549 = vst [vmem:[%s1743_s3 + $0x48] sm:$0xff] %v421_v62  ;;  %550 = vst [vmem:[%s1743_s3 + $0x50] sm:$0xff] %v422_v63  ;;  %v172_v23 = vmul.f32 %v702_v1, %v37_v11 }
  0x27   :  { %551 = vst [vmem:[%s1743_s3 + $0x58] sm:$0xff] %v423_v0  ;;  %552 = vst [vmem:[%s1743_s3 + $0x60] sm:$0xff] %v424_v7 }
  0x28   :  { %553 = vst [vmem:[%s1743_s3 + $0x68] sm:$0xff] %v425_v8  ;;  %554 = vst [vmem:[%s1743_s3 + $0x70] sm:$0xff] %v426_v9  ;;  %v307_v35 = vadd.f32 %v707_v2, %v172_v23 }
  0x29   :  { %555 = vst [vmem:[%s1743_s3 + $0x78] sm:$0xff] %v427_v12 }
  0x2a   :  { %v435_v44 = vmax.f32 %v307_v35, 0.0 }
  0x30   :  { %v38_v24 = vld [vmem:[%s1740_s0 + $0xc0] sm:$0xff]  ;;  %v39_v29 = vld [vmem:[%s1740_s0 + $0xc8] sm:$0xff]  ;;  %v40_v30 = vld [vmem:[%s1740_s0 + $0xd0] sm:$0xff] }
  0x31   :  { %v41_v31 = vld [vmem:[%s1740_s0 + $0xd8] sm:$0xff]  ;;  %v42_v36 = vld [vmem:[%s1740_s0 + $0xe0] sm:$0xff]  ;;  %v43_v37 = vld [vmem:[%s1740_s0 + $0xe8] sm:$0xff]  ;;  %v173_v42 = vmul.f32 %v702_v1, %v38_v24  ;;  %v174_v45 = vmul.f32 %v702_v1, %v39_v29  ;;  %v175_v46 = vmul.f32 %v702_v1, %v40_v30 }
  0x32   :  { %v44_v38 = vld [vmem:[%s1740_s0 + $0xf0] sm:$0xff]  ;;  %v176_v47 = vmul.f32 %v702_v1, %v41_v31  ;;  %v177_v49 = vmul.f32 %v702_v1, %v42_v36  ;;  %v178_v50 = vmul.f32 %v702_v1, %v43_v37 }
  0x33   :  { %556 = vst [vmem:[%s1743_s3 + $0x80] sm:$0xff] %v428_v25  ;;  %v308_v48 = vadd.f32 %v707_v2, %v173_v42  ;;  %v179_v51 = vmul.f32 %v702_v1, %v44_v38  ;;  %v309_v52 = vadd.f32 %v707_v2, %v174_v45  ;;  %v310_v53 = vadd.f32 %v707_v2, %v175_v46 }
  0x34   :  { %v311_v54 = vadd.f32 %v707_v2, %v176_v47  ;;  %v312_v58 = vadd.f32 %v707_v2, %v177_v49  ;;  %v313_v59 = vadd.f32 %v707_v2, %v178_v50 }
  0x35   :  { %v436_v57 = vmax.f32 %v308_v48, 0.0  ;;  %v314_v60 = vadd.f32 %v707_v2, %v179_v51  ;;  %v437_v0 = vmax.f32 %v309_v52, 0.0  ;;  %v438_v3 = vmax.f32 %v310_v53, 0.0 }
  0x36   :  { %v439_v4 = vmax.f32 %v311_v54, 0.0  ;;  %v440_v9 = vmax.f32 %v312_v58, 0.0  ;;  %v441_v10 = vmax.f32 %v313_v59, 0.0 }
  0x37   :  { %v442_v11 = vmax.f32 %v314_v60, 0.0 }
  0x3a   :  { %v45_v43 = vld [vmem:[%s1740_s0 + $0xf8] sm:$0xff] }
  0x3b   :  { %557 = vst [vmem:[%s1743_s3 + $0x88] sm:$0xff] %v429_v32  ;;  %558 = vst [vmem:[%s1743_s3 + $0x90] sm:$0xff] %v430_v33  ;;  %v180_v55 = vmul.f32 %v702_v1, %v45_v43 }
  0x3c   :  { %559 = vst [vmem:[%s1743_s3 + $0x98] sm:$0xff] %v431_v34  ;;  %560 = vst [vmem:[%s1743_s3 + $0xa0] sm:$0xff] %v432_v39 }
  0x3d   :  { %561 = vst [vmem:[%s1743_s3 + $0xa8] sm:$0xff] %v433_v40  ;;  %562 = vst [vmem:[%s1743_s3 + $0xb0] sm:$0xff] %v434_v41  ;;  %v315_v5 = vadd.f32 %v707_v2, %v180_v55 }
  0x3e   :  { %563 = vst [vmem:[%s1743_s3 + $0xb8] sm:$0xff] %v435_v44 }
  0x3f   :  { %v443_v14 = vmax.f32 %v315_v5, 0.0 }
  0x45   :  { %v46_v56 = vld [vmem:[%s1740_s0 + $0x100] sm:$0xff]  ;;  %v47_v61 = vld [vmem:[%s1740_s0 + $0x108] sm:$0xff]  ;;  %v48_v62 = vld [vmem:[%s1740_s0 + $0x110] sm:$0xff] }
  0x46   :  { %v49_v63 = vld [vmem:[%s1740_s0 + $0x118] sm:$0xff]  ;;  %v50_v6 = vld [vmem:[%s1740_s0 + $0x120] sm:$0xff]  ;;  %v51_v7 = vld [vmem:[%s1740_s0 + $0x128] sm:$0xff]  ;;  %v181_v12 = vmul.f32 %v702_v1, %v46_v56  ;;  %v182_v15 = vmul.f32 %v702_v1, %v47_v61  ;;  %v183_v16 = vmul.f32 %v702_v1, %v48_v62 }
  0x47   :  { %v52_v8 = vld [vmem:[%s1740_s0 + $0x130] sm:$0xff]  ;;  %v184_v17 = vmul.f32 %v702_v1, %v49_v63  ;;  %v185_v19 = vmul.f32 %v702_v1, %v50_v6  ;;  %v186_v20 = vmul.f32 %v702_v1, %v51_v7 }
  0x48   :  { %564 = vst [vmem:[%s1743_s3 + $0xc0] sm:$0xff] %v436_v57  ;;  %v316_v18 = vadd.f32 %v707_v2, %v181_v12  ;;  %v187_v21 = vmul.f32 %v702_v1, %v52_v8  ;;  %v317_v22 = vadd.f32 %v707_v2, %v182_v15  ;;  %v318_v23 = vadd.f32 %v707_v2, %v183_v16 }
  0x49   :  { %v319_v24 = vadd.f32 %v707_v2, %v184_v17  ;;  %v320_v28 = vadd.f32 %v707_v2, %v185_v19  ;;  %v321_v29 = vadd.f32 %v707_v2, %v186_v20 }
  0x4a   :  { %v444_v27 = vmax.f32 %v316_v18, 0.0  ;;  %v322_v30 = vadd.f32 %v707_v2, %v187_v21  ;;  %v445_v34 = vmax.f32 %v317_v22, 0.0  ;;  %v446_v35 = vmax.f32 %v318_v23, 0.0 }
  0x4b   :  { %v447_v36 = vmax.f32 %v319_v24, 0.0  ;;  %v448_v41 = vmax.f32 %v320_v28, 0.0  ;;  %v449_v42 = vmax.f32 %v321_v29, 0.0 }
  0x4c   :  { %v450_v43 = vmax.f32 %v322_v30, 0.0 }
  0x4f   :  { %v53_v13 = vld [vmem:[%s1740_s0 + $0x138] sm:$0xff] }
  0x50   :  { %565 = vst [vmem:[%s1743_s3 + $0xc8] sm:$0xff] %v437_v0  ;;  %566 = vst [vmem:[%s1743_s3 + $0xd0] sm:$0xff] %v438_v3  ;;  %v188_v25 = vmul.f32 %v702_v1, %v53_v13 }
  0x51   :  { %567 = vst [vmem:[%s1743_s3 + $0xd8] sm:$0xff] %v439_v4  ;;  %568 = vst [vmem:[%s1743_s3 + $0xe0] sm:$0xff] %v440_v9 }
  0x52   :  { %569 = vst [vmem:[%s1743_s3 + $0xe8] sm:$0xff] %v441_v10  ;;  %570 = vst [vmem:[%s1743_s3 + $0xf0] sm:$0xff] %v442_v11  ;;  %v323_v37 = vadd.f32 %v707_v2, %v188_v25 }
  0x53   :  { %571 = vst [vmem:[%s1743_s3 + $0xf8] sm:$0xff] %v443_v14 }
  0x54   :  { %v451_v46 = vmax.f32 %v323_v37, 0.0 }
  0x5a   :  { %v54_v26 = vld [vmem:[%s1740_s0 + $0x140] sm:$0xff]  ;;  %v55_v31 = vld [vmem:[%s1740_s0 + $0x148] sm:$0xff]  ;;  %v56_v32 = vld [vmem:[%s1740_s0 + $0x150] sm:$0xff] }
  0x5b   :  { %v57_v33 = vld [vmem:[%s1740_s0 + $0x158] sm:$0xff]  ;;  %v58_v38 = vld [vmem:[%s1740_s0 + $0x160] sm:$0xff]  ;;  %v59_v39 = vld [vmem:[%s1740_s0 + $0x168] sm:$0xff]  ;;  %v189_v44 = vmul.f32 %v702_v1, %v54_v26  ;;  %v190_v47 = vmul.f32 %v702_v1, %v55_v31  ;;  %v191_v48 = vmul.f32 %v702_v1, %v56_v32 }
  0x5c   :  { %v60_v40 = vld [vmem:[%s1740_s0 + $0x170] sm:$0xff]  ;;  %v192_v49 = vmul.f32 %v702_v1, %v57_v33  ;;  %v193_v51 = vmul.f32 %v702_v1, %v58_v38  ;;  %v194_v52 = vmul.f32 %v702_v1, %v59_v39 }
  0x5d   :  { %572 = vst [vmem:[%s1743_s3 + $0x100] sm:$0xff] %v444_v27  ;;  %v324_v50 = vadd.f32 %v707_v2, %v189_v44  ;;  %v195_v53 = vmul.f32 %v702_v1, %v60_v40  ;;  %v325_v54 = vadd.f32 %v707_v2, %v190_v47  ;;  %v326_v55 = vadd.f32 %v707_v2, %v191_v48 }
  0x5e   :  { %v327_v56 = vadd.f32 %v707_v2, %v192_v49  ;;  %v328_v60 = vadd.f32 %v707_v2, %v193_v51  ;;  %v329_v61 = vadd.f32 %v707_v2, %v194_v52 }
  0x5f   :  { %v452_v59 = vmax.f32 %v324_v50, 0.0  ;;  %v330_v62 = vadd.f32 %v707_v2, %v195_v53  ;;  %v453_v4 = vmax.f32 %v325_v54, 0.0  ;;  %v454_v5 = vmax.f32 %v326_v55, 0.0 }
  0x60   :  { %v455_v6 = vmax.f32 %v327_v56, 0.0  ;;  %v456_v11 = vmax.f32 %v328_v60, 0.0  ;;  %v457_v12 = vmax.f32 %v329_v61, 0.0 }
  0x61   :  { %v458_v13 = vmax.f32 %v330_v62, 0.0 }
  0x64   :  { %v61_v45 = vld [vmem:[%s1740_s0 + $0x178] sm:$0xff] }
  0x65   :  { %573 = vst [vmem:[%s1743_s3 + $0x108] sm:$0xff] %v445_v34  ;;  %574 = vst [vmem:[%s1743_s3 + $0x110] sm:$0xff] %v446_v35  ;;  %v196_v57 = vmul.f32 %v702_v1, %v61_v45 }
  0x66   :  { %575 = vst [vmem:[%s1743_s3 + $0x118] sm:$0xff] %v447_v36  ;;  %576 = vst [vmem:[%s1743_s3 + $0x120] sm:$0xff] %v448_v41 }
  0x67   :  { %577 = vst [vmem:[%s1743_s3 + $0x128] sm:$0xff] %v449_v42  ;;  %578 = vst [vmem:[%s1743_s3 + $0x130] sm:$0xff] %v450_v43  ;;  %v331_v7 = vadd.f32 %v707_v2, %v196_v57 }
  0x68   :  { %579 = vst [vmem:[%s1743_s3 + $0x138] sm:$0xff] %v451_v46 }
  0x69   :  { %v459_v16 = vmax.f32 %v331_v7, 0.0 }
  0x6f   :  { %v62_v58 = vld [vmem:[%s1740_s0 + $0x180] sm:$0xff]  ;;  %v63_v63 = vld [vmem:[%s1740_s0 + $0x188] sm:$0xff]  ;;  %v64_v0 = vld [vmem:[%s1740_s0 + $0x190] sm:$0xff] }
  0x70   :  { %v65_v3 = vld [vmem:[%s1740_s0 + $0x198] sm:$0xff]  ;;  %v66_v8 = vld [vmem:[%s1740_s0 + $0x1a0] sm:$0xff]  ;;  %v67_v9 = vld [vmem:[%s1740_s0 + $0x1a8] sm:$0xff]  ;;  %v197_v14 = vmul.f32 %v702_v1, %v62_v58  ;;  %v198_v17 = vmul.f32 %v702_v1, %v63_v63  ;;  %v199_v18 = vmul.f32 %v702_v1, %v64_v0 }
  0x71   :  { %v68_v10 = vld [vmem:[%s1740_s0 + $0x1b0] sm:$0xff]  ;;  %v200_v19 = vmul.f32 %v702_v1, %v65_v3  ;;  %v201_v21 = vmul.f32 %v702_v1, %v66_v8  ;;  %v202_v22 = vmul.f32 %v702_v1, %v67_v9 }
  0x72   :  { %580 = vst [vmem:[%s1743_s3 + $0x140] sm:$0xff] %v452_v59  ;;  %v332_v20 = vadd.f32 %v707_v2, %v197_v14  ;;  %v203_v23 = vmul.f32 %v702_v1, %v68_v10  ;;  %v333_v24 = vadd.f32 %v707_v2, %v198_v17  ;;  %v334_v25 = vadd.f32 %v707_v2, %v199_v18 }
  0x73   :  { %v335_v26 = vadd.f32 %v707_v2, %v200_v19  ;;  %v336_v30 = vadd.f32 %v707_v2, %v201_v21  ;;  %v337_v31 = vadd.f32 %v707_v2, %v202_v22 }
  0x74   :  { %v460_v29 = vmax.f32 %v332_v20, 0.0  ;;  %v338_v32 = vadd.f32 %v707_v2, %v203_v23  ;;  %v461_v36 = vmax.f32 %v333_v24, 0.0  ;;  %v462_v37 = vmax.f32 %v334_v25, 0.0 }
  0x75   :  { %v463_v38 = vmax.f32 %v335_v26, 0.0  ;;  %v464_v43 = vmax.f32 %v336_v30, 0.0  ;;  %v465_v44 = vmax.f32 %v337_v31, 0.0 }
  0x76   :  { %v466_v45 = vmax.f32 %v338_v32, 0.0 }
  0x79   :  { %v69_v15 = vld [vmem:[%s1740_s0 + $0x1b8] sm:$0xff] }
  0x7a   :  { %581 = vst [vmem:[%s1743_s3 + $0x148] sm:$0xff] %v453_v4  ;;  %582 = vst [vmem:[%s1743_s3 + $0x150] sm:$0xff] %v454_v5  ;;  %v204_v27 = vmul.f32 %v702_v1, %v69_v15 }
  0x7b   :  { %583 = vst [vmem:[%s1743_s3 + $0x158] sm:$0xff] %v455_v6  ;;  %584 = vst [vmem:[%s1743_s3 + $0x160] sm:$0xff] %v456_v11 }
  0x7c   :  { %585 = vst [vmem:[%s1743_s3 + $0x168] sm:$0xff] %v457_v12  ;;  %586 = vst [vmem:[%s1743_s3 + $0x170] sm:$0xff] %v458_v13  ;;  %v339_v39 = vadd.f32 %v707_v2, %v204_v27 }
  0x7d   :  { %587 = vst [vmem:[%s1743_s3 + $0x178] sm:$0xff] %v459_v16 }
  0x7e   :  { %v467_v48 = vmax.f32 %v339_v39, 0.0 }
  0x84   :  { %v70_v28 = vld [vmem:[%s1740_s0 + $0x1c0] sm:$0xff]  ;;  %v71_v33 = vld [vmem:[%s1740_s0 + $0x1c8] sm:$0xff]  ;;  %v72_v34 = vld [vmem:[%s1740_s0 + $0x1d0] sm:$0xff] }
  0x85   :  { %v73_v35 = vld [vmem:[%s1740_s0 + $0x1d8] sm:$0xff]  ;;  %v74_v40 = vld [vmem:[%s1740_s0 + $0x1e0] sm:$0xff]  ;;  %v75_v41 = vld [vmem:[%s1740_s0 + $0x1e8] sm:$0xff]  ;;  %v205_v46 = vmul.f32 %v702_v1, %v70_v28  ;;  %v206_v49 = vmul.f32 %v702_v1, %v71_v33  ;;  %v207_v50 = vmul.f32 %v702_v1, %v72_v34 }
  0x86   :  { %v76_v42 = vld [vmem:[%s1740_s0 + $0x1f0] sm:$0xff]  ;;  %v208_v51 = vmul.f32 %v702_v1, %v73_v35  ;;  %v209_v53 = vmul.f32 %v702_v1, %v74_v40  ;;  %v210_v54 = vmul.f32 %v702_v1, %v75_v41 }
  0x87   :  { %588 = vst [vmem:[%s1743_s3 + $0x180] sm:$0xff] %v460_v29  ;;  %v340_v52 = vadd.f32 %v707_v2, %v205_v46  ;;  %v211_v55 = vmul.f32 %v702_v1, %v76_v42  ;;  %v341_v56 = vadd.f32 %v707_v2, %v206_v49  ;;  %v342_v57 = vadd.f32 %v707_v2, %v207_v50 }
  0x88   :  { %v343_v58 = vadd.f32 %v707_v2, %v208_v51  ;;  %v344_v62 = vadd.f32 %v707_v2, %v209_v53  ;;  %v345_v63 = vadd.f32 %v707_v2, %v210_v54 }
  0x89   :  { %v468_v61 = vmax.f32 %v340_v52, 0.0  ;;  %v346_v0 = vadd.f32 %v707_v2, %v211_v55  ;;  %v469_v6 = vmax.f32 %v341_v56, 0.0  ;;  %v470_v7 = vmax.f32 %v342_v57, 0.0 }
  0x8a   :  { %v471_v8 = vmax.f32 %v343_v58, 0.0  ;;  %v472_v13 = vmax.f32 %v344_v62, 0.0  ;;  %v473_v14 = vmax.f32 %v345_v63, 0.0 }
  0x8b   :  { %v474_v15 = vmax.f32 %v346_v0, 0.0 }
  0x8e   :  { %v77_v47 = vld [vmem:[%s1740_s0 + $0x1f8] sm:$0xff] }
  0x8f   :  { %589 = vst [vmem:[%s1743_s3 + $0x188] sm:$0xff] %v461_v36  ;;  %590 = vst [vmem:[%s1743_s3 + $0x190] sm:$0xff] %v462_v37  ;;  %v212_v59 = vmul.f32 %v702_v1, %v77_v47 }
  0x90   :  { %591 = vst [vmem:[%s1743_s3 + $0x198] sm:$0xff] %v463_v38  ;;  %592 = vst [vmem:[%s1743_s3 + $0x1a0] sm:$0xff] %v464_v43 }
  0x91   :  { %593 = vst [vmem:[%s1743_s3 + $0x1a8] sm:$0xff] %v465_v44  ;;  %594 = vst [vmem:[%s1743_s3 + $0x1b0] sm:$0xff] %v466_v45  ;;  %v347_v9 = vadd.f32 %v707_v2, %v212_v59 }
  0x92   :  { %595 = vst [vmem:[%s1743_s3 + $0x1b8] sm:$0xff] %v467_v48 }
  0x93   :  { %v475_v18 = vmax.f32 %v347_v9, 0.0 }
  0x99   :  { %v78_v60 = vld [vmem:[%s1740_s0 + $0x200] sm:$0xff]  ;;  %v79_v3 = vld [vmem:[%s1740_s0 + $0x208] sm:$0xff]  ;;  %v80_v4 = vld [vmem:[%s1740_s0 + $0x210] sm:$0xff] }
  0x9a   :  { %v81_v5 = vld [vmem:[%s1740_s0 + $0x218] sm:$0xff]  ;;  %v82_v10 = vld [vmem:[%s1740_s0 + $0x220] sm:$0xff]  ;;  %v83_v11 = vld [vmem:[%s1740_s0 + $0x228] sm:$0xff]  ;;  %v213_v16 = vmul.f32 %v702_v1, %v78_v60  ;;  %v214_v19 = vmul.f32 %v702_v1, %v79_v3  ;;  %v215_v20 = vmul.f32 %v702_v1, %v80_v4 }
  0x9b   :  { %v84_v12 = vld [vmem:[%s1740_s0 + $0x230] sm:$0xff]  ;;  %v216_v21 = vmul.f32 %v702_v1, %v81_v5  ;;  %v217_v23 = vmul.f32 %v702_v1, %v82_v10  ;;  %v218_v24 = vmul.f32 %v702_v1, %v83_v11 }
  0x9c   :  { %596 = vst [vmem:[%s1743_s3 + $0x1c0] sm:$0xff] %v468_v61  ;;  %v348_v22 = vadd.f32 %v707_v2, %v213_v16  ;;  %v219_v25 = vmul.f32 %v702_v1, %v84_v12  ;;  %v349_v26 = vadd.f32 %v707_v2, %v214_v19  ;;  %v350_v27 = vadd.f32 %v707_v2, %v215_v20 }
  0x9d   :  { %v351_v28 = vadd.f32 %v707_v2, %v216_v21  ;;  %v352_v32 = vadd.f32 %v707_v2, %v217_v23  ;;  %v353_v33 = vadd.f32 %v707_v2, %v218_v24 }
  0x9e   :  { %v476_v31 = vmax.f32 %v348_v22, 0.0  ;;  %v354_v34 = vadd.f32 %v707_v2, %v219_v25  ;;  %v477_v38 = vmax.f32 %v349_v26, 0.0  ;;  %v478_v39 = vmax.f32 %v350_v27, 0.0 }
  0x9f   :  { %v479_v40 = vmax.f32 %v351_v28, 0.0  ;;  %v480_v45 = vmax.f32 %v352_v32, 0.0  ;;  %v481_v46 = vmax.f32 %v353_v33, 0.0 }
  0xa0   :  { %v482_v47 = vmax.f32 %v354_v34, 0.0 }
  0xa3   :  { %v85_v17 = vld [vmem:[%s1740_s0 + $0x238] sm:$0xff] }
  0xa4   :  { %597 = vst [vmem:[%s1743_s3 + $0x1c8] sm:$0xff] %v469_v6  ;;  %598 = vst [vmem:[%s1743_s3 + $0x1d0] sm:$0xff] %v470_v7  ;;  %v220_v29 = vmul.f32 %v702_v1, %v85_v17 }
  0xa5   :  { %599 = vst [vmem:[%s1743_s3 + $0x1d8] sm:$0xff] %v471_v8  ;;  %600 = vst [vmem:[%s1743_s3 + $0x1e0] sm:$0xff] %v472_v13 }
  0xa6   :  { %601 = vst [vmem:[%s1743_s3 + $0x1e8] sm:$0xff] %v473_v14  ;;  %602 = vst [vmem:[%s1743_s3 + $0x1f0] sm:$0xff] %v474_v15  ;;  %v355_v41 = vadd.f32 %v707_v2, %v220_v29 }
  0xa7   :  { %603 = vst [vmem:[%s1743_s3 + $0x1f8] sm:$0xff] %v475_v18 }
  0xa8   :  { %v483_v50 = vmax.f32 %v355_v41, 0.0 }
  0xae   :  { %v86_v30 = vld [vmem:[%s1740_s0 + $0x240] sm:$0xff]  ;;  %v87_v35 = vld [vmem:[%s1740_s0 + $0x248] sm:$0xff]  ;;  %v88_v36 = vld [vmem:[%s1740_s0 + $0x250] sm:$0xff] }
  0xaf   :  { %v89_v37 = vld [vmem:[%s1740_s0 + $0x258] sm:$0xff]  ;;  %v90_v42 = vld [vmem:[%s1740_s0 + $0x260] sm:$0xff]  ;;  %v91_v43 = vld [vmem:[%s1740_s0 + $0x268] sm:$0xff]  ;;  %v221_v48 = vmul.f32 %v702_v1, %v86_v30  ;;  %v222_v51 = vmul.f32 %v702_v1, %v87_v35  ;;  %v223_v52 = vmul.f32 %v702_v1, %v88_v36 }
  0xb0   :  { %v92_v44 = vld [vmem:[%s1740_s0 + $0x270] sm:$0xff]  ;;  %v224_v53 = vmul.f32 %v702_v1, %v89_v37  ;;  %v225_v55 = vmul.f32 %v702_v1, %v90_v42  ;;  %v226_v56 = vmul.f32 %v702_v1, %v91_v43 }
  0xb1   :  { %604 = vst [vmem:[%s1743_s3 + $0x200] sm:$0xff] %v476_v31  ;;  %v356_v54 = vadd.f32 %v707_v2, %v221_v48  ;;  %v227_v57 = vmul.f32 %v702_v1, %v92_v44  ;;  %v357_v58 = vadd.f32 %v707_v2, %v222_v51  ;;  %v358_v59 = vadd.f32 %v707_v2, %v223_v52 }
  0xb2   :  { %v359_v60 = vadd.f32 %v707_v2, %v224_v53  ;;  %v360_v0 = vadd.f32 %v707_v2, %v225_v55  ;;  %v361_v3 = vadd.f32 %v707_v2, %v226_v56 }
  0xb3   :  { %v484_v63 = vmax.f32 %v356_v54, 0.0  ;;  %v362_v4 = vadd.f32 %v707_v2, %v227_v57  ;;  %v485_v8 = vmax.f32 %v357_v58, 0.0  ;;  %v486_v9 = vmax.f32 %v358_v59, 0.0 }
  0xb4   :  { %v487_v10 = vmax.f32 %v359_v60, 0.0  ;;  %v488_v15 = vmax.f32 %v360_v0, 0.0  ;;  %v489_v16 = vmax.f32 %v361_v3, 0.0 }
  0xb5   :  { %v490_v17 = vmax.f32 %v362_v4, 0.0 }
  0xb8   :  { %v93_v49 = vld [vmem:[%s1740_s0 + $0x278] sm:$0xff] }
  0xb9   :  { %605 = vst [vmem:[%s1743_s3 + $0x208] sm:$0xff] %v477_v38  ;;  %606 = vst [vmem:[%s1743_s3 + $0x210] sm:$0xff] %v478_v39  ;;  %v228_v61 = vmul.f32 %v702_v1, %v93_v49 }
  0xba   :  { %607 = vst [vmem:[%s1743_s3 + $0x218] sm:$0xff] %v479_v40  ;;  %608 = vst [vmem:[%s1743_s3 + $0x220] sm:$0xff] %v480_v45 }
  0xbb   :  { %609 = vst [vmem:[%s1743_s3 + $0x228] sm:$0xff] %v481_v46  ;;  %610 = vst [vmem:[%s1743_s3 + $0x230] sm:$0xff] %v482_v47  ;;  %v363_v11 = vadd.f32 %v707_v2, %v228_v61 }
  0xbc   :  { %611 = vst [vmem:[%s1743_s3 + $0x238] sm:$0xff] %v483_v50 }
  0xbd   :  { %v491_v20 = vmax.f32 %v363_v11, 0.0 }
  0xc3   :  { %v94_v62 = vld [vmem:[%s1740_s0 + $0x280] sm:$0xff]  ;;  %v95_v5 = vld [vmem:[%s1740_s0 + $0x288] sm:$0xff]  ;;  %v96_v6 = vld [vmem:[%s1740_s0 + $0x290] sm:$0xff] }
  0xc4   :  { %v97_v7 = vld [vmem:[%s1740_s0 + $0x298] sm:$0xff]  ;;  %v98_v12 = vld [vmem:[%s1740_s0 + $0x2a0] sm:$0xff]  ;;  %v99_v13 = vld [vmem:[%s1740_s0 + $0x2a8] sm:$0xff]  ;;  %v229_v18 = vmul.f32 %v702_v1, %v94_v62  ;;  %v230_v21 = vmul.f32 %v702_v1, %v95_v5  ;;  %v231_v22 = vmul.f32 %v702_v1, %v96_v6 }
  0xc5   :  { %v100_v14 = vld [vmem:[%s1740_s0 + $0x2b0] sm:$0xff]  ;;  %v232_v23 = vmul.f32 %v702_v1, %v97_v7  ;;  %v233_v25 = vmul.f32 %v702_v1, %v98_v12  ;;  %v234_v26 = vmul.f32 %v702_v1, %v99_v13 }
  0xc6   :  { %612 = vst [vmem:[%s1743_s3 + $0x240] sm:$0xff] %v484_v63  ;;  %v364_v24 = vadd.f32 %v707_v2, %v229_v18  ;;  %v235_v27 = vmul.f32 %v702_v1, %v100_v14  ;;  %v365_v28 = vadd.f32 %v707_v2, %v230_v21  ;;  %v366_v29 = vadd.f32 %v707_v2, %v231_v22 }
  0xc7   :  { %v367_v30 = vadd.f32 %v707_v2, %v232_v23  ;;  %v368_v34 = vadd.f32 %v707_v2, %v233_v25  ;;  %v369_v35 = vadd.f32 %v707_v2, %v234_v26 }
  0xc8   :  { %v492_v33 = vmax.f32 %v364_v24, 0.0  ;;  %v370_v36 = vadd.f32 %v707_v2, %v235_v27  ;;  %v493_v40 = vmax.f32 %v365_v28, 0.0  ;;  %v494_v41 = vmax.f32 %v366_v29, 0.0 }
  0xc9   :  { %v495_v42 = vmax.f32 %v367_v30, 0.0  ;;  %v496_v47 = vmax.f32 %v368_v34, 0.0  ;;  %v497_v48 = vmax.f32 %v369_v35, 0.0 }
  0xca   :  { %v498_v49 = vmax.f32 %v370_v36, 0.0 }
  0xcd   :  { %v101_v19 = vld [vmem:[%s1740_s0 + $0x2b8] sm:$0xff] }
  0xce   :  { %613 = vst [vmem:[%s1743_s3 + $0x248] sm:$0xff] %v485_v8  ;;  %614 = vst [vmem:[%s1743_s3 + $0x250] sm:$0xff] %v486_v9  ;;  %v236_v31 = vmul.f32 %v702_v1, %v101_v19 }
  0xcf   :  { %615 = vst [vmem:[%s1743_s3 + $0x258] sm:$0xff] %v487_v10  ;;  %616 = vst [vmem:[%s1743_s3 + $0x260] sm:$0xff] %v488_v15 }
  0xd0   :  { %617 = vst [vmem:[%s1743_s3 + $0x268] sm:$0xff] %v489_v16  ;;  %618 = vst [vmem:[%s1743_s3 + $0x270] sm:$0xff] %v490_v17  ;;  %v371_v43 = vadd.f32 %v707_v2, %v236_v31 }
  0xd1   :  { %619 = vst [vmem:[%s1743_s3 + $0x278] sm:$0xff] %v491_v20 }
  0xd2   :  { %v499_v52 = vmax.f32 %v371_v43, 0.0 }
  0xd8   :  { %v102_v32 = vld [vmem:[%s1740_s0 + $0x2c0] sm:$0xff]  ;;  %v103_v37 = vld [vmem:[%s1740_s0 + $0x2c8] sm:$0xff]  ;;  %v104_v38 = vld [vmem:[%s1740_s0 + $0x2d0] sm:$0xff] }
  0xd9   :  { %v105_v39 = vld [vmem:[%s1740_s0 + $0x2d8] sm:$0xff]  ;;  %v106_v44 = vld [vmem:[%s1740_s0 + $0x2e0] sm:$0xff]  ;;  %v107_v45 = vld [vmem:[%s1740_s0 + $0x2e8] sm:$0xff]  ;;  %v237_v50 = vmul.f32 %v702_v1, %v102_v32  ;;  %v238_v53 = vmul.f32 %v702_v1, %v103_v37  ;;  %v239_v54 = vmul.f32 %v702_v1, %v104_v38 }
  0xda   :  { %v108_v46 = vld [vmem:[%s1740_s0 + $0x2f0] sm:$0xff]  ;;  %v240_v55 = vmul.f32 %v702_v1, %v105_v39  ;;  %v241_v57 = vmul.f32 %v702_v1, %v106_v44  ;;  %v242_v58 = vmul.f32 %v702_v1, %v107_v45  ;;  %v1528_v44 = vld [vmem:[%s1742_s2] ss:$0 sm:$0xff] }
  0xdb   :  { %620 = vst [vmem:[%s1743_s3 + $0x280] sm:$0xff] %v492_v33  ;;  %v372_v56 = vadd.f32 %v707_v2, %v237_v50  ;;  %v243_v59 = vmul.f32 %v702_v1, %v108_v46  ;;  %v373_v60 = vadd.f32 %v707_v2, %v238_v53  ;;  %v374_v61 = vadd.f32 %v707_v2, %v239_v54 }
  0xdc   :  { %v375_v62 = vadd.f32 %v707_v2, %v240_v55  ;;  %v376_v4 = vadd.f32 %v707_v2, %v241_v57  ;;  %v377_v5 = vadd.f32 %v707_v2, %v242_v58 }
  0xdd   :  { %v500_v3 = vmax.f32 %v372_v56, 0.0  ;;  %v378_v6 = vadd.f32 %v707_v2, %v243_v59  ;;  %v501_v10 = vmax.f32 %v373_v60, 0.0  ;;  %v502_v11 = vmax.f32 %v374_v61, 0.0 }
  0xde   :  { %v503_v12 = vmax.f32 %v375_v62, 0.0  ;;  %v504_v17 = vmax.f32 %v376_v4, 0.0  ;;  %v505_v18 = vmax.f32 %v377_v5, 0.0 }
  0xdf   :  { %v506_v19 = vmax.f32 %v378_v6, 0.0 }
  0xe2   :  { %v109_v51 = vld [vmem:[%s1740_s0 + $0x2f8] sm:$0xff] }
  0xe3   :  { %621 = vst [vmem:[%s1743_s3 + $0x288] sm:$0xff] %v493_v40  ;;  %622 = vst [vmem:[%s1743_s3 + $0x290] sm:$0xff] %v494_v41  ;;  %v244_v63 = vmul.f32 %v702_v1, %v109_v51  ;;  %v1546_v51 = vld [vmem:[%s1741_s1] ss:$0 sm:$0xff] }
  0xe4   :  { %623 = vst [vmem:[%s1743_s3 + $0x298] sm:$0xff] %v495_v42  ;;  %624 = vst [vmem:[%s1743_s3 + $0x2a0] sm:$0xff] %v496_v47 }
  0xe5   :  { %625 = vst [vmem:[%s1743_s3 + $0x2a8] sm:$0xff] %v497_v48  ;;  %626 = vst [vmem:[%s1743_s3 + $0x2b0] sm:$0xff] %v498_v49  ;;  %v379_v13 = vadd.f32 %v707_v2, %v244_v63 }
  0xe6   :  { %627 = vst [vmem:[%s1743_s3 + $0x2b8] sm:$0xff] %v499_v52 }
  0xe7   :  { %v507_v22 = vmax.f32 %v379_v13, 0.0 }
  0xed   :  { %v110_v0 = vld [vmem:[%s1740_s0 + $0x300] sm:$0xff]  ;;  %v111_v7 = vld [vmem:[%s1740_s0 + $0x308] sm:$0xff]  ;;  %v112_v8 = vld [vmem:[%s1740_s0 + $0x310] sm:$0xff] }
  0xee   :  { %v113_v9 = vld [vmem:[%s1740_s0 + $0x318] sm:$0xff]  ;;  %v114_v14 = vld [vmem:[%s1740_s0 + $0x320] sm:$0xff]  ;;  %v115_v15 = vld [vmem:[%s1740_s0 + $0x328] sm:$0xff]  ;;  %v245_v20 = vmul.f32 %v702_v1, %v110_v0  ;;  %v246_v23 = vmul.f32 %v702_v1, %v111_v7  ;;  %v247_v24 = vmul.f32 %v702_v1, %v112_v8 }
  0xef   :  { %v116_v16 = vld [vmem:[%s1740_s0 + $0x330] sm:$0xff]  ;;  %v248_v25 = vmul.f32 %v702_v1, %v113_v9  ;;  %v249_v27 = vmul.f32 %v702_v1, %v114_v14  ;;  %v250_v28 = vmul.f32 %v702_v1, %v115_v15 }
  0xf0   :  { %628 = vst [vmem:[%s1743_s3 + $0x2c0] sm:$0xff] %v500_v3  ;;  %v380_v26 = vadd.f32 %v707_v2, %v245_v20  ;;  %v251_v29 = vmul.f32 %v702_v1, %v116_v16  ;;  %v381_v30 = vadd.f32 %v707_v2, %v246_v23  ;;  %v382_v31 = vadd.f32 %v707_v2, %v247_v24 }
  0xf1   :  { %v383_v32 = vadd.f32 %v707_v2, %v248_v25  ;;  %v384_v36 = vadd.f32 %v707_v2, %v249_v27  ;;  %v385_v37 = vadd.f32 %v707_v2, %v250_v28 }
  0xf2   :  { %v508_v35 = vmax.f32 %v380_v26, 0.0  ;;  %v386_v38 = vadd.f32 %v707_v2, %v251_v29  ;;  %v509_v41 = vmax.f32 %v381_v30, 0.0  ;;  %v510_v42 = vmax.f32 %v382_v31, 0.0 }
  0xf3   :  { %v511_v43 = vmax.f32 %v383_v32, 0.0  ;;  %v512_v48 = vmax.f32 %v384_v36, 0.0  ;;  %v513_v49 = vmax.f32 %v385_v37, 0.0 }
  0xf4   :  { %v514_v50 = vmax.f32 %v386_v38, 0.0 }
  0xf7   :  { %v117_v21 = vld [vmem:[%s1740_s0 + $0x338] sm:$0xff] }
  0xf8   :  { %629 = vst [vmem:[%s1743_s3 + $0x2c8] sm:$0xff] %v501_v10  ;;  %630 = vst [vmem:[%s1743_s3 + $0x2d0] sm:$0xff] %v502_v11  ;;  %v252_v33 = vmul.f32 %v702_v1, %v117_v21 }
  0xf9   :  { %631 = vst [vmem:[%s1743_s3 + $0x2d8] sm:$0xff] %v503_v12  ;;  %632 = vst [vmem:[%s1743_s3 + $0x2e0] sm:$0xff] %v504_v17 }
  0xfa   :  { %633 = vst [vmem:[%s1743_s3 + $0x2e8] sm:$0xff] %v505_v18  ;;  %634 = vst [vmem:[%s1743_s3 + $0x2f0] sm:$0xff] %v506_v19  ;;  %v387_v2 = vadd.f32 %v1528_v44, %v252_v33 }
  0xfb   :  { %635 = vst [vmem:[%s1743_s3 + $0x2f8] sm:$0xff] %v507_v22 }
  0xfc   :  { %v515_v54 = vmax.f32 %v387_v2, 0.0 }
 0x102   :  { %v118_v34 = vld [vmem:[%s1740_s0 + $0x340] sm:$0xff]  ;;  %v119_v39 = vld [vmem:[%s1740_s0 + $0x348] sm:$0xff]  ;;  %v120_v40 = vld [vmem:[%s1740_s0 + $0x350] sm:$0xff] }
 0x103   :  { %v121_v1 = vld [vmem:[%s1740_s0 + $0x358] sm:$0xff]  ;;  %v122_v45 = vld [vmem:[%s1740_s0 + $0x360] sm:$0xff]  ;;  %v123_v46 = vld [vmem:[%s1740_s0 + $0x368] sm:$0xff]  ;;  %v253_v52 = vmul.f32 %v1546_v51, %v118_v34  ;;  %v254_v55 = vmul.f32 %v1546_v51, %v119_v39  ;;  %v255_v56 = vmul.f32 %v1546_v51, %v120_v40 }
 0x104   :  { %v124_v47 = vld [vmem:[%s1740_s0 + $0x370] sm:$0xff]  ;;  %v256_v57 = vmul.f32 %v1546_v51, %v121_v1  ;;  %v257_v59 = vmul.f32 %v1546_v51, %v122_v45  ;;  %v258_v60 = vmul.f32 %v1546_v51, %v123_v46 }
 0x105   :  { %636 = vst [vmem:[%s1743_s3 + $0x300] sm:$0xff] %v508_v35  ;;  %v388_v58 = vadd.f32 %v1528_v44, %v253_v52  ;;  %v259_v61 = vmul.f32 %v1546_v51, %v124_v47  ;;  %v389_v62 = vadd.f32 %v1528_v44, %v254_v55  ;;  %v390_v63 = vadd.f32 %v1528_v44, %v255_v56 }
 0x106   :  { %v391_v0 = vadd.f32 %v1528_v44, %v256_v57  ;;  %v392_v6 = vadd.f32 %v1528_v44, %v257_v59  ;;  %v393_v7 = vadd.f32 %v1528_v44, %v258_v60 }
 0x107   :  { %v516_v5 = vmax.f32 %v388_v58, 0.0  ;;  %v394_v8 = vadd.f32 %v1528_v44, %v259_v61  ;;  %v517_v12 = vmax.f32 %v389_v62, 0.0  ;;  %v518_v13 = vmax.f32 %v390_v63, 0.0 }
 0x108   :  { %v519_v14 = vmax.f32 %v391_v0, 0.0  ;;  %v520_v19 = vmax.f32 %v392_v6, 0.0  ;;  %v521_v20 = vmax.f32 %v393_v7, 0.0 }
 0x109   :  { %v522_v21 = vmax.f32 %v394_v8, 0.0 }
 0x10c   :  { %v125_v53 = vld [vmem:[%s1740_s0 + $0x378] sm:$0xff] }
 0x10d   :  { %637 = vst [vmem:[%s1743_s3 + $0x308] sm:$0xff] %v509_v41  ;;  %638 = vst [vmem:[%s1743_s3 + $0x310] sm:$0xff] %v510_v42  ;;  %v260_v3 = vmul.f32 %v1546_v51, %v125_v53 }
 0x10e   :  { %639 = vst [vmem:[%s1743_s3 + $0x318] sm:$0xff] %v511_v43  ;;  %640 = vst [vmem:[%s1743_s3 + $0x320] sm:$0xff] %v512_v48 }
 0x10f   :  { %641 = vst [vmem:[%s1743_s3 + $0x328] sm:$0xff] %v513_v49  ;;  %642 = vst [vmem:[%s1743_s3 + $0x330] sm:$0xff] %v514_v50  ;;  %v395_v15 = vadd.f32 %v1528_v44, %v260_v3 }
 0x110   :  { %643 = vst [vmem:[%s1743_s3 + $0x338] sm:$0xff] %v515_v54 }
 0x111   :  { %v523_v24 = vmax.f32 %v395_v15, 0.0 }
 0x117   :  { %v126_v4 = vld [vmem:[%s1740_s0 + $0x380] sm:$0xff]  ;;  %v127_v9 = vld [vmem:[%s1740_s0 + $0x388] sm:$0xff]  ;;  %v128_v10 = vld [vmem:[%s1740_s0 + $0x390] sm:$0xff] }
 0x118   :  { %v129_v11 = vld [vmem:[%s1740_s0 + $0x398] sm:$0xff]  ;;  %v130_v16 = vld [vmem:[%s1740_s0 + $0x3a0] sm:$0xff]  ;;  %v131_v17 = vld [vmem:[%s1740_s0 + $0x3a8] sm:$0xff]  ;;  %v261_v22 = vmul.f32 %v1546_v51, %v126_v4  ;;  %v262_v25 = vmul.f32 %v1546_v51, %v127_v9  ;;  %v263_v26 = vmul.f32 %v1546_v51, %v128_v10 }
 0x119   :  { %v132_v18 = vld [vmem:[%s1740_s0 + $0x3b0] sm:$0xff]  ;;  %v264_v27 = vmul.f32 %v1546_v51, %v129_v11  ;;  %v265_v29 = vmul.f32 %v1546_v51, %v130_v16  ;;  %v266_v30 = vmul.f32 %v1546_v51, %v131_v17 }
 0x11a   :  { %644 = vst [vmem:[%s1743_s3 + $0x340] sm:$0xff] %v516_v5  ;;  %v396_v28 = vadd.f32 %v1528_v44, %v261_v22  ;;  %v267_v31 = vmul.f32 %v1546_v51, %v132_v18  ;;  %v397_v32 = vadd.f32 %v1528_v44, %v262_v25  ;;  %v398_v33 = vadd.f32 %v1528_v44, %v263_v26 }
 0x11b   :  { %v399_v34 = vadd.f32 %v1528_v44, %v264_v27  ;;  %v400_v38 = vadd.f32 %v1528_v44, %v265_v29  ;;  %v401_v39 = vadd.f32 %v1528_v44, %v266_v30 }
 0x11c   :  { %v524_v37 = vmax.f32 %v396_v28, 0.0  ;;  %v402_v40 = vadd.f32 %v1528_v44, %v267_v31  ;;  %v525_v43 = vmax.f32 %v397_v32, 0.0  ;;  %v526_v2 = vmax.f32 %v398_v33, 0.0 }
 0x11d   :  { %v527_v45 = vmax.f32 %v399_v34, 0.0  ;;  %v528_v50 = vmax.f32 %v400_v38, 0.0  ;;  %v529_v52 = vmax.f32 %v401_v39, 0.0 }
 0x11e   :  { %v530_v53 = vmax.f32 %v402_v40, 0.0 }
 0x121   :  { %v133_v23 = vld [vmem:[%s1740_s0 + $0x3b8] sm:$0xff] }
 0x122   :  { %645 = vst [vmem:[%s1743_s3 + $0x348] sm:$0xff] %v517_v12  ;;  %646 = vst [vmem:[%s1743_s3 + $0x350] sm:$0xff] %v518_v13  ;;  %v268_v35 = vmul.f32 %v1546_v51, %v133_v23 }
 0x123   :  { %647 = vst [vmem:[%s1743_s3 + $0x358] sm:$0xff] %v519_v14  ;;  %648 = vst [vmem:[%s1743_s3 + $0x360] sm:$0xff] %v520_v19 }
 0x124   :  { %649 = vst [vmem:[%s1743_s3 + $0x368] sm:$0xff] %v521_v20  ;;  %650 = vst [vmem:[%s1743_s3 + $0x370] sm:$0xff] %v522_v21  ;;  %v403_v46 = vadd.f32 %v1528_v44, %v268_v35 }
 0x125   :  { %651 = vst [vmem:[%s1743_s3 + $0x378] sm:$0xff] %v523_v24 }
 0x126   :  { %v531_v56 = vmax.f32 %v403_v46, 0.0 }
 0x12c   :  { %v134_v36 = vld [vmem:[%s1740_s0 + $0x3c0] sm:$0xff]  ;;  %v135_v1 = vld [vmem:[%s1740_s0 + $0x3c8] sm:$0xff]  ;;  %v136_v41 = vld [vmem:[%s1740_s0 + $0x3d0] sm:$0xff] }
 0x12d   :  { %v137_v42 = vld [vmem:[%s1740_s0 + $0x3d8] sm:$0xff]  ;;  %v138_v47 = vld [vmem:[%s1740_s0 + $0x3e0] sm:$0xff]  ;;  %v139_v48 = vld [vmem:[%s1740_s0 + $0x3e8] sm:$0xff]  ;;  %v269_v54 = vmul.f32 %v1546_v51, %v134_v36  ;;  %v270_v57 = vmul.f32 %v1546_v51, %v135_v1  ;;  %v271_v58 = vmul.f32 %v1546_v51, %v136_v41 }
 0x12e   :  { %v140_v49 = vld [vmem:[%s1740_s0 + $0x3f0] sm:$0xff]  ;;  %v272_v59 = vmul.f32 %v1546_v51, %v137_v42  ;;  %v273_v61 = vmul.f32 %v1546_v51, %v138_v47  ;;  %v274_v62 = vmul.f32 %v1546_v51, %v139_v48 }
 0x12f   :  { %652 = vst [vmem:[%s1743_s3 + $0x380] sm:$0xff] %v524_v37  ;;  %v404_v60 = vadd.f32 %v1528_v44, %v269_v54  ;;  %v275_v63 = vmul.f32 %v1546_v51, %v140_v49  ;;  %v405_v0 = vadd.f32 %v1528_v44, %v270_v57  ;;  %v406_v3 = vadd.f32 %v1528_v44, %v271_v58 }
 0x130   :  { %v407_v4 = vadd.f32 %v1528_v44, %v272_v59  ;;  %v408_v7 = vadd.f32 %v1528_v44, %v273_v61  ;;  %v409_v8 = vadd.f32 %v1528_v44, %v274_v62 }
 0x131   :  { %v532_v6 = vmax.f32 %v404_v60, 0.0  ;;  %v410_v9 = vadd.f32 %v1528_v44, %v275_v63  ;;  %v533_v10 = vmax.f32 %v405_v0, 0.0  ;;  %v534_v11 = vmax.f32 %v406_v3, 0.0 }
 0x132   :  { %v535_v12 = vmax.f32 %v407_v4, 0.0  ;;  %v536_v14 = vmax.f32 %v408_v7, 0.0  ;;  %v537_v15 = vmax.f32 %v409_v8, 0.0 }
 0x133   :  { %v538_v16 = vmax.f32 %v410_v9, 0.0 }
 0x136   :  { %v141_v55 = vld [vmem:[%s1740_s0 + $0x3f8] sm:$0xff] }
 0x137   :  { %653 = vst [vmem:[%s1743_s3 + $0x388] sm:$0xff] %v525_v43  ;;  %654 = vst [vmem:[%s1743_s3 + $0x390] sm:$0xff] %v526_v2  ;;  %v276_v5 = vmul.f32 %v1546_v51, %v141_v55 }
 0x138   :  { %655 = vst [vmem:[%s1743_s3 + $0x398] sm:$0xff] %v527_v45  ;;  %656 = vst [vmem:[%s1743_s3 + $0x3a0] sm:$0xff] %v528_v50 }
 0x139   :  { %657 = vst [vmem:[%s1743_s3 + $0x3a8] sm:$0xff] %v529_v52  ;;  %658 = vst [vmem:[%s1743_s3 + $0x3b0] sm:$0xff] %v530_v53  ;;  %v411_v13 = vadd.f32 %v1528_v44, %v276_v5 }
 0x13a   :  { %659 = vst [vmem:[%s1743_s3 + $0x3b8] sm:$0xff] %v531_v56  ;;  %660 = vst [vmem:[%s1743_s3 + $0x3c0] sm:$0xff] %v532_v6 }
 0x13b   :  { %661 = vst [vmem:[%s1743_s3 + $0x3c8] sm:$0xff] %v533_v10  ;;  %662 = vst [vmem:[%s1743_s3 + $0x3d0] sm:$0xff] %v534_v11  ;;  %v539_v44 = vmax.f32 %v411_v13, 0.0 }
 0x13c   :  { %663 = vst [vmem:[%s1743_s3 + $0x3d8] sm:$0xff] %v535_v12  ;;  %664 = vst [vmem:[%s1743_s3 + $0x3e0] sm:$0xff] %v536_v14 }
 0x13d   :  { %665 = vst [vmem:[%s1743_s3 + $0x3e8] sm:$0xff] %v537_v15  ;;  %666 = vst [vmem:[%s1743_s3 + $0x3f0] sm:$0xff] %v538_v16 }
 0x13e   :  { %667 = vst [vmem:[%s1743_s3 + $0x3f8] sm:$0xff] %v539_v44 }

// kernel: _lambda_.4
= control target key start
LH: loop header
LB: loop body
LE: loop exit
PB: predicated region body
PF: predicated region fallthrough
CT: control target
= control target key end

     0   :  { %s3068_s1 = inlined_call_operand.vmem [shape: bf16[128,128], index: 1, kind: input, shape index: {}]   ;;  %s3069_s0 = inlined_call_operand.vmem [shape: bf16[1024,128], index: 0, kind: input, shape index: {}]   ;;  %s3070_s2 = inlined_call_operand.vmem [shape: f32[1024,128], index: 2, kind: output, shape index: {0}]   ;;  %s3071_s3 = inlined_call_operand.vmem [shape: f32[8,128], index: 3, kind: output, shape index: {1}]   ;;  %s3072_s4 = inlined_call_operand.vmem [shape: f32[8,128], index: 4, kind: output, shape index: {2}]  }
   0x1   :  { %v1981_v0 = vld [vmem:[%s3068_s1 + $0x38] sm:$0xff]   ;;  %v1982_v1 = vld [vmem:[%s3068_s1 + $0x30] sm:$0xff]   ;;  %v1983_v2 = vld [vmem:[%s3068_s1 + $0x28] sm:$0xff]  }
   0x2   :  { %1821 = vmatprep.subr.bf16.mxu0 %v1981_v0  ;;  %1965 = vmatprep.subr.bf16.mxu1 %v1981_v0  ;;  %v1984_v3 = vld [vmem:[%s3068_s1 + $0x20] sm:$0xff]   ;;  %v1985_v5 = vld [vmem:[%s3068_s1 + $0x18] sm:$0xff]   ;;  %v1986_v6 = vld [vmem:[%s3068_s1 + $0x10] sm:$0xff]  }
   0x3   :  { %1822 = vmatpush3.bf16.msra.mxu0 %v1981_v0  ;;  %1973 = vmatpush3.bf16.msra.mxu1 %v1981_v0  ;;  %v1989_v4 = vld [vmem:[%s3069_s0] sm:$0xff]   ;;  %v1987_v7 = vld [vmem:[%s3068_s1 + $0x8] sm:$0xff]   ;;  %v1991_v10 = vld [vmem:[%s3069_s0 + $0x10] sm:$0xff]  }
   0x4   :  { %1823 = vmatprep.subr.bf16.mxu0 %v1982_v1  ;;  %1966 = vmatprep.subr.bf16.mxu1 %v1982_v1  ;;  %v1988_v8 = vld [vmem:[%s3068_s1] sm:$0xff]   ;;  %v1990_v9 = vld [vmem:[%s3069_s0 + $0x8] sm:$0xff]   ;;  %v1992_v11 = vld [vmem:[%s3069_s0 + $0x18] sm:$0xff]  }
   0x5   :  { %1837 = vmatprep.mubr.bf16.mxu0 %v1989_v4  ;;  %v1993_v12 = vld [vmem:[%s3069_s0 + $0x20] sm:$0xff]   ;;  %v2022_v14 = vld [vmem:[%s3069_s0 + $0x108] sm:$0xff]   ;;  %v2023_v15 = vld [vmem:[%s3069_s0 + $0x110] sm:$0xff]  }
   0x6   :  { %v2021_v13 = vld [vmem:[%s3069_s0 + $0x100] sm:$0xff]   ;;  %v1994_v16 = vld [vmem:[%s3069_s0 + $0x28] sm:$0xff]   ;;  %v1995_v17 = vld [vmem:[%s3069_s0 + $0x30] sm:$0xff]  }
   0x7   :  { %1824 = vmatpush3.bf16.msra.mxu0 %v1982_v1  ;;  %1974 = vmatpush3.bf16.msra.mxu1 %v1982_v1  ;;  %v2024_v18 = vld [vmem:[%s3069_s0 + $0x118] sm:$0xff]   ;;  %v2025_v19 = vld [vmem:[%s3069_s0 + $0x120] sm:$0xff]   ;;  %v2026_v22 = vld [vmem:[%s3069_s0 + $0x128] sm:$0xff]  }
   0x8   :  { %1825 = vmatprep.subr.bf16.mxu0 %v1983_v2  ;;  %1967 = vmatprep.subr.bf16.mxu1 %v1983_v2  ;;  %v1996_v20 = vld [vmem:[%s3069_s0 + $0x38] sm:$0xff]   ;;  %v1997_v21 = vld [vmem:[%s3069_s0 + $0x40] sm:$0xff]   ;;  %v2027_v23 = vld [vmem:[%s3069_s0 + $0x130] sm:$0xff]  }
   0x9   :  { %1901 = vmatprep.mubr.bf16.mxu1 %v2021_v13  ;;  %v1998_v24 = vld [vmem:[%s3069_s0 + $0x48] sm:$0xff]   ;;  %v1999_v25 = vld [vmem:[%s3069_s0 + $0x50] sm:$0xff]   ;;  %v2028_v26 = vld [vmem:[%s3069_s0 + $0x138] sm:$0xff]  }
   0xa   :  { %v2029_v27 = vld [vmem:[%s3069_s0 + $0x140] sm:$0xff]   ;;  %v2000_v28 = vld [vmem:[%s3069_s0 + $0x58] sm:$0xff]   ;;  %v2030_v30 = vld [vmem:[%s3069_s0 + $0x148] sm:$0xff]  }
   0xb   :  { %1826 = vmatpush3.bf16.msra.mxu0 %v1983_v2  ;;  %1975 = vmatpush3.bf16.msra.mxu1 %v1983_v2  ;;  %v2001_v29 = vld [vmem:[%s3069_s0 + $0x60] sm:$0xff]   ;;  %v2031_v31 = vld [vmem:[%s3069_s0 + $0x150] sm:$0xff]   ;;  %v2002_v32 = vld [vmem:[%s3069_s0 + $0x68] sm:$0xff]  }
   0xc   :  { %1827 = vmatprep.subr.bf16.mxu0 %v1984_v3  ;;  %1968 = vmatprep.subr.bf16.mxu1 %v1984_v3  ;;  %v2003_v33 = vld [vmem:[%s3069_s0 + $0x70] sm:$0xff]   ;;  %v2032_v34 = vld [vmem:[%s3069_s0 + $0x158] sm:$0xff]   ;;  %v2033_v35 = vld [vmem:[%s3069_s0 + $0x160] sm:$0xff]  }
   0xd   :  { %v2004_v36 = vld [vmem:[%s3069_s0 + $0x78] sm:$0xff]   ;;  %v2005_v37 = vld [vmem:[%s3069_s0 + $0x80] sm:$0xff]   ;;  %v2034_v38 = vld [vmem:[%s3069_s0 + $0x168] sm:$0xff]  }
   0xe   :  { %v2035_v39 = vld [vmem:[%s3069_s0 + $0x170] sm:$0xff]   ;;  %v2006_v40 = vld [vmem:[%s3069_s0 + $0x88] sm:$0xff]   ;;  %v2036_v42 = vld [vmem:[%s3069_s0 + $0x178] sm:$0xff]  }
   0xf   :  { %1828 = vmatpush3.bf16.msra.mxu0 %v1984_v3  ;;  %1976 = vmatpush3.bf16.msra.mxu1 %v1984_v3  ;;  %v2007_v41 = vld [vmem:[%s3069_s0 + $0x90] sm:$0xff]   ;;  %v2037_v43 = vld [vmem:[%s3069_s0 + $0x180] sm:$0xff]   ;;  %v2008_v44 = vld [vmem:[%s3069_s0 + $0x98] sm:$0xff]  }
  0x10   :  { %1829 = vmatprep.subr.bf16.mxu0 %v1985_v5  ;;  %1969 = vmatprep.subr.bf16.mxu1 %v1985_v5  ;;  %v2009_v45 = vld [vmem:[%s3069_s0 + $0xa0] sm:$0xff]   ;;  %v2038_v46 = vld [vmem:[%s3069_s0 + $0x188] sm:$0xff]   ;;  %v2039_v47 = vld [vmem:[%s3069_s0 + $0x190] sm:$0xff]  }
  0x11   :  { %v2010_v48 = vld [vmem:[%s3069_s0 + $0xa8] sm:$0xff]   ;;  %v2011_v49 = vld [vmem:[%s3069_s0 + $0xb0] sm:$0xff]   ;;  %v2040_v50 = vld [vmem:[%s3069_s0 + $0x198] sm:$0xff]  }
  0x12   :  { %v2041_v51 = vld [vmem:[%s3069_s0 + $0x1a0] sm:$0xff]   ;;  %v2012_v52 = vld [vmem:[%s3069_s0 + $0xb8] sm:$0xff]   ;;  %v2042_v54 = vld [vmem:[%s3069_s0 + $0x1a8] sm:$0xff]  }
  0x13   :  { %1830 = vmatpush3.bf16.msra.mxu0 %v1985_v5  ;;  %1977 = vmatpush3.bf16.msra.mxu1 %v1985_v5  ;;  %v2013_v53 = vld [vmem:[%s3069_s0 + $0xc0] sm:$0xff]   ;;  %v2043_v55 = vld [vmem:[%s3069_s0 + $0x1b0] sm:$0xff]   ;;  %v2014_v56 = vld [vmem:[%s3069_s0 + $0xc8] sm:$0xff]  }
  0x14   :  { %1831 = vmatprep.subr.bf16.mxu0 %v1986_v6  ;;  %1970 = vmatprep.subr.bf16.mxu1 %v1986_v6  ;;  %v2015_v57 = vld [vmem:[%s3069_s0 + $0xd0] sm:$0xff]   ;;  %v2044_v58 = vld [vmem:[%s3069_s0 + $0x1b8] sm:$0xff]   ;;  %v2045_v59 = vld [vmem:[%s3069_s0 + $0x1c0] sm:$0xff]  }
  0x15   :  { %v2016_v60 = vld [vmem:[%s3069_s0 + $0xd8] sm:$0xff]   ;;  %v2017_v61 = vld [vmem:[%s3069_s0 + $0xe0] sm:$0xff]   ;;  %v2046_v62 = vld [vmem:[%s3069_s0 + $0x1c8] sm:$0xff]  }
  0x16   :  { %v2047_v63 = vld [vmem:[%s3069_s0 + $0x1d0] sm:$0xff]   ;;  %v2018_v0 = vld [vmem:[%s3069_s0 + $0xe8] sm:$0xff]   ;;  %v2048_v2 = vld [vmem:[%s3069_s0 + $0x1d8] sm:$0xff]  }
  0x17   :  { %1832 = vmatpush3.bf16.msra.mxu0 %v1986_v6  ;;  %1978 = vmatpush3.bf16.msra.mxu1 %v1986_v6  ;;  %v2019_v1 = vld [vmem:[%s3069_s0 + $0xf0] sm:$0xff]   ;;  %v2049_v3 = vld [vmem:[%s3069_s0 + $0x1e0] sm:$0xff]   ;;  %v2020_v4 = vld [vmem:[%s3069_s0 + $0xf8] sm:$0xff]  }
  0x18   :  { %1833 = vmatprep.subr.bf16.mxu0 %v1987_v7  ;;  %1971 = vmatprep.subr.bf16.mxu1 %v1987_v7  ;;  %v2050_v5 = vld [vmem:[%s3069_s0 + $0x1e8] sm:$0xff]   ;;  %v2051_v6 = vld [vmem:[%s3069_s0 + $0x1f0] sm:$0xff]  }
  0x1b   :  { %1834 = vmatpush3.bf16.msra.mxu0 %v1987_v7  ;;  %1979 = vmatpush3.bf16.msra.mxu1 %v1987_v7  ;;  %v2052_v7 = vld [vmem:[%s3069_s0 + $0x1f8] sm:$0xff]  }
  0x1c   :  { %1835 = vmatprep.subr.bf16.mxu0 %v1988_v8  ;;  %1972 = vmatprep.subr.bf16.mxu1 %v1988_v8 }
  0x1f   :  { %1836 = vmatpush3.bf16.msra.mxu0 %v1988_v8  ;;  %1980 = vmatpush3.bf16.msra.mxu1 %v1988_v8 }
  0x22   :  { %1838 = vmatmul.mubr.bf16.vlgmr.msra.gmra.mxu0 %v1990_v9  ;;  %1902 = vmatmul.mubr.bf16.vlgmr.msra.gmra.mxu1 %v2022_v14 }
  0x23   :  { %1841 = vmatprep.mubr.bf16.mxu0 %v1991_v10  ;;  %1905 = vmatprep.mubr.bf16.mxu1 %v2023_v15 }
  0x2a   :  { %1842 = vmatmul.mubr.bf16.gmra.mxu0 %v1992_v11  ;;  %1906 = vmatmul.mubr.bf16.gmra.mxu1 %v2024_v18 }
  0x2b   :  { %1845 = vmatprep.mubr.bf16.mxu0 %v1993_v12  ;;  %1909 = vmatprep.mubr.bf16.mxu1 %v2025_v19 }
  0x32   :  { %1846 = vmatmul.mubr.bf16.gmra.mxu0 %v1994_v16  ;;  %1910 = vmatmul.mubr.bf16.gmra.mxu1 %v2026_v22 }
  0x33   :  { %1849 = vmatprep.mubr.bf16.mxu0 %v1995_v17  ;;  %1913 = vmatprep.mubr.bf16.mxu1 %v2027_v23 }
  0x3a   :  { %1850 = vmatmul.mubr.bf16.gmra.mxu0 %v1996_v20  ;;  %1914 = vmatmul.mubr.bf16.gmra.mxu1 %v2028_v26 }
  0x3b   :  { %1853 = vmatprep.mubr.bf16.mxu0 %v1997_v21  ;;  %1917 = vmatprep.mubr.bf16.mxu1 %v2029_v27 }
  0x42   :  { %1854 = vmatmul.mubr.bf16.gmra.mxu0 %v1998_v24  ;;  %1918 = vmatmul.mubr.bf16.gmra.mxu1 %v2030_v30 }
  0x43   :  { %1857 = vmatprep.mubr.bf16.mxu0 %v1999_v25  ;;  %1921 = vmatprep.mubr.bf16.mxu1 %v2031_v31 }
  0x4a   :  { %1858 = vmatmul.mubr.bf16.gmra.mxu0 %v2000_v28  ;;  %1922 = vmatmul.mubr.bf16.gmra.mxu1 %v2032_v34 }
  0x4b   :  { %1861 = vmatprep.mubr.bf16.mxu0 %v2001_v29  ;;  %1925 = vmatprep.mubr.bf16.mxu1 %v2033_v35 }
  0x52   :  { %1862 = vmatmul.mubr.bf16.gmra.mxu0 %v2002_v32  ;;  %1926 = vmatmul.mubr.bf16.gmra.mxu1 %v2034_v38 }
  0x53   :  { %1865 = vmatprep.mubr.bf16.mxu0 %v2003_v33  ;;  %1929 = vmatprep.mubr.bf16.mxu1 %v2035_v39 }
  0x5a   :  { %1866 = vmatmul.mubr.bf16.gmra.mxu0 %v2004_v36  ;;  %1930 = vmatmul.mubr.bf16.gmra.mxu1 %v2036_v42 }
  0x5b   :  { %1869 = vmatprep.mubr.bf16.mxu0 %v2005_v37  ;;  %1933 = vmatprep.mubr.bf16.mxu1 %v2037_v43 }
  0x62   :  { %1870 = vmatmul.mubr.bf16.gmra.mxu0 %v2006_v40  ;;  %1934 = vmatmul.mubr.bf16.gmra.mxu1 %v2038_v46 }
  0x63   :  { %1873 = vmatprep.mubr.bf16.mxu0 %v2007_v41  ;;  %1937 = vmatprep.mubr.bf16.mxu1 %v2039_v47 }
  0x6a   :  { %1874 = vmatmul.mubr.bf16.gmra.mxu0 %v2008_v44  ;;  %1938 = vmatmul.mubr.bf16.gmra.mxu1 %v2040_v50 }
  0x6b   :  { %1877 = vmatprep.mubr.bf16.mxu0 %v2009_v45  ;;  %1941 = vmatprep.mubr.bf16.mxu1 %v2041_v51 }
  0x72   :  { %1878 = vmatmul.mubr.bf16.gmra.mxu0 %v2010_v48  ;;  %1942 = vmatmul.mubr.bf16.gmra.mxu1 %v2042_v54 }
  0x73   :  { %1881 = vmatprep.mubr.bf16.mxu0 %v2011_v49  ;;  %1945 = vmatprep.mubr.bf16.mxu1 %v2043_v55 }
  0x7a   :  { %1882 = vmatmul.mubr.bf16.gmra.mxu0 %v2012_v52  ;;  %1946 = vmatmul.mubr.bf16.gmra.mxu1 %v2044_v58 }
  0x7b   :  { %1885 = vmatprep.mubr.bf16.mxu0 %v2013_v53  ;;  %1949 = vmatprep.mubr.bf16.mxu1 %v2045_v59 }
  0x82   :  { %1886 = vmatmul.mubr.bf16.gmra.mxu0 %v2014_v56  ;;  %1950 = vmatmul.mubr.bf16.gmra.mxu1 %v2046_v62 }
  0x83   :  { %1889 = vmatprep.mubr.bf16.mxu0 %v2015_v57  ;;  %1953 = vmatprep.mubr.bf16.mxu1 %v2047_v63 }
  0x8a   :  { %1890 = vmatmul.mubr.bf16.gmra.mxu0 %v2016_v60  ;;  %1954 = vmatmul.mubr.bf16.gmra.mxu1 %v2048_v2 }
  0x8b   :  { %1893 = vmatprep.mubr.bf16.mxu0 %v2017_v61  ;;  %1957 = vmatprep.mubr.bf16.mxu1 %v2049_v3 }
  0x92   :  { %1894 = vmatmul.mubr.bf16.gmra.mxu0 %v2018_v0  ;;  %1958 = vmatmul.mubr.bf16.gmra.mxu1 %v2050_v5 }
  0x93   :  { %1897 = vmatprep.mubr.bf16.mxu0 %v2019_v1  ;;  %1961 = vmatprep.mubr.bf16.mxu1 %v2051_v6 }
  0x9a   :  { %1898 = vmatmul.mubr.bf16.gmra.mxu0 %v2020_v4  ;;  %1962 = vmatmul.mubr.bf16.gmra.mxu1 %v2052_v7 }
  0xe2   :  { %v1839_v8 = vpop.f32.mrf.mxu0  ;;  %v2309_v19 = vpop.f32.mrf.mxu1 }
  0xe3   :  { %1138 = vst [vmem:[%s3070_s2 + $0x10] sm:$0xff] %v1839_v8  ;;  %v1399_v16 = vmul.f32 %v1839_v8, %v1839_v8  ;;  %1202 = vst [vmem:[%s3070_s2 + $0x210] sm:$0xff] %v2309_v19 }
  0xe4   :  { %v625_v9 = vpop.f32.mrf.mxu0  ;;  %v2318_v24 = vpop.f32.mrf.mxu1 }
  0xe5   :  { %1136 = vst [vmem:[%s3070_s2] sm:$0xff] %v625_v9  ;;  %v1397_v12 = vmul.f32 %v625_v9, %v625_v9  ;;  %1200 = vst [vmem:[%s3070_s2 + $0x200] sm:$0xff] %v2318_v24 }
  0xe6   :  { %v1840_v10 = vpop.f32.mrf.mxu0  ;;  %v2327_v29 = vpop.f32.mrf.mxu1 }
  0xe7   :  { %1139 = vst [vmem:[%s3070_s2 + $0x18] sm:$0xff] %v1840_v10  ;;  %v1400_v21 = vmul.f32 %v1840_v10, %v1840_v10  ;;  %1203 = vst [vmem:[%s3070_s2 + $0x218] sm:$0xff] %v2327_v29 }
  0xe8   :  { %v628_v11 = vpop.f32.mrf.mxu0  ;;  %v2336_v34 = vpop.f32.mrf.mxu1 }
  0xe9   :  { %1137 = vst [vmem:[%s3070_s2 + $0x8] sm:$0xff] %v628_v11  ;;  %v1264_v13 = vadd.f32 %v628_v11, %v625_v9  ;;  %v1398_v14 = vmul.f32 %v628_v11, %v628_v11  ;;  %1201 = vst [vmem:[%s3070_s2 + $0x208] sm:$0xff] %v2336_v34 }
  0xea   :  { %v1843_v15 = vpop.f32.mrf.mxu0  ;;  %v2345_v39 = vpop.f32.mrf.mxu1 }
  0xeb   :  { %v1265_v17 = vadd.f32 %v1839_v8, %v1264_v13  ;;  %v1525_v18 = vadd.f32 %v1398_v14, %v1397_v12  ;;  %1142 = vst [vmem:[%s3070_s2 + $0x30] sm:$0xff] %v1843_v15  ;;  %v1403_v36 = vmul.f32 %v1843_v15, %v1843_v15  ;;  %1206 = vst [vmem:[%s3070_s2 + $0x230] sm:$0xff] %v2345_v39 }
  0xec   :  { %v641_v20 = vpop.f32.mrf.mxu0  ;;  %v2354_v44 = vpop.f32.mrf.mxu1 }
  0xed   :  { %v1526_v22 = vadd.f32 %v1525_v18, %v1399_v16  ;;  %1140 = vst [vmem:[%s3070_s2 + $0x20] sm:$0xff] %v641_v20  ;;  %v1266_v23 = vadd.f32 %v1840_v10, %v1265_v17  ;;  %v1401_v27 = vmul.f32 %v641_v20, %v641_v20  ;;  %1204 = vst [vmem:[%s3070_s2 + $0x220] sm:$0xff] %v2354_v44 }
  0xee   :  { %v1844_v25 = vpop.f32.mrf.mxu0  ;;  %v2363_v49 = vpop.f32.mrf.mxu1 }
  0xef   :  { %v1267_v26 = vadd.f32 %v1266_v23, %v641_v20  ;;  %v1527_v28 = vadd.f32 %v1526_v22, %v1400_v21  ;;  %1143 = vst [vmem:[%s3070_s2 + $0x38] sm:$0xff] %v1844_v25  ;;  %v1404_v41 = vmul.f32 %v1844_v25, %v1844_v25  ;;  %1207 = vst [vmem:[%s3070_s2 + $0x238] sm:$0xff] %v2363_v49 }
  0xf0   :  { %v644_v30 = vpop.f32.mrf.mxu0  ;;  %v2372_v54 = vpop.f32.mrf.mxu1 }
  0xf1   :  { %v1528_v31 = vadd.f32 %v1527_v28, %v1401_v27  ;;  %1141 = vst [vmem:[%s3070_s2 + $0x28] sm:$0xff] %v644_v30  ;;  %v1268_v32 = vadd.f32 %v1267_v26, %v644_v30  ;;  %v1402_v33 = vmul.f32 %v644_v30, %v644_v30  ;;  %1205 = vst [vmem:[%s3070_s2 + $0x228] sm:$0xff] %v2372_v54 }
  0xf2   :  { %v1847_v35 = vpop.f32.mrf.mxu0  ;;  %v2381_v59 = vpop.f32.mrf.mxu1 }
  0xf3   :  { %v1269_v37 = vadd.f32 %v1843_v15, %v1268_v32  ;;  %v1529_v38 = vadd.f32 %v1528_v31, %v1402_v33  ;;  %1146 = vst [vmem:[%s3070_s2 + $0x50] sm:$0xff] %v1847_v35  ;;  %v1407_v56 = vmul.f32 %v1847_v35, %v1847_v35  ;;  %1210 = vst [vmem:[%s3070_s2 + $0x250] sm:$0xff] %v2381_v59 }
  0xf4   :  { %v657_v40 = vpop.f32.mrf.mxu0  ;;  %v2390_v0 = vpop.f32.mrf.mxu1 }
  0xf5   :  { %v1530_v42 = vadd.f32 %v1529_v38, %v1403_v36  ;;  %1144 = vst [vmem:[%s3070_s2 + $0x40] sm:$0xff] %v657_v40  ;;  %v1270_v43 = vadd.f32 %v1844_v25, %v1269_v37  ;;  %v1405_v47 = vmul.f32 %v657_v40, %v657_v40  ;;  %1208 = vst [vmem:[%s3070_s2 + $0x240] sm:$0xff] %v2390_v0 }
  0xf6   :  { %v1848_v45 = vpop.f32.mrf.mxu0  ;;  %v2399_v5 = vpop.f32.mrf.mxu1 }
  0xf7   :  { %v1271_v46 = vadd.f32 %v1270_v43, %v657_v40  ;;  %v1531_v48 = vadd.f32 %v1530_v42, %v1404_v41  ;;  %1147 = vst [vmem:[%s3070_s2 + $0x58] sm:$0xff] %v1848_v45  ;;  %v1408_v61 = vmul.f32 %v1848_v45, %v1848_v45  ;;  %1211 = vst [vmem:[%s3070_s2 + $0x258] sm:$0xff] %v2399_v5 }
  0xf8   :  { %v660_v50 = vpop.f32.mrf.mxu0  ;;  %v2408_v10 = vpop.f32.mrf.mxu1 }
  0xf9   :  { %v1532_v51 = vadd.f32 %v1531_v48, %v1405_v47  ;;  %1145 = vst [vmem:[%s3070_s2 + $0x48] sm:$0xff] %v660_v50  ;;  %v1272_v52 = vadd.f32 %v1271_v46, %v660_v50  ;;  %v1406_v53 = vmul.f32 %v660_v50, %v660_v50  ;;  %1209 = vst [vmem:[%s3070_s2 + $0x248] sm:$0xff] %v2408_v10 }
  0xfa   :  { %v1851_v55 = vpop.f32.mrf.mxu0  ;;  %v2417_v15 = vpop.f32.mrf.mxu1 }
  0xfb   :  { %v1273_v57 = vadd.f32 %v1847_v35, %v1272_v52  ;;  %v1533_v58 = vadd.f32 %v1532_v51, %v1406_v53  ;;  %1150 = vst [vmem:[%s3070_s2 + $0x70] sm:$0xff] %v1851_v55  ;;  %v1411_v12 = vmul.f32 %v1851_v55, %v1851_v55  ;;  %1214 = vst [vmem:[%s3070_s2 + $0x270] sm:$0xff] %v2417_v15 }
  0xfc   :  { %v673_v60 = vpop.f32.mrf.mxu0  ;;  %v2426_v21 = vpop.f32.mrf.mxu1 }
  0xfd   :  { %v1534_v62 = vadd.f32 %v1533_v58, %v1407_v56  ;;  %1148 = vst [vmem:[%s3070_s2 + $0x60] sm:$0xff] %v673_v60  ;;  %v1274_v63 = vadd.f32 %v1848_v45, %v1273_v57  ;;  %v1409_v3 = vmul.f32 %v673_v60, %v673_v60  ;;  %1212 = vst [vmem:[%s3070_s2 + $0x260] sm:$0xff] %v2426_v21 }
  0xfe   :  { %v1852_v1 = vpop.f32.mrf.mxu0  ;;  %v2435_v27 = vpop.f32.mrf.mxu1 }
  0xff   :  { %v1275_v2 = vadd.f32 %v1274_v63, %v673_v60  ;;  %v1535_v4 = vadd.f32 %v1534_v62, %v1408_v61  ;;  %1151 = vst [vmem:[%s3070_s2 + $0x78] sm:$0xff] %v1852_v1  ;;  %v1412_v17 = vmul.f32 %v1852_v1, %v1852_v1  ;;  %1215 = vst [vmem:[%s3070_s2 + $0x278] sm:$0xff] %v2435_v27 }
 0x100   :  { %v676_v6 = vpop.f32.mrf.mxu0  ;;  %v2444_v33 = vpop.f32.mrf.mxu1 }
 0x101   :  { %v1536_v7 = vadd.f32 %v1535_v4, %v1409_v3  ;;  %1149 = vst [vmem:[%s3070_s2 + $0x68] sm:$0xff] %v676_v6  ;;  %v1276_v8 = vadd.f32 %v1275_v2, %v676_v6  ;;  %v1410_v9 = vmul.f32 %v676_v6, %v676_v6  ;;  %1213 = vst [vmem:[%s3070_s2 + $0x268] sm:$0xff] %v2444_v33 }
 0x102   :  { %v1855_v11 = vpop.f32.mrf.mxu0  ;;  %v2453_v40 = vpop.f32.mrf.mxu1 }
 0x103   :  { %v1277_v13 = vadd.f32 %v1851_v55, %v1276_v8  ;;  %v1537_v14 = vadd.f32 %v1536_v7, %v1410_v9  ;;  %1154 = vst [vmem:[%s3070_s2 + $0x90] sm:$0xff] %v1855_v11  ;;  %v1415_v36 = vmul.f32 %v1855_v11, %v1855_v11  ;;  %1218 = vst [vmem:[%s3070_s2 + $0x290] sm:$0xff] %v2453_v40 }
 0x104   :  { %v689_v16 = vpop.f32.mrf.mxu0  ;;  %v2462_v46 = vpop.f32.mrf.mxu1 }
 0x105   :  { %v1538_v18 = vadd.f32 %v1537_v14, %v1411_v12  ;;  %1152 = vst [vmem:[%s3070_s2 + $0x80] sm:$0xff] %v689_v16  ;;  %v1278_v20 = vadd.f32 %v1852_v1, %v1277_v13  ;;  %v1413_v25 = vmul.f32 %v689_v16, %v689_v16  ;;  %1216 = vst [vmem:[%s3070_s2 + $0x280] sm:$0xff] %v2462_v46 }
 0x106   :  { %v1856_v22 = vpop.f32.mrf.mxu0  ;;  %v2471_v52 = vpop.f32.mrf.mxu1 }
 0x107   :  { %v1279_v23 = vadd.f32 %v1278_v20, %v689_v16  ;;  %v1539_v26 = vadd.f32 %v1538_v18, %v1412_v17  ;;  %1155 = vst [vmem:[%s3070_s2 + $0x98] sm:$0xff] %v1856_v22  ;;  %v1416_v42 = vmul.f32 %v1856_v22, %v1856_v22  ;;  %1219 = vst [vmem:[%s3070_s2 + $0x298] sm:$0xff] %v2471_v52 }
 0x108   :  { %v692_v28 = vpop.f32.mrf.mxu0  ;;  %v2480_v58 = vpop.f32.mrf.mxu1 }
 0x109   :  { %v1540_v30 = vadd.f32 %v1539_v26, %v1413_v25  ;;  %1153 = vst [vmem:[%s3070_s2 + $0x88] sm:$0xff] %v692_v28  ;;  %v1280_v31 = vadd.f32 %v1279_v23, %v692_v28  ;;  %v1414_v32 = vmul.f32 %v692_v28, %v692_v28  ;;  %1217 = vst [vmem:[%s3070_s2 + $0x288] sm:$0xff] %v2480_v58 }
 0x10a   :  { %v1859_v35 = vpop.f32.mrf.mxu0  ;;  %v2489_v1 = vpop.f32.mrf.mxu1 }
 0x10b   :  { %v1281_v37 = vadd.f32 %v1855_v11, %v1280_v31  ;;  %v1541_v38 = vadd.f32 %v1540_v30, %v1414_v32  ;;  %1158 = vst [vmem:[%s3070_s2 + $0xb0] sm:$0xff] %v1859_v35  ;;  %v1419_v61 = vmul.f32 %v1859_v35, %v1859_v35  ;;  %1222 = vst [vmem:[%s3070_s2 + $0x2b0] sm:$0xff] %v2489_v1 }
 0x10c   :  { %v705_v41 = vpop.f32.mrf.mxu0  ;;  %v2498_v7 = vpop.f32.mrf.mxu1 }
 0x10d   :  { %v1542_v43 = vadd.f32 %v1541_v38, %v1415_v36  ;;  %1156 = vst [vmem:[%s3070_s2 + $0xa0] sm:$0xff] %v705_v41  ;;  %v1282_v45 = vadd.f32 %v1856_v22, %v1281_v37  ;;  %v1417_v50 = vmul.f32 %v705_v41, %v705_v41  ;;  %1220 = vst [vmem:[%s3070_s2 + $0x2a0] sm:$0xff] %v2498_v7 }
 0x10e   :  { %v1860_v47 = vpop.f32.mrf.mxu0  ;;  %v2507_v13 = vpop.f32.mrf.mxu1 }
 0x10f   :  { %v1283_v48 = vadd.f32 %v1282_v45, %v705_v41  ;;  %v1543_v51 = vadd.f32 %v1542_v43, %v1416_v42  ;;  %1159 = vst [vmem:[%s3070_s2 + $0xb8] sm:$0xff] %v1860_v47  ;;  %v1420_v3 = vmul.f32 %v1860_v47, %v1860_v47  ;;  %1223 = vst [vmem:[%s3070_s2 + $0x2b8] sm:$0xff] %v2507_v13 }
 0x110   :  { %v708_v53 = vpop.f32.mrf.mxu0  ;;  %v2516_v20 = vpop.f32.mrf.mxu1 }
 0x111   :  { %v1544_v55 = vadd.f32 %v1543_v51, %v1417_v50  ;;  %1157 = vst [vmem:[%s3070_s2 + $0xa8] sm:$0xff] %v708_v53  ;;  %v1284_v56 = vadd.f32 %v1283_v48, %v708_v53  ;;  %v1418_v57 = vmul.f32 %v708_v53, %v708_v53  ;;  %1221 = vst [vmem:[%s3070_s2 + $0x2a8] sm:$0xff] %v2516_v20 }
 0x112   :  { %v1863_v60 = vpop.f32.mrf.mxu0  ;;  %v2525_v28 = vpop.f32.mrf.mxu1 }
 0x113   :  { %v1285_v62 = vadd.f32 %v1859_v35, %v1284_v56  ;;  %v1545_v63 = vadd.f32 %v1544_v55, %v1418_v57  ;;  %1162 = vst [vmem:[%s3070_s2 + $0xd0] sm:$0xff] %v1863_v60  ;;  %v1423_v23 = vmul.f32 %v1863_v60, %v1863_v60  ;;  %1226 = vst [vmem:[%s3070_s2 + $0x2d0] sm:$0xff] %v2525_v28 }
 0x114   :  { %v721_v2 = vpop.f32.mrf.mxu0  ;;  %v2534_v36 = vpop.f32.mrf.mxu1 }
 0x115   :  { %v1546_v4 = vadd.f32 %v1545_v63, %v1419_v61  ;;  %1160 = vst [vmem:[%s3070_s2 + $0xc0] sm:$0xff] %v721_v2  ;;  %v1286_v6 = vadd.f32 %v1860_v47, %v1285_v62  ;;  %v1421_v11 = vmul.f32 %v721_v2, %v721_v2  ;;  %1224 = vst [vmem:[%s3070_s2 + $0x2c0] sm:$0xff] %v2534_v36 }
 0x116   :  { %v1864_v8 = vpop.f32.mrf.mxu0  ;;  %v2543_v43 = vpop.f32.mrf.mxu1 }
 0x117   :  { %v1287_v9 = vadd.f32 %v1286_v6, %v721_v2  ;;  %v1547_v12 = vadd.f32 %v1546_v4, %v1420_v3  ;;  %1163 = vst [vmem:[%s3070_s2 + $0xd8] sm:$0xff] %v1864_v8  ;;  %v1424_v31 = vmul.f32 %v1864_v8, %v1864_v8  ;;  %1227 = vst [vmem:[%s3070_s2 + $0x2d8] sm:$0xff] %v2543_v43 }
 0x118   :  { %v724_v14 = vpop.f32.mrf.mxu0  ;;  %v2552_v51 = vpop.f32.mrf.mxu1 }
 0x119   :  { %v1548_v16 = vadd.f32 %v1547_v12, %v1421_v11  ;;  %1161 = vst [vmem:[%s3070_s2 + $0xc8] sm:$0xff] %v724_v14  ;;  %v1288_v17 = vadd.f32 %v1287_v9, %v724_v14  ;;  %v1422_v18 = vmul.f32 %v724_v14, %v724_v14  ;;  %1225 = vst [vmem:[%s3070_s2 + $0x2c8] sm:$0xff] %v2552_v51 }
 0x11a   :  { %v1867_v22 = vpop.f32.mrf.mxu0 }
 0x11b   :  { %v1289_v25 = vadd.f32 %v1863_v60, %v1288_v17  ;;  %v1549_v26 = vadd.f32 %v1548_v16, %v1422_v18  ;;  %1166 = vst [vmem:[%s3070_s2 + $0xf0] sm:$0xff] %v1867_v22  ;;  %v1427_v55 = vmul.f32 %v1867_v22, %v1867_v22  ;;  %v2561_v60 = vpop.f32.mrf.mxu1 }
 0x11c   :  { %v737_v30 = vpop.f32.mrf.mxu0  ;;  %1230 = vst [vmem:[%s3070_s2 + $0x2f0] sm:$0xff] %v2561_v60 }
 0x11d   :  { %v1550_v32 = vadd.f32 %v1549_v26, %v1423_v23  ;;  %1164 = vst [vmem:[%s3070_s2 + $0xe0] sm:$0xff] %v737_v30  ;;  %v1290_v35 = vadd.f32 %v1864_v8, %v1289_v25  ;;  %v1425_v41 = vmul.f32 %v737_v30, %v737_v30  ;;  %v2570_v3 = vpop.f32.mrf.mxu1 }
 0x11e   :  { %v1868_v37 = vpop.f32.mrf.mxu0  ;;  %1228 = vst [vmem:[%s3070_s2 + $0x2e0] sm:$0xff] %v2570_v3 }
 0x11f   :  { %v1291_v38 = vadd.f32 %v1290_v35, %v737_v30  ;;  %v1551_v42 = vadd.f32 %v1550_v32, %v1424_v31  ;;  %1167 = vst [vmem:[%s3070_s2 + $0xf8] sm:$0xff] %v1868_v37  ;;  %v1428_v62 = vmul.f32 %v1868_v37, %v1868_v37  ;;  %v2579_v11 = vpop.f32.mrf.mxu1 }
 0x120   :  { %v740_v45 = vpop.f32.mrf.mxu0  ;;  %1231 = vst [vmem:[%s3070_s2 + $0x2f8] sm:$0xff] %v2579_v11 }
 0x121   :  { %v1552_v47 = vadd.f32 %v1551_v42, %v1425_v41  ;;  %1165 = vst [vmem:[%s3070_s2 + $0xe8] sm:$0xff] %v740_v45  ;;  %v1292_v48 = vadd.f32 %v1291_v38, %v740_v45  ;;  %v1426_v50 = vmul.f32 %v740_v45, %v740_v45  ;;  %v2588_v18 = vpop.f32.mrf.mxu1 }
 0x122   :  { %v1871_v53 = vpop.f32.mrf.mxu0  ;;  %1229 = vst [vmem:[%s3070_s2 + $0x2e8] sm:$0xff] %v2588_v18 }
 0x123   :  { %v1293_v56 = vadd.f32 %v1867_v22, %v1292_v48  ;;  %v1553_v57 = vadd.f32 %v1552_v47, %v1426_v50  ;;  %1170 = vst [vmem:[%s3070_s2 + $0x110] sm:$0xff] %v1871_v53  ;;  %v1431_v23 = vmul.f32 %v1871_v53, %v1871_v53  ;;  %v2597_v30 = vpop.f32.mrf.mxu1 }
 0x124   :  { %v753_v61 = vpop.f32.mrf.mxu0  ;;  %1234 = vst [vmem:[%s3070_s2 + $0x310] sm:$0xff] %v2597_v30 }
 0x125   :  { %v1554_v63 = vadd.f32 %v1553_v57, %v1427_v55  ;;  %1168 = vst [vmem:[%s3070_s2 + $0x100] sm:$0xff] %v753_v61  ;;  %v1294_v2 = vadd.f32 %v1868_v37, %v1293_v56  ;;  %v1429_v8 = vmul.f32 %v753_v61, %v753_v61  ;;  %v2606_v38 = vpop.f32.mrf.mxu1 }
 0x126   :  { %v1872_v4 = vpop.f32.mrf.mxu0  ;;  %1232 = vst [vmem:[%s3070_s2 + $0x300] sm:$0xff] %v2606_v38 }
 0x127   :  { %v1295_v6 = vadd.f32 %v1294_v2, %v753_v61  ;;  %v1555_v9 = vadd.f32 %v1554_v63, %v1428_v62  ;;  %1171 = vst [vmem:[%s3070_s2 + $0x118] sm:$0xff] %v1872_v4  ;;  %v1432_v32 = vmul.f32 %v1872_v4, %v1872_v4  ;;  %v2615_v48 = vpop.f32.mrf.mxu1 }
 0x128   :  { %v756_v12 = vpop.f32.mrf.mxu0  ;;  %1235 = vst [vmem:[%s3070_s2 + $0x318] sm:$0xff] %v2615_v48 }
 0x129   :  { %v1556_v14 = vadd.f32 %v1555_v9, %v1429_v8  ;;  %1169 = vst [vmem:[%s3070_s2 + $0x108] sm:$0xff] %v756_v12  ;;  %v1296_v16 = vadd.f32 %v1295_v6, %v756_v12  ;;  %v1430_v17 = vmul.f32 %v756_v12, %v756_v12  ;;  %v2624_v57 = vpop.f32.mrf.mxu1 }
 0x12a   :  { %v1875_v22 = vpop.f32.mrf.mxu0  ;;  %1233 = vst [vmem:[%s3070_s2 + $0x308] sm:$0xff] %v2624_v57 }
 0x12b   :  { %v1297_v25 = vadd.f32 %v1871_v53, %v1296_v16  ;;  %v1557_v26 = vadd.f32 %v1556_v14, %v1430_v17  ;;  %1174 = vst [vmem:[%s3070_s2 + $0x130] sm:$0xff] %v1875_v22  ;;  %v1435_v62 = vmul.f32 %v1875_v22, %v1875_v22 }
 0x12c   :  { %v769_v31 = vpop.f32.mrf.mxu0 }
 0x12d   :  { %v1558_v35 = vadd.f32 %v1557_v26, %v1431_v23  ;;  %1172 = vst [vmem:[%s3070_s2 + $0x120] sm:$0xff] %v769_v31  ;;  %v1298_v37 = vadd.f32 %v1872_v4, %v1297_v25  ;;  %v1433_v45 = vmul.f32 %v769_v31, %v769_v31  ;;  %v2633_v4 = vpop.f32.mrf.mxu1 }
 0x12e   :  { %v1876_v41 = vpop.f32.mrf.mxu0  ;;  %1238 = vst [vmem:[%s3070_s2 + $0x330] sm:$0xff] %v2633_v4 }
 0x12f   :  { %v1299_v42 = vadd.f32 %v1298_v37, %v769_v31  ;;  %v1559_v47 = vadd.f32 %v1558_v35, %v1432_v32  ;;  %1175 = vst [vmem:[%s3070_s2 + $0x138] sm:$0xff] %v1876_v41  ;;  %v1436_v8 = vmul.f32 %v1876_v41, %v1876_v41  ;;  %v2642_v14 = vpop.f32.mrf.mxu1 }
 0x130   :  { %v772_v50 = vpop.f32.mrf.mxu0  ;;  %1236 = vst [vmem:[%s3070_s2 + $0x320] sm:$0xff] %v2642_v14 }
 0x131   :  { %v1560_v53 = vadd.f32 %v1559_v47, %v1433_v45  ;;  %1173 = vst [vmem:[%s3070_s2 + $0x128] sm:$0xff] %v772_v50  ;;  %v1300_v55 = vadd.f32 %v1299_v42, %v772_v50  ;;  %v1434_v56 = vmul.f32 %v772_v50, %v772_v50  ;;  %v2651_v25 = vpop.f32.mrf.mxu1 }
 0x132   :  { %v1879_v61 = vpop.f32.mrf.mxu0  ;;  %1239 = vst [vmem:[%s3070_s2 + $0x338] sm:$0xff] %v2651_v25 }
 0x133   :  { %v1301_v63 = vadd.f32 %v1875_v22, %v1300_v55  ;;  %v1561_v2 = vadd.f32 %v1560_v53, %v1434_v56  ;;  %1178 = vst [vmem:[%s3070_s2 + $0x150] sm:$0xff] %v1879_v61  ;;  %v2660_v37 = vpop.f32.mrf.mxu1  ;;  %v1439_v42 = vmul.f32 %v1879_v61, %v1879_v61 }
 0x134   :  { %v785_v6 = vpop.f32.mrf.mxu0  ;;  %1237 = vst [vmem:[%s3070_s2 + $0x328] sm:$0xff] %v2660_v37 }
 0x135   :  { %v1562_v9 = vadd.f32 %v1561_v2, %v1435_v62  ;;  %1176 = vst [vmem:[%s3070_s2 + $0x140] sm:$0xff] %v785_v6  ;;  %v1302_v12 = vadd.f32 %v1876_v41, %v1301_v63  ;;  %v1437_v22 = vmul.f32 %v785_v6, %v785_v6  ;;  %v2669_v50 = vpop.f32.mrf.mxu1 }
 0x136   :  { %v1880_v16 = vpop.f32.mrf.mxu0  ;;  %1242 = vst [vmem:[%s3070_s2 + $0x350] sm:$0xff] %v2669_v50 }
 0x137   :  { %v1303_v17 = vadd.f32 %v1302_v12, %v785_v6  ;;  %v1563_v23 = vadd.f32 %v1562_v9, %v1436_v8  ;;  %1179 = vst [vmem:[%s3070_s2 + $0x158] sm:$0xff] %v1880_v16  ;;  %v1440_v55 = vmul.f32 %v1880_v16, %v1880_v16  ;;  %v2678_v62 = vpop.f32.mrf.mxu1 }
 0x138   :  { %v788_v26 = vpop.f32.mrf.mxu0  ;;  %1240 = vst [vmem:[%s3070_s2 + $0x340] sm:$0xff] %v2678_v62 }
 0x139   :  { %v1564_v31 = vadd.f32 %v1563_v23, %v1437_v22  ;;  %1177 = vst [vmem:[%s3070_s2 + $0x148] sm:$0xff] %v788_v26  ;;  %v1304_v32 = vadd.f32 %v1303_v17, %v788_v26  ;;  %v1438_v35 = vmul.f32 %v788_v26, %v788_v26  ;;  %v2687_v9 = vpop.f32.mrf.mxu1 }
 0x13a   :  { %v1883_v41 = vpop.f32.mrf.mxu0  ;;  %1243 = vst [vmem:[%s3070_s2 + $0x358] sm:$0xff] %v2687_v9 }
 0x13b   :  { %v1305_v45 = vadd.f32 %v1879_v61, %v1304_v32  ;;  %v1565_v47 = vadd.f32 %v1564_v31, %v1438_v35  ;;  %1182 = vst [vmem:[%s3070_s2 + $0x170] sm:$0xff] %v1883_v41  ;;  %v2696_v23 = vpop.f32.mrf.mxu1  ;;  %v1443_v31 = vmul.f32 %v1883_v41, %v1883_v41 }
 0x13c   :  { %v801_v53 = vpop.f32.mrf.mxu0  ;;  %1241 = vst [vmem:[%s3070_s2 + $0x348] sm:$0xff] %v2696_v23 }
 0x13d   :  { %v1566_v56 = vadd.f32 %v1565_v47, %v1439_v42  ;;  %1180 = vst [vmem:[%s3070_s2 + $0x160] sm:$0xff] %v801_v53  ;;  %v1306_v61 = vadd.f32 %v1880_v16, %v1305_v45  ;;  %v1441_v6 = vmul.f32 %v801_v53, %v801_v53  ;;  %v2705_v42 = vpop.f32.mrf.mxu1 }
 0x13e   :  { %v1884_v63 = vpop.f32.mrf.mxu0  ;;  %1246 = vst [vmem:[%s3070_s2 + $0x370] sm:$0xff] %v2705_v42 }
 0x13f   :  { %v1307_v2 = vadd.f32 %v1306_v61, %v801_v53  ;;  %v1567_v8 = vadd.f32 %v1566_v56, %v1440_v55  ;;  %1183 = vst [vmem:[%s3070_s2 + $0x178] sm:$0xff] %v1884_v63  ;;  %v1444_v47 = vmul.f32 %v1884_v63, %v1884_v63  ;;  %v2714_v55 = vpop.f32.mrf.mxu1 }
 0x140   :  { %v804_v12 = vpop.f32.mrf.mxu0  ;;  %1244 = vst [vmem:[%s3070_s2 + $0x360] sm:$0xff] %v2714_v55 }
 0x141   :  { %v1568_v16 = vadd.f32 %v1567_v8, %v1441_v6  ;;  %1181 = vst [vmem:[%s3070_s2 + $0x168] sm:$0xff] %v804_v12  ;;  %v1308_v17 = vadd.f32 %v1307_v2, %v804_v12  ;;  %v1442_v22 = vmul.f32 %v804_v12, %v804_v12  ;;  %v2723_v8 = vpop.f32.mrf.mxu1 }
 0x142   :  { %v1887_v26 = vpop.f32.mrf.mxu0  ;;  %1247 = vst [vmem:[%s3070_s2 + $0x378] sm:$0xff] %v2723_v8 }
 0x143   :  { %v1309_v32 = vadd.f32 %v1883_v41, %v1308_v17  ;;  %v1569_v35 = vadd.f32 %v1568_v16, %v1442_v22  ;;  %1186 = vst [vmem:[%s3070_s2 + $0x190] sm:$0xff] %v1887_v26  ;;  %v2732_v22 = vpop.f32.mrf.mxu1 }
 0x144   :  { %v817_v45 = vpop.f32.mrf.mxu0  ;;  %1245 = vst [vmem:[%s3070_s2 + $0x368] sm:$0xff] %v2732_v22 }
 0x145   :  { %v1570_v53 = vadd.f32 %v1569_v35, %v1443_v31  ;;  %1184 = vst [vmem:[%s3070_s2 + $0x180] sm:$0xff] %v817_v45  ;;  %v1310_v41 = vadd.f32 %v1884_v63, %v1309_v32  ;;  %v1445_v2 = vmul.f32 %v817_v45, %v817_v45  ;;  %v1447_v32 = vmul.f32 %v1887_v26, %v1887_v26 }
 0x146   :  { %v1888_v56 = vpop.f32.mrf.mxu0 }
 0x147   :  { %v1311_v61 = vadd.f32 %v1310_v41, %v817_v45  ;;  %v1571_v6 = vadd.f32 %v1570_v53, %v1444_v47  ;;  %1187 = vst [vmem:[%s3070_s2 + $0x198] sm:$0xff] %v1888_v56  ;;  %v2741_v47 = vpop.f32.mrf.mxu1  ;;  %v1448_v41 = vmul.f32 %v1888_v56, %v1888_v56 }
 0x148   :  { %v820_v12 = vpop.f32.mrf.mxu0  ;;  %3099 = vst [vmem:[#allocation2_spill] sm:$0xff] %v2741_v47  ;;  %1250 = vst [vmem:[%s3070_s2 + $0x390] sm:$0xff] %v2741_v47 }
 0x149   :  { %v1572_v63 = vadd.f32 %v1571_v6, %v1445_v2  ;;  %1185 = vst [vmem:[%s3070_s2 + $0x188] sm:$0xff] %v820_v12  ;;  %v1312_v16 = vadd.f32 %v1311_v61, %v820_v12  ;;  %v1446_v17 = vmul.f32 %v820_v12, %v820_v12  ;;  %v2750_v2 = vpop.f32.mrf.mxu1 }
 0x14a   :  { %v1891_v31 = vpop.f32.mrf.mxu0  ;;  %1248 = vst [vmem:[%s3070_s2 + $0x380] sm:$0xff] %v2750_v2 }
 0x14b   :  { %v1313_v35 = vadd.f32 %v1887_v26, %v1312_v16  ;;  %v1573_v45 = vadd.f32 %v1572_v63, %v1446_v17  ;;  %1190 = vst [vmem:[%s3070_s2 + $0x1b0] sm:$0xff] %v1891_v31  ;;  %v2759_v17 = vpop.f32.mrf.mxu1 }
 0x14c   :  { %v833_v53 = vpop.f32.mrf.mxu0  ;;  %3100 = vst [vmem:[#allocation3_spill] sm:$0xff] %v2759_v17  ;;  %1251 = vst [vmem:[%s3070_s2 + $0x398] sm:$0xff] %v2759_v17 }
 0x14d   :  { %v1574_v61 = vadd.f32 %v1573_v45, %v1447_v32  ;;  %1188 = vst [vmem:[%s3070_s2 + $0x1a0] sm:$0xff] %v833_v53  ;;  %v1314_v26 = vadd.f32 %v1888_v56, %v1313_v35  ;;  %v1449_v63 = vmul.f32 %v833_v53, %v833_v53 }
 0x14e   :  { %v1892_v6 = vpop.f32.mrf.mxu0 }
 0x14f   :  { %v1315_v12 = vadd.f32 %v1314_v26, %v833_v53  ;;  %v1575_v16 = vadd.f32 %v1574_v61, %v1448_v41  ;;  %1191 = vst [vmem:[%s3070_s2 + $0x1b8] sm:$0xff] %v1892_v6  ;;  %v2768_v53 = vpop.f32.mrf.mxu1  ;;  %v1451_v61 = vmul.f32 %v1891_v31, %v1891_v31 }
 0x150   :  { %v836_v32 = vpop.f32.mrf.mxu0  ;;  %3101 = vst [vmem:[#allocation4_spill] sm:$0xff] %v2768_v53  ;;  %1249 = vst [vmem:[%s3070_s2 + $0x388] sm:$0xff] %v2768_v53 }
 0x151   :  { %v1576_v56 = vadd.f32 %v1575_v16, %v1449_v63  ;;  %1189 = vst [vmem:[%s3070_s2 + $0x1a8] sm:$0xff] %v836_v32  ;;  %v1316_v35 = vadd.f32 %v1315_v12, %v836_v32  ;;  %v1450_v45 = vmul.f32 %v836_v32, %v836_v32  ;;  %v2777_v63 = vpop.f32.mrf.mxu1  ;;  %v1452_v12 = vmul.f32 %v1892_v6, %v1892_v6 }
 0x152   :  { %v1895_v41 = vpop.f32.mrf.mxu0  ;;  %3102 = vst [vmem:[#allocation5_spill] sm:$0xff] %v2777_v63  ;;  %1254 = vst [vmem:[%s3070_s2 + $0x3b0] sm:$0xff] %v2777_v63 }
 0x153   :  { %v1317_v26 = vadd.f32 %v1891_v31, %v1316_v35  ;;  %v1577_v47 = vadd.f32 %v1576_v56, %v1450_v45  ;;  %1194 = vst [vmem:[%s3070_s2 + $0x1d0] sm:$0xff] %v1895_v41  ;;  %v2786_v56 = vpop.f32.mrf.mxu1 }
 0x154   :  { %v849_v16 = vpop.f32.mrf.mxu0  ;;  %3103 = vst [vmem:[#allocation6_spill] sm:$0xff] %v2786_v56  ;;  %1252 = vst [vmem:[%s3070_s2 + $0x3a0] sm:$0xff] %v2786_v56 }
 0x155   :  { %v1578_v32 = vadd.f32 %v1577_v47, %v1451_v61  ;;  %1192 = vst [vmem:[%s3070_s2 + $0x1c0] sm:$0xff] %v849_v16  ;;  %v1318_v31 = vadd.f32 %v1892_v6, %v1317_v26  ;;  %v1453_v17 = vmul.f32 %v849_v16, %v849_v16  ;;  %v2795_v47 = vpop.f32.mrf.mxu1 }
 0x156   :  { %v1896_v35 = vpop.f32.mrf.mxu0  ;;  %3104 = vst [vmem:[#allocation7_spill] sm:$0xff] %v2795_v47  ;;  %1255 = vst [vmem:[%s3070_s2 + $0x3b8] sm:$0xff] %v2795_v47 }
 0x157   :  { %v1319_v45 = vadd.f32 %v1318_v31, %v849_v16  ;;  %v1579_v53 = vadd.f32 %v1578_v32, %v1452_v12  ;;  %1195 = vst [vmem:[%s3070_s2 + $0x1d8] sm:$0xff] %v1896_v35  ;;  %v2804_v12 = vpop.f32.mrf.mxu1  ;;  %v1455_v31 = vmul.f32 %v1895_v41, %v1895_v41 }
 0x158   :  { %v852_v61 = vpop.f32.mrf.mxu0  ;;  %3105 = vst [vmem:[#allocation8_spill] sm:$0xff] %v2804_v12  ;;  %1253 = vst [vmem:[%s3070_s2 + $0x3a8] sm:$0xff] %v2804_v12 }
 0x159   :  { %v1580_v6 = vadd.f32 %v1579_v53, %v1453_v17  ;;  %1193 = vst [vmem:[%s3070_s2 + $0x1c8] sm:$0xff] %v852_v61  ;;  %v1320_v26 = vadd.f32 %v1319_v45, %v852_v61  ;;  %v1454_v16 = vmul.f32 %v852_v61, %v852_v61  ;;  %v2813_v17 = vpop.f32.mrf.mxu1  ;;  %v1456_v45 = vmul.f32 %v1896_v35, %v1896_v35 }
 0x15a   :  { %v1899_v32 = vpop.f32.mrf.mxu0  ;;  %3106 = vst [vmem:[#allocation9_spill] sm:$0xff] %v2813_v17  ;;  %1258 = vst [vmem:[%s3070_s2 + $0x3d0] sm:$0xff] %v2813_v17 }
 0x15b   :  { %v1321_v63 = vadd.f32 %v1895_v41, %v1320_v26  ;;  %v1581_v56 = vadd.f32 %v1580_v6, %v1454_v16  ;;  %1198 = vst [vmem:[%s3070_s2 + $0x1f0] sm:$0xff] %v1899_v32  ;;  %v2822_v6 = vpop.f32.mrf.mxu1 }
 0x15c   :  { %v865_v53 = vpop.f32.mrf.mxu0  ;;  %3107 = vst [vmem:[#allocation10_spill] sm:$0xff] %v2822_v6  ;;  %1256 = vst [vmem:[%s3070_s2 + $0x3c0] sm:$0xff] %v2822_v6 }
 0x15d   :  { %v1582_v61 = vadd.f32 %v1581_v56, %v1455_v31  ;;  %1196 = vst [vmem:[%s3070_s2 + $0x1e0] sm:$0xff] %v865_v53  ;;  %v1322_v41 = vadd.f32 %v1896_v35, %v1321_v63  ;;  %v1457_v47 = vmul.f32 %v865_v53, %v865_v53  ;;  %v2831_v56 = vpop.f32.mrf.mxu1 }
 0x15e   :  { %v1900_v26 = vpop.f32.mrf.mxu0  ;;  %1259 = vst [vmem:[%s3070_s2 + $0x3d8] sm:$0xff] %v2831_v56 }
 0x15f   :  { %v1323_v16 = vadd.f32 %v1322_v41, %v865_v53  ;;  %v1583_v12 = vadd.f32 %v1582_v61, %v1456_v45  ;;  %1199 = vst [vmem:[%s3070_s2 + $0x1f8] sm:$0xff] %v1900_v26  ;;  %v2840_v45 = vpop.f32.mrf.mxu1  ;;  %v1459_v61 = vmul.f32 %v1899_v32, %v1899_v32 }
 0x160   :  { %v868_v31 = vpop.f32.mrf.mxu0  ;;  %1257 = vst [vmem:[%s3070_s2 + $0x3c8] sm:$0xff] %v2840_v45 }
 0x161   :  { %v1584_v63 = vadd.f32 %v1583_v12, %v1457_v47  ;;  %1197 = vst [vmem:[%s3070_s2 + $0x1e8] sm:$0xff] %v868_v31  ;;  %v1324_v35 = vadd.f32 %v1323_v16, %v868_v31  ;;  %v1458_v53 = vmul.f32 %v868_v31, %v868_v31  ;;  %v2846_v6 = vpop.f32.mrf.mxu1  ;;  %v1460_v47 = vmul.f32 %v1900_v26, %v1900_v26 }
 0x162   :  { %3108 = vst [vmem:[#allocation11_spill] sm:$0xff] %v2846_v6  ;;  %1262 = vst [vmem:[%s3070_s2 + $0x3f0] sm:$0xff] %v2846_v6 }
 0x163   :  { %v1325_v41 = vadd.f32 %v1899_v32, %v1324_v35  ;;  %v1585_v17 = vadd.f32 %v1584_v63, %v1458_v53  ;;  %v2852_v31 = vpop.f32.mrf.mxu1  ;;  %v1461_v32 = vmul.f32 %v2318_v24, %v2318_v24 }
 0x164   :  { %3109 = vst [vmem:[#allocation12_spill] sm:$0xff] %v2852_v31  ;;  %1260 = vst [vmem:[%s3070_s2 + $0x3e0] sm:$0xff] %v2852_v31  ;;  %v1466_v31 = vmul.f32 %v2372_v54, %v2372_v54 }
 0x165   :  { %v1326_v12 = vadd.f32 %v1900_v26, %v1325_v41  ;;  %v1586_v16 = vadd.f32 %v1585_v17, %v1459_v61  ;;  %v2861_v53 = vpop.f32.mrf.mxu1  ;;  %v1462_v61 = vmul.f32 %v2336_v34, %v2336_v34 }
 0x166   :  { %3110 = vst [vmem:[#allocation13_spill] sm:$0xff] %v2861_v53  ;;  %1263 = vst [vmem:[%s3070_s2 + $0x3f8] sm:$0xff] %v2861_v53 }
 0x167   :  { %v1327_v63 = vadd.f32 %v1326_v12, %v2318_v24  ;;  %v1587_v35 = vadd.f32 %v1586_v16, %v1460_v47  ;;  %v2870_v41 = vpop.f32.mrf.mxu1  ;;  %v1463_v24 = vmul.f32 %v2309_v19, %v2309_v19  ;;  %v1464_v16 = vmul.f32 %v2327_v29, %v2327_v29 }
 0x168   :  { %3111 = vst [vmem:[#allocation14_spill] sm:$0xff] %v2870_v41  ;;  %1261 = vst [vmem:[%s3070_s2 + $0x3e8] sm:$0xff] %v2870_v41 }
 0x169   :  { %v1588_v17 = vadd.f32 %v1587_v35, %v1461_v32  ;;  %v1328_v26 = vadd.f32 %v1327_v63, %v2336_v34  ;;  %v1465_v35 = vmul.f32 %v2354_v44, %v2354_v44 }
 0x16b   :  { %v1329_v47 = vadd.f32 %v2309_v19, %v1328_v26  ;;  %v1589_v12 = vadd.f32 %v1588_v17, %v1462_v61  ;;  %v1467_v19 = vmul.f32 %v2345_v39, %v2345_v39 }
 0x16d   :  { %v1590_v32 = vadd.f32 %v1589_v12, %v1463_v24  ;;  %v1330_v63 = vadd.f32 %v2327_v29, %v1329_v47  ;;  %v1468_v29 = vmul.f32 %v2363_v49, %v2363_v49 }
 0x16f   :  { %v1331_v34 = vadd.f32 %v1330_v63, %v2354_v44  ;;  %v1591_v53 = vadd.f32 %v1590_v32, %v1464_v16  ;;  %v1470_v16 = vmul.f32 %v2408_v10, %v2408_v10  ;;  %v1473_v63 = vmul.f32 %v2426_v21, %v2426_v21 }
 0x171   :  { %v1592_v6 = vadd.f32 %v1591_v53, %v1465_v35  ;;  %v1332_v41 = vadd.f32 %v1331_v34, %v2372_v54  ;;  %v1469_v53 = vmul.f32 %v2390_v0, %v2390_v0 }
 0x173   :  { %v1333_v17 = vadd.f32 %v2345_v39, %v1332_v41  ;;  %v1593_v26 = vadd.f32 %v1592_v6, %v1466_v31  ;;  %v1471_v39 = vmul.f32 %v2381_v59, %v2381_v59 }
 0x175   :  { %v1594_v61 = vadd.f32 %v1593_v26, %v1467_v19  ;;  %v1334_v24 = vadd.f32 %v2363_v49, %v1333_v17  ;;  %v1472_v49 = vmul.f32 %v2399_v5, %v2399_v5  ;;  %v1474_v19 = vmul.f32 %v2444_v33, %v2444_v33 }
 0x177   :  { %v1335_v44 = vadd.f32 %v1334_v24, %v2390_v0  ;;  %v1595_v47 = vadd.f32 %v1594_v61, %v1468_v29  ;;  %v1477_v24 = vmul.f32 %v2462_v46, %v2462_v46 }
 0x179   :  { %v1596_v12 = vadd.f32 %v1595_v47, %v1469_v53  ;;  %v1336_v54 = vadd.f32 %v1335_v44, %v2408_v10  ;;  %v1478_v47 = vmul.f32 %v2480_v58, %v2480_v58 }
 0x17b   :  { %v1337_v6 = vadd.f32 %v2381_v59, %v1336_v54  ;;  %v1597_v31 = vadd.f32 %v1596_v12, %v1470_v16  ;;  %v1475_v59 = vmul.f32 %v2417_v15, %v2417_v15 }
 0x17d   :  { %v1598_v41 = vadd.f32 %v1597_v31, %v1471_v39  ;;  %v1338_v32 = vadd.f32 %v2399_v5, %v1337_v6  ;;  %v1476_v5 = vmul.f32 %v2435_v27, %v2435_v27  ;;  %v1481_v6 = vmul.f32 %v2498_v7, %v2498_v7 }
 0x17f   :  { %v1339_v0 = vadd.f32 %v1338_v32, %v2426_v21  ;;  %v1599_v34 = vadd.f32 %v1598_v41, %v1472_v49  ;;  %v1482_v41 = vmul.f32 %v2516_v20, %v2516_v20 }
 0x181   :  { %v1600_v35 = vadd.f32 %v1599_v34, %v1473_v63  ;;  %v1340_v10 = vadd.f32 %v1339_v0, %v2444_v33 }
 0x183   :  { %v1341_v17 = vadd.f32 %v2417_v15, %v1340_v10  ;;  %v1601_v26 = vadd.f32 %v1600_v35, %v1474_v19  ;;  %v1479_v15 = vmul.f32 %v2453_v40, %v2453_v40  ;;  %v1485_v35 = vmul.f32 %v2534_v36, %v2534_v36 }
 0x185   :  { %v1602_v29 = vadd.f32 %v1601_v26, %v1475_v59  ;;  %v1342_v61 = vadd.f32 %v2435_v27, %v1341_v17  ;;  %v1480_v27 = vmul.f32 %v2471_v52, %v2471_v52  ;;  %v1486_v59 = vmul.f32 %v2552_v51, %v2552_v51 }
 0x187   :  { %v1343_v21 = vadd.f32 %v1342_v61, %v2462_v46  ;;  %v1603_v44 = vadd.f32 %v1602_v29, %v1476_v5  ;;  %v1489_v61 = vmul.f32 %v2570_v3, %v2570_v3 }
 0x189   :  { %v1604_v53 = vadd.f32 %v1603_v44, %v1477_v24  ;;  %v1344_v33 = vadd.f32 %v1343_v21, %v2480_v58  ;;  %v1490_v44 = vmul.f32 %v2588_v18, %v2588_v18 }
 0x18b   :  { %v1345_v12 = vadd.f32 %v2453_v40, %v1344_v33  ;;  %v1605_v54 = vadd.f32 %v1604_v53, %v1478_v47  ;;  %v1483_v40 = vmul.f32 %v2489_v1, %v2489_v1 }
 0x18d   :  { %v1606_v16 = vadd.f32 %v1605_v54, %v1479_v15  ;;  %v1346_v39 = vadd.f32 %v2471_v52, %v1345_v12  ;;  %v1484_v52 = vmul.f32 %v2507_v13, %v2507_v13  ;;  %v1493_v12 = vmul.f32 %v2606_v38, %v2606_v38 }
 0x18f   :  { %v1347_v46 = vadd.f32 %v1346_v39, %v2498_v7  ;;  %v1607_v31 = vadd.f32 %v1606_v16, %v1480_v27  ;;  %v1494_v16 = vmul.f32 %v2624_v57, %v2624_v57 }
 0x191   :  { %v1608_v49 = vadd.f32 %v1607_v31, %v1481_v6  ;;  %v1348_v58 = vadd.f32 %v1347_v46, %v2516_v20 }
 0x193   :  { %v1349_v32 = vadd.f32 %v2489_v1, %v1348_v58  ;;  %v1609_v0 = vadd.f32 %v1608_v49, %v1482_v41  ;;  %v1487_v1 = vmul.f32 %v2525_v28, %v2525_v28  ;;  %v1497_v49 = vmul.f32 %v2642_v14, %v2642_v14 }
 0x195   :  { %v1610_v63 = vadd.f32 %v1609_v0, %v1483_v40  ;;  %v1350_v34 = vadd.f32 %v2507_v13, %v1349_v32  ;;  %v1488_v13 = vmul.f32 %v2543_v43, %v2543_v43  ;;  %v1498_v40 = vmul.f32 %v2660_v37, %v2660_v37 }
 0x197   :  { %v1351_v7 = vadd.f32 %v1350_v34, %v2534_v36  ;;  %v1611_v10 = vadd.f32 %v1610_v63, %v1484_v52  ;;  %v1501_v34 = vmul.f32 %v2678_v62, %v2678_v62 }
 0x199   :  { %v1612_v19 = vadd.f32 %v1611_v10, %v1485_v35  ;;  %v1352_v20 = vadd.f32 %v1351_v7, %v2552_v51  ;;  %v1502_v10 = vmul.f32 %v2696_v23, %v2696_v23 }
 0x19b   :  { %v1353_v17 = vadd.f32 %v2525_v28, %v1352_v20  ;;  %v1613_v26 = vadd.f32 %v1612_v19, %v1486_v59  ;;  %v1491_v28 = vmul.f32 %v2561_v60, %v2561_v60 }
 0x19d   :  { %v1614_v5 = vadd.f32 %v1613_v26, %v1487_v1  ;;  %v1354_v29 = vadd.f32 %v2543_v43, %v1353_v17  ;;  %v1492_v43 = vmul.f32 %v2579_v11, %v2579_v11  ;;  %v1505_v17 = vmul.f32 %v2714_v55, %v2714_v55 }
 0x19f   :  { %v1355_v36 = vadd.f32 %v1354_v29, %v2570_v3  ;;  %v1615_v21 = vadd.f32 %v1614_v5, %v1488_v13  ;;  %v1506_v5 = vmul.f32 %v2732_v22, %v2732_v22 }
 0x1a1   :  { %v1616_v24 = vadd.f32 %v1615_v21, %v1489_v61  ;;  %v1356_v51 = vadd.f32 %v1355_v36, %v2588_v18 }
 0x1a3   :  { %v1357_v53 = vadd.f32 %v2561_v60, %v1356_v51  ;;  %v1617_v33 = vadd.f32 %v1616_v24, %v1490_v44  ;;  %v1495_v60 = vmul.f32 %v2597_v30, %v2597_v30  ;;  %v1509_v24 = vmul.f32 %v2750_v2, %v2750_v2 }
 0x1a5   :  { %v1618_v47 = vadd.f32 %v1617_v33, %v1491_v28  ;;  %v1358_v15 = vadd.f32 %v2579_v11, %v1357_v53  ;;  %v1496_v11 = vmul.f32 %v2615_v48, %v2615_v48 }
 0x1a7   :  { %v1359_v3 = vadd.f32 %v1358_v15, %v2606_v38  ;;  %v1619_v54 = vadd.f32 %v1618_v47, %v1492_v43  ;;  %v3114_v15 = vld [vmem:[#allocation3_spill] sm:$0xff] }
 0x1a9   :  { %v1620_v27 = vadd.f32 %v1619_v54, %v1493_v12  ;;  %v1360_v18 = vadd.f32 %v1359_v3, %v2624_v57 }
 0x1ab   :  { %v1361_v39 = vadd.f32 %v2597_v30, %v1360_v18  ;;  %v1621_v46 = vadd.f32 %v1620_v27, %v1494_v16  ;;  %v1499_v30 = vmul.f32 %v2633_v4, %v2633_v4 }
 0x1ad   :  { %v1622_v6 = vadd.f32 %v1621_v46, %v1495_v60  ;;  %v1362_v31 = vadd.f32 %v2615_v48, %v1361_v39  ;;  %v1500_v48 = vmul.f32 %v2651_v25, %v2651_v25  ;;  %v3116_v60 = vld [vmem:[#allocation8_spill] sm:$0xff] }
 0x1ae   :  { %v1514_v46 = vmul.f32 %v3116_v60, %v3116_v60 }
 0x1af   :  { %v1363_v38 = vadd.f32 %v1362_v31, %v2642_v14  ;;  %v1623_v58 = vadd.f32 %v1622_v6, %v1496_v11  ;;  %v3117_v11 = vld [vmem:[#allocation5_spill] sm:$0xff] }
 0x1b0   :  { %v1515_v6 = vmul.f32 %v3117_v11, %v3117_v11 }
 0x1b1   :  { %v1624_v41 = vadd.f32 %v1623_v58, %v1497_v49  ;;  %v1364_v57 = vadd.f32 %v1363_v38, %v2660_v37  ;;  %v3118_v49 = vld [vmem:[#allocation7_spill] sm:$0xff] }
 0x1b2   :  { %v1516_v58 = vmul.f32 %v3118_v49, %v3118_v49 }
 0x1b3   :  { %v1365_v32 = vadd.f32 %v2633_v4, %v1364_v57  ;;  %v1625_v0 = vadd.f32 %v1624_v41, %v1498_v40  ;;  %v1503_v4 = vmul.f32 %v2669_v50, %v2669_v50  ;;  %v3119_v40 = vld [vmem:[#allocation10_spill] sm:$0xff] }
 0x1b5   :  { %v1626_v52 = vadd.f32 %v1625_v0, %v1499_v30  ;;  %v1366_v63 = vadd.f32 %v2651_v25, %v1365_v32  ;;  %v1504_v25 = vmul.f32 %v2687_v9, %v2687_v9  ;;  %v1517_v32 = vmul.f32 %v3119_v40, %v3119_v40 }
 0x1b7   :  { %v1367_v14 = vadd.f32 %v1366_v63, %v2678_v62  ;;  %v1627_v7 = vadd.f32 %v1626_v52, %v1500_v48  ;;  %v1518_v63 = vmul.f32 %v2840_v45, %v2840_v45 }
 0x1b9   :  { %v1628_v35 = vadd.f32 %v1627_v7, %v1501_v34  ;;  %v1368_v37 = vadd.f32 %v1367_v14, %v2696_v23  ;;  %v3120_v14 = vld [vmem:[#allocation9_spill] sm:$0xff] }
 0x1ba   :  { %v1519_v34 = vmul.f32 %v3120_v14, %v3120_v14 }
 0x1bb   :  { %v1369_v19 = vadd.f32 %v2669_v50, %v1368_v37  ;;  %v1629_v20 = vadd.f32 %v1628_v35, %v1502_v10  ;;  %v1507_v50 = vmul.f32 %v2705_v42, %v2705_v42  ;;  %v1520_v37 = vmul.f32 %v2831_v56, %v2831_v56 }
 0x1bd   :  { %v1630_v59 = vadd.f32 %v1629_v20, %v1503_v4  ;;  %v1370_v1 = vadd.f32 %v2687_v9, %v1369_v19  ;;  %v1508_v9 = vmul.f32 %v2723_v8, %v2723_v8  ;;  %v3121_v19 = vld [vmem:[#allocation12_spill] sm:$0xff] }
 0x1bf   :  { %v1371_v62 = vadd.f32 %v1370_v1, %v2714_v55  ;;  %v1631_v26 = vadd.f32 %v1630_v59, %v1504_v25  ;;  %v1521_v25 = vmul.f32 %v3121_v19, %v3121_v19 }
 0x1c1   :  { %v1632_v13 = vadd.f32 %v1631_v26, %v1505_v17  ;;  %v1372_v23 = vadd.f32 %v1371_v62, %v2732_v22  ;;  %v3112_v22 = vld [vmem:[#allocation4_spill] sm:$0xff]  ;;  %v3123_v26 = vld [vmem:[#allocation11_spill] sm:$0xff] }
 0x1c2   :  { %v1510_v53 = vmul.f32 %v3112_v22, %v3112_v22 }
 0x1c3   :  { %v1373_v29 = vadd.f32 %v2705_v42, %v1372_v23  ;;  %v1633_v36 = vadd.f32 %v1632_v13, %v1506_v5  ;;  %v3113_v42 = vld [vmem:[#allocation2_spill] sm:$0xff]  ;;  %v1523_v13 = vmul.f32 %v3123_v26, %v3123_v26 }
 0x1c4   :  { %v1511_v33 = vmul.f32 %v3113_v42, %v3113_v42 }
 0x1c5   :  { %v1634_v61 = vadd.f32 %v1633_v36, %v1507_v50  ;;  %v1374_v21 = vadd.f32 %v2723_v8, %v1373_v29  ;;  %v1512_v8 = vmul.f32 %v3114_v15, %v3114_v15  ;;  %v3124_v50 = vld [vmem:[#allocation13_spill] sm:$0xff] }
 0x1c7   :  { %v1375_v55 = vadd.f32 %v1374_v21, %v2750_v2  ;;  %v1635_v51 = vadd.f32 %v1634_v61, %v1508_v9  ;;  %v3115_v2 = vld [vmem:[#allocation6_spill] sm:$0xff]  ;;  %v1658_v21 = vlaneseq }
 0x1c8   :  { %v1513_v27 = vmul.f32 %v3115_v2, %v3115_v2 }
 0x1c9   :  { %v1636_v44 = vadd.f32 %v1635_v51, %v1509_v24  ;;  %v1376_v28 = vadd.f32 %v1375_v55, %v3112_v22  ;;  %v1659_v22 = vshrl.u32 %v1658_v21, 7 }
 0x1cb   :  { %v1377_v43 = vadd.f32 %v3113_v42, %v1376_v28  ;;  %v1637_v47 = vadd.f32 %v1636_v44, %v1510_v53  ;;  %vm1660_vm0 = vcmp.eq.s32.totalorder %v1659_v22, 0 }
 0x1cd   :  { %v1638_v3 = vadd.f32 %v1637_v47, %v1511_v33  ;;  %v1378_v12 = vadd.f32 %v3114_v15, %v1377_v43 }
 0x1cf   :  { %v1379_v54 = vadd.f32 %v1378_v12, %v3115_v2  ;;  %v1639_v18 = vadd.f32 %v1638_v3, %v1512_v8 }
 0x1d1   :  { %v1640_v16 = vadd.f32 %v1639_v18, %v1513_v27  ;;  %v1380_v39 = vadd.f32 %v1379_v54, %v3116_v60 }
 0x1d3   :  { %v1381_v31 = vadd.f32 %v3117_v11, %v1380_v39  ;;  %v1641_v38 = vadd.f32 %v1640_v16, %v1514_v46 }
 0x1d5   :  { %v1642_v41 = vadd.f32 %v1641_v38, %v1515_v6  ;;  %v1382_v57 = vadd.f32 %v3118_v49, %v1381_v31 }
 0x1d7   :  { %v1383_v30 = vadd.f32 %v1382_v57, %v3119_v40  ;;  %v1643_v0 = vadd.f32 %v1642_v41, %v1516_v58 }
 0x1d9   :  { %v1644_v48 = vadd.f32 %v1643_v0, %v1517_v32  ;;  %v1384_v52 = vadd.f32 %v1383_v30, %v2840_v45  ;;  %v3122_v45 = vld [vmem:[#allocation14_spill] sm:$0xff] }
 0x1da   :  { %v1522_v17 = vmul.f32 %v3122_v45, %v3122_v45 }
 0x1db   :  { %v1385_v7 = vadd.f32 %v3120_v14, %v1384_v52  ;;  %v1645_v35 = vadd.f32 %v1644_v48, %v1518_v63 }
 0x1dd   :  { %v1646_v10 = vadd.f32 %v1645_v35, %v1519_v34  ;;  %v1386_v4 = vadd.f32 %v2831_v56, %v1385_v7  ;;  %v1524_v56 = vmul.f32 %v3124_v50, %v3124_v50 }
 0x1df   :  { %v1387_v20 = vadd.f32 %v1386_v4, %v3121_v19  ;;  %v1647_v59 = vadd.f32 %v1646_v10, %v1520_v37 }
 0x1e1   :  { %v1648_v1 = vadd.f32 %v1647_v59, %v1521_v25  ;;  %v1388_v62 = vadd.f32 %v1387_v20, %v3122_v45 }
 0x1e3   :  { %v1389_v23 = vadd.f32 %v3123_v26, %v1388_v62  ;;  %v1649_v5 = vadd.f32 %v1648_v1, %v1522_v17 }
 0x1e5   :  { %v1390_v29 = vadd.f32 %v3124_v50, %v1389_v23  ;;  %v1650_v36 = vadd.f32 %v1649_v5, %v1523_v13 }
 0x1e7   :  { %v1391_v9 = vrot.slane %v1390_v29, 4  ;;  %v1651_v61 = vadd.f32 %v1650_v36, %v1524_v56 }
 0x1e9   :  { %v1392_v55 = vadd.f32 %v1391_v9, %v1390_v29  ;;  %v1652_v24 = vrot.slane %v1651_v61, 4 }
 0x1eb   :  { %v1393_v51 = vrot.slane %v1392_v55, 2  ;;  %v1653_v44 = vadd.f32 %v1652_v24, %v1651_v61 }
 0x1ed   :  { %v1394_v28 = vadd.f32 %v1393_v51, %v1392_v55  ;;  %v1654_v53 = vrot.slane %v1653_v44, 2 }
 0x1ef   :  { %v1395_v42 = vrot.slane %v1394_v28, 1  ;;  %v1655_v33 = vadd.f32 %v1654_v53, %v1653_v44 }
 0x1f1   :  { %v1396_v43 = vadd.f32 %v1395_v42, %v1394_v28  ;;  %v1656_v47 = vrot.slane %v1655_v33, 1 }
 0x1f3   :  { %v1657_v15 = vadd.f32 %v1656_v47, %v1655_v33  ;;  %v1661_v8 = vsel %vm1660_vm0, %v1396_v43, 0.0 }
 0x1f4   :  { %1662 = vst [vmem:[%s3071_s3] sm:$0xff] %v1661_v8 }
 0x1f5   :  { %v1663_v3 = vsel %vm1660_vm0, %v1657_v15, 0.0 }
 0x1f6   :  { %1664 = vst [vmem:[%s3072_s4] sm:$0xff] %v1663_v3 }

// kernel: _lambda_.6
= control target key start
LH: loop header
LB: loop body
LE: loop exit
PB: predicated region body
PF: predicated region fallthrough
CT: control target
= control target key end

     0   :  { %v2394_v0 = vmov 0   ;;  %s3760_s1 = inlined_call_operand.vmem [shape: bf16[256,128], index: 1, kind: input, shape index: {}]   ;;  %s3761_s0 = inlined_call_operand.vmem [shape: bf16[1024,256], index: 0, kind: input, shape index: {}]   ;;  %s3762_s2 = inlined_call_operand.vmem [shape: f32[1024,128], index: 2, kind: output, shape index: {0}]   ;;  %s3763_s3 = inlined_call_operand.vmem [shape: f32[8,128], index: 3, kind: output, shape index: {1}]   ;;  %s3764_s4 = inlined_call_operand.vmem [shape: f32[8,128], index: 4, kind: output, shape index: {2}]  }
   0x1   :  { %911 = vmatprep.subr.bf16.mxu0 %v2394_v0  ;;  %v2174_v1 = vld [vmem:[%s3760_s1 + $0x38] sm:$0xff]   ;;  %2141 = vmatprep.subr.bf16.mxu1 %v2394_v0  ;;  %v2175_v2 = vld [vmem:[%s3760_s1 + $0x30] sm:$0xff]   ;;  %v2176_v3 = vld [vmem:[%s3760_s1 + $0x28] sm:$0xff]  }
   0x2   :  { %912 = vmatpush1.bf16.msra.mxu0 %v2174_v1  ;;  %2157 = vmatpush1.bf16.msra.mxu1 %v2174_v1  ;;  %v2177_v4 = vld [vmem:[%s3760_s1 + $0x20] sm:$0xff]   ;;  %v2178_v5 = vld [vmem:[%s3760_s1 + $0x18] sm:$0xff]   ;;  %v2179_v7 = vld [vmem:[%s3760_s1 + $0x10] sm:$0xff]  }
   0x3   :  { %913 = vmatprep.subr.bf16.mxu0 %v2394_v0  ;;  %2142 = vmatprep.subr.bf16.mxu1 %v2394_v0  ;;  %v2192_v6 = vld [vmem:[%s3761_s0 + $0x4] ss:$8 sps:$4 sm:$0xff]   ;;  %v2182_v10 = vld [vmem:[%s3760_s1 + $0x78] sm:$0xff]   ;;  %v2183_v11 = vld [vmem:[%s3760_s1 + $0x70] sm:$0xff]  }
   0x4   :  { %943 = vmatprep.mubr.bf16.mxu0 %v2192_v6  ;;  %v2180_v8 = vld [vmem:[%s3760_s1 + $0x8] sm:$0xff]   ;;  %v2181_v9 = vld [vmem:[%s3760_s1] sm:$0xff]   ;;  %v2186_v14 = vld [vmem:[%s3760_s1 + $0x58] sm:$0xff]  }
   0x5   :  { %v2184_v12 = vld [vmem:[%s3760_s1 + $0x68] sm:$0xff]   ;;  %v2185_v13 = vld [vmem:[%s3760_s1 + $0x60] sm:$0xff]   ;;  %v2187_v15 = vld [vmem:[%s3760_s1 + $0x50] sm:$0xff]  }
   0x6   :  { %914 = vmatpush1.bf16.msra.mxu0 %v2175_v2  ;;  %2158 = vmatpush1.bf16.msra.mxu1 %v2175_v2  ;;  %v2188_v16 = vld [vmem:[%s3760_s1 + $0x48] sm:$0xff]   ;;  %v2189_v18 = vld [vmem:[%s3760_s1 + $0x40] sm:$0xff]   ;;  %v2193_v21 = vld [vmem:[%s3761_s0 + $0x14] ss:$8 sps:$4 sm:$0xff]  }
   0x7   :  { %915 = vmatprep.subr.bf16.mxu0 %v2394_v0  ;;  %2143 = vmatprep.subr.bf16.mxu1 %v2394_v0  ;;  %v2240_v17 = vld [vmem:[%s3761_s0 + $0x204] ss:$8 sps:$4 sm:$0xff]   ;;  %v2190_v19 = vld [vmem:[%s3761_s0] ss:$8 sps:$4 sm:$0xff]   ;;  %v2244_v22 = vld [vmem:[%s3761_s0 + $0x214] ss:$8 sps:$4 sm:$0xff]  }
   0x8   :  { %v2238_v20 = vld [vmem:[%s3761_s0 + $0x200] ss:$8 sps:$4 sm:$0xff]   ;;  %1199 = vmatprep.mubr.bf16.mxu1 %v2240_v17  ;;  %v2195_v23 = vld [vmem:[%s3761_s0 + $0x10] ss:$8 sps:$4 sm:$0xff]   ;;  %v2196_v25 = vld [vmem:[%s3761_s0 + $0x24] ss:$8 sps:$4 sm:$0xff]  }
   0x9   :  { %v2246_v24 = vld [vmem:[%s3761_s0 + $0x210] ss:$8 sps:$4 sm:$0xff]   ;;  %v2250_v26 = vld [vmem:[%s3761_s0 + $0x224] ss:$8 sps:$4 sm:$0xff]   ;;  %v2198_v27 = vld [vmem:[%s3761_s0 + $0x20] ss:$8 sps:$4 sm:$0xff]  }
   0xa   :  { %916 = vmatpush1.bf16.msra.mxu0 %v2176_v3  ;;  %2159 = vmatpush1.bf16.msra.mxu1 %v2176_v3  ;;  %v2252_v28 = vld [vmem:[%s3761_s0 + $0x220] ss:$8 sps:$4 sm:$0xff]   ;;  %v2199_v29 = vld [vmem:[%s3761_s0 + $0x34] ss:$8 sps:$4 sm:$0xff]   ;;  %v2201_v31 = vld [vmem:[%s3761_s0 + $0x30] ss:$8 sps:$4 sm:$0xff]  }
   0xb   :  { %917 = vmatprep.subr.bf16.mxu0 %v2394_v0  ;;  %2144 = vmatprep.subr.bf16.mxu1 %v2394_v0  ;;  %v2256_v30 = vld [vmem:[%s3761_s0 + $0x234] ss:$8 sps:$4 sm:$0xff]   ;;  %v2258_v32 = vld [vmem:[%s3761_s0 + $0x230] ss:$8 sps:$4 sm:$0xff]   ;;  %v2202_v33 = vld [vmem:[%s3761_s0 + $0x44] ss:$8 sps:$4 sm:$0xff]  }
   0xc   :  { %v2262_v34 = vld [vmem:[%s3761_s0 + $0x244] ss:$8 sps:$4 sm:$0xff]   ;;  %v2204_v35 = vld [vmem:[%s3761_s0 + $0x40] ss:$8 sps:$4 sm:$0xff]   ;;  %v2205_v37 = vld [vmem:[%s3761_s0 + $0x54] ss:$8 sps:$4 sm:$0xff]  }
   0xd   :  { %v2264_v36 = vld [vmem:[%s3761_s0 + $0x240] ss:$8 sps:$4 sm:$0xff]   ;;  %v2268_v38 = vld [vmem:[%s3761_s0 + $0x254] ss:$8 sps:$4 sm:$0xff]   ;;  %v2207_v39 = vld [vmem:[%s3761_s0 + $0x50] ss:$8 sps:$4 sm:$0xff]  }
   0xe   :  { %918 = vmatpush1.bf16.msra.mxu0 %v2177_v4  ;;  %2160 = vmatpush1.bf16.msra.mxu1 %v2177_v4  ;;  %v2270_v40 = vld [vmem:[%s3761_s0 + $0x250] ss:$8 sps:$4 sm:$0xff]   ;;  %v2208_v41 = vld [vmem:[%s3761_s0 + $0x64] ss:$8 sps:$4 sm:$0xff]   ;;  %v2210_v43 = vld [vmem:[%s3761_s0 + $0x60] ss:$8 sps:$4 sm:$0xff]  }
   0xf   :  { %919 = vmatprep.subr.bf16.mxu0 %v2394_v0  ;;  %2145 = vmatprep.subr.bf16.mxu1 %v2394_v0  ;;  %v2274_v42 = vld [vmem:[%s3761_s0 + $0x264] ss:$8 sps:$4 sm:$0xff]   ;;  %v2276_v44 = vld [vmem:[%s3761_s0 + $0x260] ss:$8 sps:$4 sm:$0xff]   ;;  %v2211_v45 = vld [vmem:[%s3761_s0 + $0x74] ss:$8 sps:$4 sm:$0xff]  }
  0x10   :  { %v2280_v46 = vld [vmem:[%s3761_s0 + $0x274] ss:$8 sps:$4 sm:$0xff]   ;;  %v2213_v47 = vld [vmem:[%s3761_s0 + $0x70] ss:$8 sps:$4 sm:$0xff]   ;;  %v2214_v49 = vld [vmem:[%s3761_s0 + $0x84] ss:$8 sps:$4 sm:$0xff]  }
  0x11   :  { %v2282_v48 = vld [vmem:[%s3761_s0 + $0x270] ss:$8 sps:$4 sm:$0xff]   ;;  %v2286_v50 = vld [vmem:[%s3761_s0 + $0x284] ss:$8 sps:$4 sm:$0xff]   ;;  %v2216_v51 = vld [vmem:[%s3761_s0 + $0x80] ss:$8 sps:$4 sm:$0xff]  }
  0x12   :  { %920 = vmatpush1.bf16.msra.mxu0 %v2178_v5  ;;  %2161 = vmatpush1.bf16.msra.mxu1 %v2178_v5  ;;  %v2288_v52 = vld [vmem:[%s3761_s0 + $0x280] ss:$8 sps:$4 sm:$0xff]   ;;  %v2217_v53 = vld [vmem:[%s3761_s0 + $0x94] ss:$8 sps:$4 sm:$0xff]   ;;  %v2219_v55 = vld [vmem:[%s3761_s0 + $0x90] ss:$8 sps:$4 sm:$0xff]  }
  0x13   :  { %921 = vmatprep.subr.bf16.mxu0 %v2394_v0  ;;  %2146 = vmatprep.subr.bf16.mxu1 %v2394_v0  ;;  %v2292_v54 = vld [vmem:[%s3761_s0 + $0x294] ss:$8 sps:$4 sm:$0xff]   ;;  %v2294_v56 = vld [vmem:[%s3761_s0 + $0x290] ss:$8 sps:$4 sm:$0xff]   ;;  %v2220_v57 = vld [vmem:[%s3761_s0 + $0xa4] ss:$8 sps:$4 sm:$0xff]  }
  0x14   :  { %v2298_v58 = vld [vmem:[%s3761_s0 + $0x2a4] ss:$8 sps:$4 sm:$0xff]   ;;  %v2222_v59 = vld [vmem:[%s3761_s0 + $0xa0] ss:$8 sps:$4 sm:$0xff]   ;;  %v2223_v61 = vld [vmem:[%s3761_s0 + $0xb4] ss:$8 sps:$4 sm:$0xff]  }
  0x15   :  { %v2300_v60 = vld [vmem:[%s3761_s0 + $0x2a0] ss:$8 sps:$4 sm:$0xff]   ;;  %v2304_v62 = vld [vmem:[%s3761_s0 + $0x2b4] ss:$8 sps:$4 sm:$0xff]   ;;  %v2225_v63 = vld [vmem:[%s3761_s0 + $0xb0] ss:$8 sps:$4 sm:$0xff]  }
  0x16   :  { %922 = vmatpush1.bf16.msra.mxu0 %v2179_v7  ;;  %2162 = vmatpush1.bf16.msra.mxu1 %v2179_v7  ;;  %v2226_v1 = vld [vmem:[%s3761_s0 + $0xc4] ss:$8 sps:$4 sm:$0xff]   ;;  %v2228_v3 = vld [vmem:[%s3761_s0 + $0xc0] ss:$8 sps:$4 sm:$0xff]   ;;  %v2229_v5 = vld [vmem:[%s3761_s0 + $0xd4] ss:$8 sps:$4 sm:$0xff]  }
  0x17   :  { %923 = vmatprep.subr.bf16.mxu0 %v2394_v0  ;;  %2147 = vmatprep.subr.bf16.mxu1 %v2394_v0  ;;  %v2310_v2 = vld [vmem:[%s3761_s0 + $0x2c4] ss:$8 sps:$4 sm:$0xff]   ;;  %v2312_v4 = vld [vmem:[%s3761_s0 + $0x2c0] ss:$8 sps:$4 sm:$0xff]   ;;  %v2316_v6 = vld [vmem:[%s3761_s0 + $0x2d4] ss:$8 sps:$4 sm:$0xff]  }
  0x18   :  { %v2231_v7 = vld [vmem:[%s3761_s0 + $0xd0] ss:$8 sps:$4 sm:$0xff]   ;;  %v2241_v17 = vld [vmem:[%s3761_s0 + $0x104] ss:$8 sps:$4 sm:$0xff]  }
  0x1a   :  { %924 = vmatpush1.bf16.msra.mxu0 %v2180_v8  ;;  %2163 = vmatpush1.bf16.msra.mxu1 %v2180_v8  ;;  %v2318_v8 = vld [vmem:[%s3761_s0 + $0x2d0] ss:$8 sps:$4 sm:$0xff]  }
  0x1b   :  { %925 = vmatprep.subr.bf16.mxu0 %v2394_v0  ;;  %2148 = vmatprep.subr.bf16.mxu1 %v2394_v0 }
  0x1e   :  { %926 = vmatpush1.bf16.msra.mxu0 %v2181_v9  ;;  %2164 = vmatpush1.bf16.msra.mxu1 %v2181_v9  ;;  %v2232_v9 = vld [vmem:[%s3761_s0 + $0xe4] ss:$8 sps:$4 sm:$0xff]  }
  0x1f   :  { %927 = vmatprep.subr.bf16.mxu0 %v2394_v0  ;;  %2149 = vmatprep.subr.bf16.mxu1 %v2394_v0 }
  0x22   :  { %928 = vmatpush2.bf16.msra.mxu0 %v2182_v10  ;;  %2165 = vmatpush2.bf16.msra.mxu1 %v2182_v10  ;;  %v2322_v10 = vld [vmem:[%s3761_s0 + $0x2e4] ss:$8 sps:$4 sm:$0xff]  }
  0x23   :  { %929 = vmatprep.subr.bf16.mxu0 %v2394_v0  ;;  %2150 = vmatprep.subr.bf16.mxu1 %v2394_v0 }
  0x26   :  { %930 = vmatpush2.bf16.msra.mxu0 %v2183_v11  ;;  %2166 = vmatpush2.bf16.msra.mxu1 %v2183_v11  ;;  %v2234_v11 = vld [vmem:[%s3761_s0 + $0xe0] ss:$8 sps:$4 sm:$0xff]  }
  0x27   :  { %931 = vmatprep.subr.bf16.mxu0 %v2394_v0  ;;  %2151 = vmatprep.subr.bf16.mxu1 %v2394_v0 }
  0x2a   :  { %932 = vmatpush2.bf16.msra.mxu0 %v2184_v12  ;;  %2167 = vmatpush2.bf16.msra.mxu1 %v2184_v12  ;;  %v2324_v12 = vld [vmem:[%s3761_s0 + $0x2e0] ss:$8 sps:$4 sm:$0xff]  }
  0x2b   :  { %933 = vmatprep.subr.bf16.mxu0 %v2394_v0  ;;  %2152 = vmatprep.subr.bf16.mxu1 %v2394_v0 }
  0x2e   :  { %934 = vmatpush2.bf16.msra.mxu0 %v2185_v13  ;;  %2168 = vmatpush2.bf16.msra.mxu1 %v2185_v13  ;;  %v2235_v13 = vld [vmem:[%s3761_s0 + $0xf4] ss:$8 sps:$4 sm:$0xff]  }
  0x2f   :  { %935 = vmatprep.subr.bf16.mxu0 %v2394_v0  ;;  %2153 = vmatprep.subr.bf16.mxu1 %v2394_v0 }
  0x32   :  { %936 = vmatpush2.bf16.msra.mxu0 %v2186_v14  ;;  %2169 = vmatpush2.bf16.msra.mxu1 %v2186_v14  ;;  %v2328_v14 = vld [vmem:[%s3761_s0 + $0x2f4] ss:$8 sps:$4 sm:$0xff]  }
  0x33   :  { %937 = vmatprep.subr.bf16.mxu0 %v2394_v0  ;;  %2154 = vmatprep.subr.bf16.mxu1 %v2394_v0 }
  0x36   :  { %938 = vmatpush2.bf16.msra.mxu0 %v2187_v15  ;;  %2170 = vmatpush2.bf16.msra.mxu1 %v2187_v15  ;;  %v2237_v15 = vld [vmem:[%s3761_s0 + $0xf0] ss:$8 sps:$4 sm:$0xff]  }
  0x37   :  { %939 = vmatprep.subr.bf16.mxu0 %v2394_v0  ;;  %2155 = vmatprep.subr.bf16.mxu1 %v2394_v0 }
  0x3a   :  { %940 = vmatpush2.bf16.msra.mxu0 %v2188_v16  ;;  %2171 = vmatpush2.bf16.msra.mxu1 %v2188_v16  ;;  %v2330_v16 = vld [vmem:[%s3761_s0 + $0x2f0] ss:$8 sps:$4 sm:$0xff]  }
  0x3b   :  { %941 = vmatprep.subr.bf16.mxu0 %v2394_v0  ;;  %2156 = vmatprep.subr.bf16.mxu1 %v2394_v0  ;;  %v2306_v0 = vld [vmem:[%s3761_s0 + $0x2b0] ss:$8 sps:$4 sm:$0xff]  }
  0x3e   :  { %942 = vmatpush2.bf16.msra.mxu0 %v2189_v18  ;;  %2172 = vmatpush2.bf16.msra.mxu1 %v2189_v18  ;;  %v2334_v18 = vld [vmem:[%s3761_s0 + $0x304] ss:$8 sps:$4 sm:$0xff]  }
  0x41   :  { %944 = vmatmul.mubr.bf16.vlgmr.msra.gmra.mxu0 %v2190_v19  ;;  %1200 = vmatmul.mubr.bf16.vlgmr.msra.gmra.mxu1 %v2238_v20  ;;  %v2243_v19 = vld [vmem:[%s3761_s0 + $0x100] ss:$8 sps:$4 sm:$0xff]  }
  0x42   :  { %951 = vmatprep.mubr.bf16.mxu0 %v2193_v21  ;;  %1207 = vmatprep.mubr.bf16.mxu1 %v2244_v22  ;;  %v2336_v20 = vld [vmem:[%s3761_s0 + $0x300] ss:$8 sps:$4 sm:$0xff]   ;;  %v2247_v21 = vld [vmem:[%s3761_s0 + $0x114] ss:$8 sps:$4 sm:$0xff]  }
  0x43   :  { %v2337_v22 = vld [vmem:[%s3761_s0 + $0x314] ss:$8 sps:$4 sm:$0xff]  }
  0x49   :  { %952 = vmatmul.mubr.bf16.gmra.mxu0 %v2195_v23  ;;  %1208 = vmatmul.mubr.bf16.gmra.mxu1 %v2246_v24  ;;  %v2249_v23 = vld [vmem:[%s3761_s0 + $0x110] ss:$8 sps:$4 sm:$0xff]  }
  0x4a   :  { %959 = vmatprep.mubr.bf16.mxu0 %v2196_v25  ;;  %1215 = vmatprep.mubr.bf16.mxu1 %v2250_v26  ;;  %v2339_v24 = vld [vmem:[%s3761_s0 + $0x310] ss:$8 sps:$4 sm:$0xff]   ;;  %v2253_v25 = vld [vmem:[%s3761_s0 + $0x124] ss:$8 sps:$4 sm:$0xff]  }
  0x4b   :  { %v2340_v26 = vld [vmem:[%s3761_s0 + $0x324] ss:$8 sps:$4 sm:$0xff]  }
  0x51   :  { %960 = vmatmul.mubr.bf16.gmra.mxu0 %v2198_v27  ;;  %1216 = vmatmul.mubr.bf16.gmra.mxu1 %v2252_v28  ;;  %v2255_v27 = vld [vmem:[%s3761_s0 + $0x120] ss:$8 sps:$4 sm:$0xff]  }
  0x52   :  { %967 = vmatprep.mubr.bf16.mxu0 %v2199_v29  ;;  %1223 = vmatprep.mubr.bf16.mxu1 %v2256_v30  ;;  %v2342_v28 = vld [vmem:[%s3761_s0 + $0x320] ss:$8 sps:$4 sm:$0xff]   ;;  %v2259_v29 = vld [vmem:[%s3761_s0 + $0x134] ss:$8 sps:$4 sm:$0xff]  }
  0x53   :  { %v2343_v30 = vld [vmem:[%s3761_s0 + $0x334] ss:$8 sps:$4 sm:$0xff]  }
  0x59   :  { %968 = vmatmul.mubr.bf16.gmra.mxu0 %v2201_v31  ;;  %1224 = vmatmul.mubr.bf16.gmra.mxu1 %v2258_v32  ;;  %v2261_v31 = vld [vmem:[%s3761_s0 + $0x130] ss:$8 sps:$4 sm:$0xff]  }
  0x5a   :  { %975 = vmatprep.mubr.bf16.mxu0 %v2202_v33  ;;  %1231 = vmatprep.mubr.bf16.mxu1 %v2262_v34  ;;  %v2345_v32 = vld [vmem:[%s3761_s0 + $0x330] ss:$8 sps:$4 sm:$0xff]   ;;  %v2265_v33 = vld [vmem:[%s3761_s0 + $0x144] ss:$8 sps:$4 sm:$0xff]  }
  0x5b   :  { %v2346_v34 = vld [vmem:[%s3761_s0 + $0x344] ss:$8 sps:$4 sm:$0xff]  }
  0x61   :  { %976 = vmatmul.mubr.bf16.gmra.mxu0 %v2204_v35  ;;  %1232 = vmatmul.mubr.bf16.gmra.mxu1 %v2264_v36  ;;  %v2267_v35 = vld [vmem:[%s3761_s0 + $0x140] ss:$8 sps:$4 sm:$0xff]  }
  0x62   :  { %983 = vmatprep.mubr.bf16.mxu0 %v2205_v37  ;;  %1239 = vmatprep.mubr.bf16.mxu1 %v2268_v38  ;;  %v2348_v36 = vld [vmem:[%s3761_s0 + $0x340] ss:$8 sps:$4 sm:$0xff]   ;;  %v2271_v37 = vld [vmem:[%s3761_s0 + $0x154] ss:$8 sps:$4 sm:$0xff]  }
  0x63   :  { %v2349_v38 = vld [vmem:[%s3761_s0 + $0x354] ss:$8 sps:$4 sm:$0xff]  }
  0x69   :  { %984 = vmatmul.mubr.bf16.gmra.mxu0 %v2207_v39  ;;  %1240 = vmatmul.mubr.bf16.gmra.mxu1 %v2270_v40  ;;  %v2273_v39 = vld [vmem:[%s3761_s0 + $0x150] ss:$8 sps:$4 sm:$0xff]  }
  0x6a   :  { %991 = vmatprep.mubr.bf16.mxu0 %v2208_v41  ;;  %1247 = vmatprep.mubr.bf16.mxu1 %v2274_v42  ;;  %v2351_v40 = vld [vmem:[%s3761_s0 + $0x350] ss:$8 sps:$4 sm:$0xff]   ;;  %v2277_v41 = vld [vmem:[%s3761_s0 + $0x164] ss:$8 sps:$4 sm:$0xff]  }
  0x6b   :  { %v2352_v42 = vld [vmem:[%s3761_s0 + $0x364] ss:$8 sps:$4 sm:$0xff]  }
  0x71   :  { %992 = vmatmul.mubr.bf16.gmra.mxu0 %v2210_v43  ;;  %1248 = vmatmul.mubr.bf16.gmra.mxu1 %v2276_v44  ;;  %v2279_v43 = vld [vmem:[%s3761_s0 + $0x160] ss:$8 sps:$4 sm:$0xff]  }
  0x72   :  { %999 = vmatprep.mubr.bf16.mxu0 %v2211_v45  ;;  %1255 = vmatprep.mubr.bf16.mxu1 %v2280_v46  ;;  %v2354_v44 = vld [vmem:[%s3761_s0 + $0x360] ss:$8 sps:$4 sm:$0xff]   ;;  %v2283_v45 = vld [vmem:[%s3761_s0 + $0x174] ss:$8 sps:$4 sm:$0xff]  }
  0x73   :  { %v2355_v46 = vld [vmem:[%s3761_s0 + $0x374] ss:$8 sps:$4 sm:$0xff]  }
  0x79   :  { %1000 = vmatmul.mubr.bf16.gmra.mxu0 %v2213_v47  ;;  %1256 = vmatmul.mubr.bf16.gmra.mxu1 %v2282_v48  ;;  %v2285_v47 = vld [vmem:[%s3761_s0 + $0x170] ss:$8 sps:$4 sm:$0xff]  }
  0x7a   :  { %1007 = vmatprep.mubr.bf16.mxu0 %v2214_v49  ;;  %1263 = vmatprep.mubr.bf16.mxu1 %v2286_v50  ;;  %v2357_v48 = vld [vmem:[%s3761_s0 + $0x370] ss:$8 sps:$4 sm:$0xff]   ;;  %v2289_v49 = vld [vmem:[%s3761_s0 + $0x184] ss:$8 sps:$4 sm:$0xff]  }
  0x7b   :  { %v2358_v50 = vld [vmem:[%s3761_s0 + $0x384] ss:$8 sps:$4 sm:$0xff]  }
  0x81   :  { %1008 = vmatmul.mubr.bf16.gmra.mxu0 %v2216_v51  ;;  %1264 = vmatmul.mubr.bf16.gmra.mxu1 %v2288_v52  ;;  %v2291_v51 = vld [vmem:[%s3761_s0 + $0x180] ss:$8 sps:$4 sm:$0xff]  }
  0x82   :  { %1015 = vmatprep.mubr.bf16.mxu0 %v2217_v53  ;;  %1271 = vmatprep.mubr.bf16.mxu1 %v2292_v54  ;;  %v2360_v52 = vld [vmem:[%s3761_s0 + $0x380] ss:$8 sps:$4 sm:$0xff]   ;;  %v2295_v53 = vld [vmem:[%s3761_s0 + $0x194] ss:$8 sps:$4 sm:$0xff]  }
  0x83   :  { %v2361_v54 = vld [vmem:[%s3761_s0 + $0x394] ss:$8 sps:$4 sm:$0xff]  }
  0x89   :  { %1016 = vmatmul.mubr.bf16.gmra.mxu0 %v2219_v55  ;;  %1272 = vmatmul.mubr.bf16.gmra.mxu1 %v2294_v56 }
  0x8a   :  { %1023 = vmatprep.mubr.bf16.mxu0 %v2220_v57  ;;  %1279 = vmatprep.mubr.bf16.mxu1 %v2298_v58 }
  0x91   :  { %1024 = vmatmul.mubr.bf16.gmra.mxu0 %v2222_v59  ;;  %1280 = vmatmul.mubr.bf16.gmra.mxu1 %v2300_v60  ;;  %v2297_v60 = vld [vmem:[%s3761_s0 + $0x190] ss:$8 sps:$4 sm:$0xff]  }
  0x92   :  { %1031 = vmatprep.mubr.bf16.mxu0 %v2223_v61  ;;  %1287 = vmatprep.mubr.bf16.mxu1 %v2304_v62  ;;  %v2363_v62 = vld [vmem:[%s3761_s0 + $0x390] ss:$8 sps:$4 sm:$0xff]  }
  0x99   :  { %1032 = vmatmul.mubr.bf16.gmra.mxu0 %v2225_v63  ;;  %1288 = vmatmul.mubr.bf16.gmra.mxu1 %v2306_v0 }
  0x9a   :  { %1039 = vmatprep.mubr.bf16.mxu0 %v2226_v1  ;;  %1295 = vmatprep.mubr.bf16.mxu1 %v2310_v2  ;;  %v2301_v2 = vld [vmem:[%s3761_s0 + $0x1a4] ss:$8 sps:$4 sm:$0xff]  }
  0xa1   :  { %1040 = vmatmul.mubr.bf16.gmra.mxu0 %v2228_v3  ;;  %1296 = vmatmul.mubr.bf16.gmra.mxu1 %v2312_v4 }
  0xa2   :  { %1047 = vmatprep.mubr.bf16.mxu0 %v2229_v5  ;;  %1303 = vmatprep.mubr.bf16.mxu1 %v2316_v6  ;;  %v2364_v6 = vld [vmem:[%s3761_s0 + $0x3a4] ss:$8 sps:$4 sm:$0xff]  }
  0xa9   :  { %1048 = vmatmul.mubr.bf16.gmra.mxu0 %v2231_v7  ;;  %1304 = vmatmul.mubr.bf16.gmra.mxu1 %v2318_v8 }
  0xaa   :  { %1055 = vmatprep.mubr.bf16.mxu0 %v2232_v9  ;;  %1311 = vmatprep.mubr.bf16.mxu1 %v2322_v10 }
  0xb1   :  { %1056 = vmatmul.mubr.bf16.gmra.mxu0 %v2234_v11  ;;  %1312 = vmatmul.mubr.bf16.gmra.mxu1 %v2324_v12 }
  0xb2   :  { %1063 = vmatprep.mubr.bf16.mxu0 %v2235_v13  ;;  %1319 = vmatprep.mubr.bf16.mxu1 %v2328_v14 }
  0xb9   :  { %1064 = vmatmul.mubr.bf16.gmra.mxu0 %v2237_v15  ;;  %1320 = vmatmul.mubr.bf16.gmra.mxu1 %v2330_v16  ;;  %v2303_v15 = vld [vmem:[%s3761_s0 + $0x1a0] ss:$8 sps:$4 sm:$0xff]  }
  0xba   :  { %1071 = vmatprep.mubr.bf16.mxu0 %v2241_v17  ;;  %1327 = vmatprep.mubr.bf16.mxu1 %v2334_v18  ;;  %v2366_v17 = vld [vmem:[%s3761_s0 + $0x3a0] ss:$8 sps:$4 sm:$0xff]  }
  0xc1   :  { %1072 = vmatmul.mubr.bf16.gmra.mxu0 %v2243_v19  ;;  %1328 = vmatmul.mubr.bf16.gmra.mxu1 %v2336_v20  ;;  %v2307_v20 = vld [vmem:[%s3761_s0 + $0x1b4] ss:$8 sps:$4 sm:$0xff]  }
  0xc2   :  { %1079 = vmatprep.mubr.bf16.mxu0 %v2247_v21  ;;  %1335 = vmatprep.mubr.bf16.mxu1 %v2337_v22 }
  0xc9   :  { %1080 = vmatmul.mubr.bf16.gmra.mxu0 %v2249_v23  ;;  %1336 = vmatmul.mubr.bf16.gmra.mxu1 %v2339_v24  ;;  %v2367_v24 = vld [vmem:[%s3761_s0 + $0x3b4] ss:$8 sps:$4 sm:$0xff]  }
  0xca   :  { %1087 = vmatprep.mubr.bf16.mxu0 %v2253_v25  ;;  %1343 = vmatprep.mubr.bf16.mxu1 %v2340_v26 }
  0xd1   :  { %1088 = vmatmul.mubr.bf16.gmra.mxu0 %v2255_v27  ;;  %1344 = vmatmul.mubr.bf16.gmra.mxu1 %v2342_v28 }
  0xd2   :  { %1095 = vmatprep.mubr.bf16.mxu0 %v2259_v29  ;;  %1351 = vmatprep.mubr.bf16.mxu1 %v2343_v30 }
  0xd9   :  { %1096 = vmatmul.mubr.bf16.gmra.mxu0 %v2261_v31  ;;  %1352 = vmatmul.mubr.bf16.gmra.mxu1 %v2345_v32 }
  0xda   :  { %1103 = vmatprep.mubr.bf16.mxu0 %v2265_v33  ;;  %1359 = vmatprep.mubr.bf16.mxu1 %v2346_v34  ;;  %v2309_v33 = vld [vmem:[%s3761_s0 + $0x1b0] ss:$8 sps:$4 sm:$0xff]  }
  0xe1   :  { %1104 = vmatmul.mubr.bf16.gmra.mxu0 %v2267_v35  ;;  %1360 = vmatmul.mubr.bf16.gmra.mxu1 %v2348_v36  ;;  %v2369_v35 = vld [vmem:[%s3761_s0 + $0x3b0] ss:$8 sps:$4 sm:$0xff]  }
  0xe2   :  { %1111 = vmatprep.mubr.bf16.mxu0 %v2271_v37  ;;  %1367 = vmatprep.mubr.bf16.mxu1 %v2349_v38  ;;  %v2315_v38 = vld [vmem:[%s3761_s0 + $0x1c4] ss:$8 sps:$4 sm:$0xff]  }
  0xe9   :  { %1112 = vmatmul.mubr.bf16.gmra.mxu0 %v2273_v39  ;;  %1368 = vmatmul.mubr.bf16.gmra.mxu1 %v2351_v40 }
  0xea   :  { %1119 = vmatprep.mubr.bf16.mxu0 %v2277_v41  ;;  %1375 = vmatprep.mubr.bf16.mxu1 %v2352_v42  ;;  %v2372_v42 = vld [vmem:[%s3761_s0 + $0x3c4] ss:$8 sps:$4 sm:$0xff]  }
  0xf1   :  { %1120 = vmatmul.mubr.bf16.gmra.mxu0 %v2279_v43  ;;  %1376 = vmatmul.mubr.bf16.gmra.mxu1 %v2354_v44 }
  0xf2   :  { %1127 = vmatprep.mubr.bf16.mxu0 %v2283_v45  ;;  %1383 = vmatprep.mubr.bf16.mxu1 %v2355_v46 }
  0xf9   :  { %1128 = vmatmul.mubr.bf16.gmra.mxu0 %v2285_v47  ;;  %1384 = vmatmul.mubr.bf16.gmra.mxu1 %v2357_v48 }
  0xfa   :  { %1135 = vmatprep.mubr.bf16.mxu0 %v2289_v49  ;;  %1391 = vmatprep.mubr.bf16.mxu1 %v2358_v50 }
 0x101   :  { %v945_v55 = vpop.f32.mrf.mxu0  ;;  %1136 = vmatmul.mubr.bf16.gmra.mxu0 %v2291_v51  ;;  %v1201_v56 = vpop.f32.mrf.mxu1  ;;  %1392 = vmatmul.mubr.bf16.gmra.mxu1 %v2360_v52  ;;  %v2313_v51 = vld [vmem:[%s3761_s0 + $0x1c0] ss:$8 sps:$4 sm:$0xff]  }
 0x102   :  { %1456 = vst [vmem:[%s3762_s2] sm:$0xff] %v945_v55  ;;  %1143 = vmatprep.mubr.bf16.mxu0 %v2295_v53  ;;  %1520 = vst [vmem:[%s3762_s2 + $0x200] sm:$0xff] %v1201_v56  ;;  %1399 = vmatprep.mubr.bf16.mxu1 %v2361_v54  ;;  %v1717_v63 = vmul.f32 %v945_v55, %v945_v55  ;;  %v2370_v53 = vld [vmem:[%s3761_s0 + $0x3c0] ss:$8 sps:$4 sm:$0xff]   ;;  %v2321_v56 = vld [vmem:[%s3761_s0 + $0x1d4] ss:$8 sps:$4 sm:$0xff]  }
 0x103   :  { %v947_v57 = vpop.f32.mrf.mxu0  ;;  %v1203_v58 = vpop.f32.mrf.mxu1 }
 0x105   :  { %v948_v59 = vpop.f32.mrf.mxu0  ;;  %v1204_v61 = vpop.f32.mrf.mxu1 }
 0x106   :  { %1457 = vst [vmem:[%s3762_s2 + $0x8] sm:$0xff] %v948_v59  ;;  %v1584_v0 = vadd.f32 %v948_v59, %v945_v55  ;;  %v1718_v1 = vmul.f32 %v948_v59, %v948_v59  ;;  %1521 = vst [vmem:[%s3762_s2 + $0x208] sm:$0xff] %v1204_v61 }
 0x107   :  { %v950_v3 = vpop.f32.mrf.mxu0  ;;  %v1206_v4 = vpop.f32.mrf.mxu1 }
 0x108   :  { %v1845_v5 = vadd.f32 %v1718_v1, %v1717_v63 }
 0x109   :  { %v953_v7 = vpop.f32.mrf.mxu0  ;;  %1144 = vmatmul.mubr.bf16.gmra.mxu0 %v2297_v60  ;;  %v1209_v8 = vpop.f32.mrf.mxu1  ;;  %1400 = vmatmul.mubr.bf16.gmra.mxu1 %v2363_v62  ;;  %v2375_v60 = vld [vmem:[%s3761_s0 + $0x3d4] ss:$8 sps:$4 sm:$0xff]  }
 0x10a   :  { %1458 = vst [vmem:[%s3762_s2 + $0x10] sm:$0xff] %v953_v7  ;;  %v1585_v9 = vadd.f32 %v1584_v0, %v953_v7  ;;  %v1719_v10 = vmul.f32 %v953_v7, %v953_v7  ;;  %1151 = vmatprep.mubr.bf16.mxu0 %v2301_v2  ;;  %1522 = vst [vmem:[%s3762_s2 + $0x210] sm:$0xff] %v1209_v8  ;;  %1407 = vmatprep.mubr.bf16.mxu1 %v2364_v6  ;;  %v2373_v7 = vld [vmem:[%s3761_s0 + $0x3d0] ss:$8 sps:$4 sm:$0xff]  }
 0x10b   :  { %v955_v11 = vpop.f32.mrf.mxu0  ;;  %v1211_v12 = vpop.f32.mrf.mxu1 }
 0x10c   :  { %v1846_v13 = vadd.f32 %v1845_v5, %v1719_v10  ;;  %v2319_v5 = vld [vmem:[%s3761_s0 + $0x1d0] ss:$8 sps:$4 sm:$0xff]   ;;  %v2327_v10 = vld [vmem:[%s3761_s0 + $0x1e4] ss:$8 sps:$4 sm:$0xff]  }
 0x10d   :  { %v956_v14 = vpop.f32.mrf.mxu0  ;;  %v1212_v16 = vpop.f32.mrf.mxu1 }
 0x10e   :  { %1459 = vst [vmem:[%s3762_s2 + $0x18] sm:$0xff] %v956_v14  ;;  %v1586_v18 = vadd.f32 %v1585_v9, %v956_v14  ;;  %v1720_v19 = vmul.f32 %v956_v14, %v956_v14  ;;  %1523 = vst [vmem:[%s3762_s2 + $0x218] sm:$0xff] %v1212_v16  ;;  %v2378_v14 = vld [vmem:[%s3761_s0 + $0x3e4] ss:$8 sps:$4 sm:$0xff]  }
 0x10f   :  { %v958_v21 = vpop.f32.mrf.mxu0  ;;  %v1214_v22 = vpop.f32.mrf.mxu1 }
 0x110   :  { %v1847_v23 = vadd.f32 %v1846_v13, %v1720_v19 }
 0x111   :  { %v961_v25 = vpop.f32.mrf.mxu0  ;;  %1152 = vmatmul.mubr.bf16.gmra.mxu0 %v2303_v15  ;;  %v1217_v26 = vpop.f32.mrf.mxu1  ;;  %1408 = vmatmul.mubr.bf16.gmra.mxu1 %v2366_v17 }
 0x112   :  { %1460 = vst [vmem:[%s3762_s2 + $0x20] sm:$0xff] %v961_v25  ;;  %v1587_v27 = vadd.f32 %v1586_v18, %v961_v25  ;;  %v1721_v28 = vmul.f32 %v961_v25, %v961_v25  ;;  %1159 = vmatprep.mubr.bf16.mxu0 %v2307_v20  ;;  %1524 = vst [vmem:[%s3762_s2 + $0x220] sm:$0xff] %v1217_v26  ;;  %1415 = vmatprep.mubr.bf16.mxu1 %v2367_v24  ;;  %v2376_v25 = vld [vmem:[%s3761_s0 + $0x3e0] ss:$8 sps:$4 sm:$0xff]  }
 0x113   :  { %v963_v29 = vpop.f32.mrf.mxu0  ;;  %v1219_v30 = vpop.f32.mrf.mxu1 }
 0x114   :  { %v1848_v31 = vadd.f32 %v1847_v23, %v1721_v28  ;;  %v2325_v23 = vld [vmem:[%s3761_s0 + $0x1e0] ss:$8 sps:$4 sm:$0xff]   ;;  %v2333_v28 = vld [vmem:[%s3761_s0 + $0x1f4] ss:$8 sps:$4 sm:$0xff]  }
 0x115   :  { %v964_v32 = vpop.f32.mrf.mxu0  ;;  %v1220_v34 = vpop.f32.mrf.mxu1 }
 0x116   :  { %1461 = vst [vmem:[%s3762_s2 + $0x28] sm:$0xff] %v964_v32  ;;  %v1588_v36 = vadd.f32 %v1587_v27, %v964_v32  ;;  %v1722_v37 = vmul.f32 %v964_v32, %v964_v32  ;;  %1525 = vst [vmem:[%s3762_s2 + $0x228] sm:$0xff] %v1220_v34  ;;  %v2381_v32 = vld [vmem:[%s3761_s0 + $0x3f4] ss:$8 sps:$4 sm:$0xff]  }
 0x117   :  { %v966_v39 = vpop.f32.mrf.mxu0  ;;  %v1222_v40 = vpop.f32.mrf.mxu1 }
 0x118   :  { %v1849_v41 = vadd.f32 %v1848_v31, %v1722_v37 }
 0x119   :  { %v969_v43 = vpop.f32.mrf.mxu0  ;;  %1160 = vmatmul.mubr.bf16.gmra.mxu0 %v2309_v33  ;;  %v1225_v44 = vpop.f32.mrf.mxu1  ;;  %1416 = vmatmul.mubr.bf16.gmra.mxu1 %v2369_v35 }
 0x11a   :  { %1462 = vst [vmem:[%s3762_s2 + $0x30] sm:$0xff] %v969_v43  ;;  %v1589_v45 = vadd.f32 %v1588_v36, %v969_v43  ;;  %v1723_v46 = vmul.f32 %v969_v43, %v969_v43  ;;  %1167 = vmatprep.mubr.bf16.mxu0 %v2315_v38  ;;  %1526 = vst [vmem:[%s3762_s2 + $0x230] sm:$0xff] %v1225_v44  ;;  %1423 = vmatprep.mubr.bf16.mxu1 %v2372_v42  ;;  %v2379_v43 = vld [vmem:[%s3761_s0 + $0x3f0] ss:$8 sps:$4 sm:$0xff]  }
 0x11b   :  { %v971_v47 = vpop.f32.mrf.mxu0  ;;  %v1227_v48 = vpop.f32.mrf.mxu1 }
 0x11c   :  { %v1850_v49 = vadd.f32 %v1849_v41, %v1723_v46  ;;  %v2331_v41 = vld [vmem:[%s3761_s0 + $0x1f0] ss:$8 sps:$4 sm:$0xff]  }
 0x11d   :  { %v972_v50 = vpop.f32.mrf.mxu0  ;;  %v1228_v52 = vpop.f32.mrf.mxu1 }
 0x11e   :  { %1463 = vst [vmem:[%s3762_s2 + $0x38] sm:$0xff] %v972_v50  ;;  %v1590_v54 = vadd.f32 %v1589_v45, %v972_v50  ;;  %v1724_v55 = vmul.f32 %v972_v50, %v972_v50  ;;  %1527 = vst [vmem:[%s3762_s2 + $0x238] sm:$0xff] %v1228_v52 }
 0x11f   :  { %v974_v57 = vpop.f32.mrf.mxu0  ;;  %v1230_v58 = vpop.f32.mrf.mxu1 }
 0x120   :  { %v1851_v59 = vadd.f32 %v1850_v49, %v1724_v55 }
 0x121   :  { %v977_v61 = vpop.f32.mrf.mxu0  ;;  %1168 = vmatmul.mubr.bf16.gmra.mxu0 %v2313_v51  ;;  %v1233_v62 = vpop.f32.mrf.mxu1  ;;  %1424 = vmatmul.mubr.bf16.gmra.mxu1 %v2370_v53 }
 0x122   :  { %1464 = vst [vmem:[%s3762_s2 + $0x40] sm:$0xff] %v977_v61  ;;  %v1591_v63 = vadd.f32 %v1590_v54, %v977_v61  ;;  %v1725_v0 = vmul.f32 %v977_v61, %v977_v61  ;;  %1175 = vmatprep.mubr.bf16.mxu0 %v2321_v56  ;;  %1528 = vst [vmem:[%s3762_s2 + $0x240] sm:$0xff] %v1233_v62  ;;  %1431 = vmatprep.mubr.bf16.mxu1 %v2375_v60 }
 0x123   :  { %v979_v1 = vpop.f32.mrf.mxu0  ;;  %v1235_v2 = vpop.f32.mrf.mxu1 }
 0x124   :  { %v1852_v3 = vadd.f32 %v1851_v59, %v1725_v0 }
 0x125   :  { %v980_v4 = vpop.f32.mrf.mxu0  ;;  %v1236_v6 = vpop.f32.mrf.mxu1 }
 0x126   :  { %1465 = vst [vmem:[%s3762_s2 + $0x48] sm:$0xff] %v980_v4  ;;  %v1592_v8 = vadd.f32 %v1591_v63, %v980_v4  ;;  %v1726_v9 = vmul.f32 %v980_v4, %v980_v4  ;;  %1529 = vst [vmem:[%s3762_s2 + $0x248] sm:$0xff] %v1236_v6 }
 0x127   :  { %v982_v11 = vpop.f32.mrf.mxu0  ;;  %v1238_v12 = vpop.f32.mrf.mxu1 }
 0x128   :  { %v1853_v13 = vadd.f32 %v1852_v3, %v1726_v9 }
 0x129   :  { %v985_v15 = vpop.f32.mrf.mxu0  ;;  %1176 = vmatmul.mubr.bf16.gmra.mxu0 %v2319_v5  ;;  %v1241_v16 = vpop.f32.mrf.mxu1  ;;  %1432 = vmatmul.mubr.bf16.gmra.mxu1 %v2373_v7 }
 0x12a   :  { %1466 = vst [vmem:[%s3762_s2 + $0x50] sm:$0xff] %v985_v15  ;;  %v1593_v17 = vadd.f32 %v1592_v8, %v985_v15  ;;  %v1727_v18 = vmul.f32 %v985_v15, %v985_v15  ;;  %1183 = vmatprep.mubr.bf16.mxu0 %v2327_v10  ;;  %1530 = vst [vmem:[%s3762_s2 + $0x250] sm:$0xff] %v1241_v16  ;;  %1439 = vmatprep.mubr.bf16.mxu1 %v2378_v14 }
 0x12b   :  { %v987_v19 = vpop.f32.mrf.mxu0  ;;  %v1243_v20 = vpop.f32.mrf.mxu1 }
 0x12c   :  { %v1854_v21 = vadd.f32 %v1853_v13, %v1727_v18 }
 0x12d   :  { %v988_v22 = vpop.f32.mrf.mxu0  ;;  %v1244_v24 = vpop.f32.mrf.mxu1 }
 0x12e   :  { %1467 = vst [vmem:[%s3762_s2 + $0x58] sm:$0xff] %v988_v22  ;;  %v1594_v26 = vadd.f32 %v1593_v17, %v988_v22  ;;  %v1728_v27 = vmul.f32 %v988_v22, %v988_v22  ;;  %1531 = vst [vmem:[%s3762_s2 + $0x258] sm:$0xff] %v1244_v24 }
 0x12f   :  { %v990_v29 = vpop.f32.mrf.mxu0  ;;  %v1246_v30 = vpop.f32.mrf.mxu1 }
 0x130   :  { %v1855_v31 = vadd.f32 %v1854_v21, %v1728_v27 }
 0x131   :  { %v993_v33 = vpop.f32.mrf.mxu0  ;;  %1184 = vmatmul.mubr.bf16.gmra.mxu0 %v2325_v23  ;;  %v2950_v34 = vpop.f32.mrf.mxu1  ;;  %1440 = vmatmul.mubr.bf16.gmra.mxu1 %v2376_v25 }
 0x132   :  { %1468 = vst [vmem:[%s3762_s2 + $0x60] sm:$0xff] %v993_v33  ;;  %v1595_v35 = vadd.f32 %v1594_v26, %v993_v33  ;;  %v1729_v36 = vmul.f32 %v993_v33, %v993_v33  ;;  %1191 = vmatprep.mubr.bf16.mxu0 %v2333_v28  ;;  %1532 = vst [vmem:[%s3762_s2 + $0x260] sm:$0xff] %v2950_v34  ;;  %1447 = vmatprep.mubr.bf16.mxu1 %v2381_v32 }
 0x133   :  { %v995_v37 = vpop.f32.mrf.mxu0  ;;  %v1251_v38 = vpop.f32.mrf.mxu1 }
 0x134   :  { %v1856_v39 = vadd.f32 %v1855_v31, %v1729_v36 }
 0x135   :  { %v996_v40 = vpop.f32.mrf.mxu0  ;;  %v2962_v42 = vpop.f32.mrf.mxu1 }
 0x136   :  { %1469 = vst [vmem:[%s3762_s2 + $0x68] sm:$0xff] %v996_v40  ;;  %v1596_v44 = vadd.f32 %v1595_v35, %v996_v40  ;;  %v1730_v45 = vmul.f32 %v996_v40, %v996_v40  ;;  %1533 = vst [vmem:[%s3762_s2 + $0x268] sm:$0xff] %v2962_v42 }
 0x137   :  { %v998_v46 = vpop.f32.mrf.mxu0  ;;  %v1254_v47 = vpop.f32.mrf.mxu1 }
 0x138   :  { %v1857_v48 = vadd.f32 %v1856_v39, %v1730_v45 }
 0x139   :  { %v1001_v49 = vpop.f32.mrf.mxu0  ;;  %1192 = vmatmul.mubr.bf16.gmra.mxu0 %v2331_v41  ;;  %v2974_v50 = vpop.f32.mrf.mxu1  ;;  %1448 = vmatmul.mubr.bf16.gmra.mxu1 %v2379_v43 }
 0x13a   :  { %1470 = vst [vmem:[%s3762_s2 + $0x70] sm:$0xff] %v1001_v49  ;;  %v1597_v51 = vadd.f32 %v1596_v44, %v1001_v49  ;;  %v1731_v52 = vmul.f32 %v1001_v49, %v1001_v49  ;;  %1534 = vst [vmem:[%s3762_s2 + $0x270] sm:$0xff] %v2974_v50 }
 0x13b   :  { %v1003_v53 = vpop.f32.mrf.mxu0  ;;  %v1259_v54 = vpop.f32.mrf.mxu1 }
 0x13c   :  { %v1858_v55 = vadd.f32 %v1857_v48, %v1731_v52 }
 0x13d   :  { %v1004_v56 = vpop.f32.mrf.mxu0  ;;  %v2983_v57 = vpop.f32.mrf.mxu1 }
 0x13e   :  { %1471 = vst [vmem:[%s3762_s2 + $0x78] sm:$0xff] %v1004_v56  ;;  %v1598_v58 = vadd.f32 %v1597_v51, %v1004_v56  ;;  %v1732_v59 = vmul.f32 %v1004_v56, %v1004_v56  ;;  %1535 = vst [vmem:[%s3762_s2 + $0x278] sm:$0xff] %v2983_v57 }
 0x13f   :  { %v1006_v60 = vpop.f32.mrf.mxu0  ;;  %v1262_v61 = vpop.f32.mrf.mxu1 }
 0x140   :  { %v1859_v62 = vadd.f32 %v1858_v55, %v1732_v59 }
 0x141   :  { %v1009_v63 = vpop.f32.mrf.mxu0  ;;  %v2992_v0 = vpop.f32.mrf.mxu1 }
 0x142   :  { %1472 = vst [vmem:[%s3762_s2 + $0x80] sm:$0xff] %v1009_v63  ;;  %v1599_v1 = vadd.f32 %v1598_v58, %v1009_v63  ;;  %v1733_v2 = vmul.f32 %v1009_v63, %v1009_v63  ;;  %1536 = vst [vmem:[%s3762_s2 + $0x280] sm:$0xff] %v2992_v0 }
 0x143   :  { %v1011_v3 = vpop.f32.mrf.mxu0  ;;  %v1267_v4 = vpop.f32.mrf.mxu1 }
 0x144   :  { %v1860_v5 = vadd.f32 %v1859_v62, %v1733_v2 }
 0x145   :  { %v1012_v6 = vpop.f32.mrf.mxu0  ;;  %v3001_v7 = vpop.f32.mrf.mxu1 }
 0x146   :  { %1473 = vst [vmem:[%s3762_s2 + $0x88] sm:$0xff] %v1012_v6  ;;  %v1600_v8 = vadd.f32 %v1599_v1, %v1012_v6  ;;  %v1734_v9 = vmul.f32 %v1012_v6, %v1012_v6  ;;  %1537 = vst [vmem:[%s3762_s2 + $0x288] sm:$0xff] %v3001_v7 }
 0x147   :  { %v1014_v10 = vpop.f32.mrf.mxu0  ;;  %v1270_v11 = vpop.f32.mrf.mxu1 }
 0x148   :  { %v1861_v12 = vadd.f32 %v1860_v5, %v1734_v9 }
 0x149   :  { %v1017_v13 = vpop.f32.mrf.mxu0  ;;  %v3010_v14 = vpop.f32.mrf.mxu1 }
 0x14a   :  { %1474 = vst [vmem:[%s3762_s2 + $0x90] sm:$0xff] %v1017_v13  ;;  %v1601_v15 = vadd.f32 %v1600_v8, %v1017_v13  ;;  %v1735_v16 = vmul.f32 %v1017_v13, %v1017_v13  ;;  %1538 = vst [vmem:[%s3762_s2 + $0x290] sm:$0xff] %v3010_v14 }
 0x14b   :  { %v1019_v17 = vpop.f32.mrf.mxu0  ;;  %v1275_v18 = vpop.f32.mrf.mxu1 }
 0x14c   :  { %v1862_v19 = vadd.f32 %v1861_v12, %v1735_v16 }
 0x14d   :  { %v1020_v20 = vpop.f32.mrf.mxu0  ;;  %v3019_v21 = vpop.f32.mrf.mxu1 }
 0x14e   :  { %1475 = vst [vmem:[%s3762_s2 + $0x98] sm:$0xff] %v1020_v20  ;;  %v1602_v22 = vadd.f32 %v1601_v15, %v1020_v20  ;;  %v1736_v23 = vmul.f32 %v1020_v20, %v1020_v20  ;;  %1539 = vst [vmem:[%s3762_s2 + $0x298] sm:$0xff] %v3019_v21 }
 0x14f   :  { %v1022_v24 = vpop.f32.mrf.mxu0  ;;  %v1278_v25 = vpop.f32.mrf.mxu1 }
 0x150   :  { %v1863_v26 = vadd.f32 %v1862_v19, %v1736_v23 }
 0x151   :  { %v1025_v27 = vpop.f32.mrf.mxu0  ;;  %v3028_v28 = vpop.f32.mrf.mxu1 }
 0x152   :  { %1476 = vst [vmem:[%s3762_s2 + $0xa0] sm:$0xff] %v1025_v27  ;;  %v1603_v29 = vadd.f32 %v1602_v22, %v1025_v27  ;;  %v1737_v30 = vmul.f32 %v1025_v27, %v1025_v27  ;;  %1540 = vst [vmem:[%s3762_s2 + $0x2a0] sm:$0xff] %v3028_v28 }
 0x153   :  { %v1027_v31 = vpop.f32.mrf.mxu0  ;;  %v1283_v32 = vpop.f32.mrf.mxu1 }
 0x154   :  { %v1864_v33 = vadd.f32 %v1863_v26, %v1737_v30 }
 0x155   :  { %v1028_v35 = vpop.f32.mrf.mxu0  ;;  %v3037_v36 = vpop.f32.mrf.mxu1 }
 0x156   :  { %1477 = vst [vmem:[%s3762_s2 + $0xa8] sm:$0xff] %v1028_v35  ;;  %v1604_v37 = vadd.f32 %v1603_v29, %v1028_v35  ;;  %v1738_v38 = vmul.f32 %v1028_v35, %v1028_v35  ;;  %1541 = vst [vmem:[%s3762_s2 + $0x2a8] sm:$0xff] %v3037_v36 }
 0x157   :  { %v1030_v39 = vpop.f32.mrf.mxu0  ;;  %v1286_v40 = vpop.f32.mrf.mxu1 }
 0x158   :  { %v1865_v41 = vadd.f32 %v1864_v33, %v1738_v38 }
 0x159   :  { %v1033_v43 = vpop.f32.mrf.mxu0  ;;  %v3046_v44 = vpop.f32.mrf.mxu1 }
 0x15a   :  { %1478 = vst [vmem:[%s3762_s2 + $0xb0] sm:$0xff] %v1033_v43  ;;  %v1605_v45 = vadd.f32 %v1604_v37, %v1033_v43  ;;  %v1739_v46 = vmul.f32 %v1033_v43, %v1033_v43  ;;  %1542 = vst [vmem:[%s3762_s2 + $0x2b0] sm:$0xff] %v3046_v44 }
 0x15b   :  { %v1035_v47 = vpop.f32.mrf.mxu0  ;;  %v1291_v48 = vpop.f32.mrf.mxu1 }
 0x15c   :  { %v1866_v49 = vadd.f32 %v1865_v41, %v1739_v46 }
 0x15d   :  { %v1036_v51 = vpop.f32.mrf.mxu0  ;;  %v3055_v52 = vpop.f32.mrf.mxu1 }
 0x15e   :  { %1479 = vst [vmem:[%s3762_s2 + $0xb8] sm:$0xff] %v1036_v51  ;;  %v1606_v53 = vadd.f32 %v1605_v45, %v1036_v51  ;;  %v1740_v54 = vmul.f32 %v1036_v51, %v1036_v51  ;;  %1543 = vst [vmem:[%s3762_s2 + $0x2b8] sm:$0xff] %v3055_v52 }
 0x15f   :  { %v1038_v55 = vpop.f32.mrf.mxu0  ;;  %v1294_v56 = vpop.f32.mrf.mxu1 }
 0x160   :  { %v1867_v58 = vadd.f32 %v1866_v49, %v1740_v54 }
 0x161   :  { %v1041_v59 = vpop.f32.mrf.mxu0  ;;  %v3064_v60 = vpop.f32.mrf.mxu1 }
 0x162   :  { %1480 = vst [vmem:[%s3762_s2 + $0xc0] sm:$0xff] %v1041_v59  ;;  %v1607_v61 = vadd.f32 %v1606_v53, %v1041_v59  ;;  %v1741_v62 = vmul.f32 %v1041_v59, %v1041_v59  ;;  %1544 = vst [vmem:[%s3762_s2 + $0x2c0] sm:$0xff] %v3064_v60 }
 0x163   :  { %v1043_v63 = vpop.f32.mrf.mxu0  ;;  %v1299_v1 = vpop.f32.mrf.mxu1 }
 0x164   :  { %v1868_v2 = vadd.f32 %v1867_v58, %v1741_v62 }
 0x165   :  { %v1044_v3 = vpop.f32.mrf.mxu0  ;;  %v3073_v4 = vpop.f32.mrf.mxu1 }
 0x166   :  { %1481 = vst [vmem:[%s3762_s2 + $0xc8] sm:$0xff] %v1044_v3  ;;  %v1608_v5 = vadd.f32 %v1607_v61, %v1044_v3  ;;  %v1742_v6 = vmul.f32 %v1044_v3, %v1044_v3  ;;  %1545 = vst [vmem:[%s3762_s2 + $0x2c8] sm:$0xff] %v3073_v4 }
 0x167   :  { %v1046_v8 = vpop.f32.mrf.mxu0  ;;  %v1302_v9 = vpop.f32.mrf.mxu1 }
 0x168   :  { %v1869_v10 = vadd.f32 %v1868_v2, %v1742_v6 }
 0x169   :  { %v1049_v11 = vpop.f32.mrf.mxu0  ;;  %v3082_v12 = vpop.f32.mrf.mxu1 }
 0x16a   :  { %1482 = vst [vmem:[%s3762_s2 + $0xd0] sm:$0xff] %v1049_v11  ;;  %v1609_v13 = vadd.f32 %v1608_v5, %v1049_v11  ;;  %v1743_v15 = vmul.f32 %v1049_v11, %v1049_v11  ;;  %1546 = vst [vmem:[%s3762_s2 + $0x2d0] sm:$0xff] %v3082_v12 }
 0x16b   :  { %v1051_v16 = vpop.f32.mrf.mxu0  ;;  %v1307_v17 = vpop.f32.mrf.mxu1 }
 0x16c   :  { %v1870_v18 = vadd.f32 %v1869_v10, %v1743_v15 }
 0x16d   :  { %v1052_v19 = vpop.f32.mrf.mxu0  ;;  %v3091_v20 = vpop.f32.mrf.mxu1 }
 0x16e   :  { %1483 = vst [vmem:[%s3762_s2 + $0xd8] sm:$0xff] %v1052_v19  ;;  %v1610_v22 = vadd.f32 %v1609_v13, %v1052_v19  ;;  %v1744_v23 = vmul.f32 %v1052_v19, %v1052_v19  ;;  %1547 = vst [vmem:[%s3762_s2 + $0x2d8] sm:$0xff] %v3091_v20 }
 0x16f   :  { %v1054_v24 = vpop.f32.mrf.mxu0  ;;  %v1310_v25 = vpop.f32.mrf.mxu1 }
 0x170   :  { %v1871_v26 = vadd.f32 %v1870_v18, %v1744_v23 }
 0x171   :  { %v1057_v27 = vpop.f32.mrf.mxu0  ;;  %v3100_v29 = vpop.f32.mrf.mxu1 }
 0x172   :  { %1484 = vst [vmem:[%s3762_s2 + $0xe0] sm:$0xff] %v1057_v27  ;;  %v1611_v30 = vadd.f32 %v1610_v22, %v1057_v27  ;;  %v1745_v31 = vmul.f32 %v1057_v27, %v1057_v27  ;;  %1548 = vst [vmem:[%s3762_s2 + $0x2e0] sm:$0xff] %v3100_v29 }
 0x173   :  { %v1059_v32 = vpop.f32.mrf.mxu0  ;;  %v1315_v33 = vpop.f32.mrf.mxu1 }
 0x174   :  { %v1872_v35 = vadd.f32 %v1871_v26, %v1745_v31 }
 0x175   :  { %v1060_v37 = vpop.f32.mrf.mxu0  ;;  %v3109_v38 = vpop.f32.mrf.mxu1 }
 0x176   :  { %1485 = vst [vmem:[%s3762_s2 + $0xe8] sm:$0xff] %v1060_v37  ;;  %v1612_v39 = vadd.f32 %v1611_v30, %v1060_v37  ;;  %v1746_v40 = vmul.f32 %v1060_v37, %v1060_v37  ;;  %1549 = vst [vmem:[%s3762_s2 + $0x2e8] sm:$0xff] %v3109_v38 }
 0x177   :  { %v1062_v41 = vpop.f32.mrf.mxu0  ;;  %v1318_v43 = vpop.f32.mrf.mxu1 }
 0x178   :  { %v1873_v45 = vadd.f32 %v1872_v35, %v1746_v40 }
 0x179   :  { %v1065_v46 = vpop.f32.mrf.mxu0  ;;  %v3118_v47 = vpop.f32.mrf.mxu1 }
 0x17a   :  { %1486 = vst [vmem:[%s3762_s2 + $0xf0] sm:$0xff] %v1065_v46  ;;  %v1613_v48 = vadd.f32 %v1612_v39, %v1065_v46  ;;  %v1747_v49 = vmul.f32 %v1065_v46, %v1065_v46  ;;  %1550 = vst [vmem:[%s3762_s2 + $0x2f0] sm:$0xff] %v3118_v47 }
 0x17b   :  { %v1067_v51 = vpop.f32.mrf.mxu0  ;;  %v1323_v53 = vpop.f32.mrf.mxu1 }
 0x17c   :  { %v1874_v54 = vadd.f32 %v1873_v45, %v1747_v49 }
 0x17d   :  { %v1068_v55 = vpop.f32.mrf.mxu0  ;;  %v3127_v56 = vpop.f32.mrf.mxu1 }
 0x17e   :  { %1487 = vst [vmem:[%s3762_s2 + $0xf8] sm:$0xff] %v1068_v55  ;;  %v3132_v58 = vadd.f32 %v1613_v48, %v1068_v55  ;;  %v1748_v59 = vmul.f32 %v1068_v55, %v1068_v55  ;;  %1551 = vst [vmem:[%s3762_s2 + $0x2f8] sm:$0xff] %v3127_v56 }
 0x17f   :  { %v1070_v61 = vpop.f32.mrf.mxu0  ;;  %v1326_v62 = vpop.f32.mrf.mxu1 }
 0x180   :  { %v3138_v63 = vadd.f32 %v1874_v54, %v1748_v59 }
 0x181   :  { %v3140_v1 = vpop.f32.mrf.mxu0  ;;  %v3142_v2 = vpop.f32.mrf.mxu1 }
 0x182   :  { %1488 = vst [vmem:[%s3762_s2 + $0x100] sm:$0xff] %v3140_v1  ;;  %1552 = vst [vmem:[%s3762_s2 + $0x300] sm:$0xff] %v3142_v2 }
 0x183   :  { %v1075_v3 = vpop.f32.mrf.mxu0  ;;  %v1331_v5 = vpop.f32.mrf.mxu1 }
 0x185   :  { %v3152_v6 = vpop.f32.mrf.mxu0  ;;  %v3154_v8 = vpop.f32.mrf.mxu1 }
 0x186   :  { %1489 = vst [vmem:[%s3762_s2 + $0x108] sm:$0xff] %v3152_v6  ;;  %1553 = vst [vmem:[%s3762_s2 + $0x308] sm:$0xff] %v3154_v8 }
 0x187   :  { %v1078_v9 = vpop.f32.mrf.mxu0  ;;  %v1334_v10 = vpop.f32.mrf.mxu1 }
 0x189   :  { %v3164_v11 = vpop.f32.mrf.mxu0  ;;  %v3166_v13 = vpop.f32.mrf.mxu1 }
 0x18a   :  { %1490 = vst [vmem:[%s3762_s2 + $0x110] sm:$0xff] %v3164_v11  ;;  %1554 = vst [vmem:[%s3762_s2 + $0x310] sm:$0xff] %v3166_v13 }
 0x18b   :  { %v1083_v15 = vpop.f32.mrf.mxu0  ;;  %v1339_v16 = vpop.f32.mrf.mxu1 }
 0x18d   :  { %v3176_v17 = vpop.f32.mrf.mxu0  ;;  %v3178_v18 = vpop.f32.mrf.mxu1 }
 0x18e   :  { %1491 = vst [vmem:[%s3762_s2 + $0x118] sm:$0xff] %v3176_v17  ;;  %1555 = vst [vmem:[%s3762_s2 + $0x318] sm:$0xff] %v3178_v18 }
 0x18f   :  { %v1086_v19 = vpop.f32.mrf.mxu0  ;;  %v1342_v22 = vpop.f32.mrf.mxu1 }
 0x191   :  { %v3188_v23 = vpop.f32.mrf.mxu0  ;;  %v3190_v24 = vpop.f32.mrf.mxu1 }
 0x192   :  { %1492 = vst [vmem:[%s3762_s2 + $0x120] sm:$0xff] %v3188_v23  ;;  %1556 = vst [vmem:[%s3762_s2 + $0x320] sm:$0xff] %v3190_v24 }
 0x193   :  { %v1091_v25 = vpop.f32.mrf.mxu0  ;;  %v1347_v26 = vpop.f32.mrf.mxu1 }
 0x195   :  { %v3200_v27 = vpop.f32.mrf.mxu0  ;;  %v3202_v30 = vpop.f32.mrf.mxu1 }
 0x196   :  { %1493 = vst [vmem:[%s3762_s2 + $0x128] sm:$0xff] %v3200_v27  ;;  %1557 = vst [vmem:[%s3762_s2 + $0x328] sm:$0xff] %v3202_v30 }
 0x197   :  { %v1094_v31 = vpop.f32.mrf.mxu0  ;;  %v1350_v32 = vpop.f32.mrf.mxu1 }
 0x199   :  { %v3212_v33 = vpop.f32.mrf.mxu0  ;;  %v3214_v35 = vpop.f32.mrf.mxu1 }
 0x19a   :  { %1494 = vst [vmem:[%s3762_s2 + $0x130] sm:$0xff] %v3212_v33  ;;  %1558 = vst [vmem:[%s3762_s2 + $0x330] sm:$0xff] %v3214_v35 }
 0x19b   :  { %v1099_v37 = vpop.f32.mrf.mxu0  ;;  %v1355_v39 = vpop.f32.mrf.mxu1 }
 0x19d   :  { %v3224_v40 = vpop.f32.mrf.mxu0  ;;  %v3226_v41 = vpop.f32.mrf.mxu1 }
 0x19e   :  { %1495 = vst [vmem:[%s3762_s2 + $0x138] sm:$0xff] %v3224_v40  ;;  %1559 = vst [vmem:[%s3762_s2 + $0x338] sm:$0xff] %v3226_v41 }
 0x19f   :  { %v1102_v43 = vpop.f32.mrf.mxu0  ;;  %v1358_v45 = vpop.f32.mrf.mxu1 }
 0x1a1   :  { %v3236_v46 = vpop.f32.mrf.mxu0  ;;  %v3238_v48 = vpop.f32.mrf.mxu1 }
 0x1a2   :  { %1496 = vst [vmem:[%s3762_s2 + $0x140] sm:$0xff] %v3236_v46  ;;  %1560 = vst [vmem:[%s3762_s2 + $0x340] sm:$0xff] %v3238_v48 }
 0x1a3   :  { %v1107_v49 = vpop.f32.mrf.mxu0  ;;  %v1363_v51 = vpop.f32.mrf.mxu1 }
 0x1a5   :  { %v3248_v53 = vpop.f32.mrf.mxu0  ;;  %v3250_v54 = vpop.f32.mrf.mxu1 }
 0x1a6   :  { %1497 = vst [vmem:[%s3762_s2 + $0x148] sm:$0xff] %v3248_v53  ;;  %1561 = vst [vmem:[%s3762_s2 + $0x348] sm:$0xff] %v3250_v54 }
 0x1a7   :  { %v1110_v55 = vpop.f32.mrf.mxu0  ;;  %v1366_v59 = vpop.f32.mrf.mxu1 }
 0x1a9   :  { %v3260_v61 = vpop.f32.mrf.mxu0  ;;  %v3262_v62 = vpop.f32.mrf.mxu1 }
 0x1aa   :  { %1498 = vst [vmem:[%s3762_s2 + $0x150] sm:$0xff] %v3260_v61  ;;  %1562 = vst [vmem:[%s3762_s2 + $0x350] sm:$0xff] %v3262_v62 }
 0x1ab   :  { %v1115_v3 = vpop.f32.mrf.mxu0  ;;  %v1371_v5 = vpop.f32.mrf.mxu1 }
 0x1ac   :  { %v1749_v3 = vmul.f32 %v3140_v1, %v3140_v1 }
 0x1ad   :  { %v3272_v9 = vpop.f32.mrf.mxu0  ;;  %v3274_v10 = vpop.f32.mrf.mxu1 }
 0x1ae   :  { %1499 = vst [vmem:[%s3762_s2 + $0x158] sm:$0xff] %v3272_v9  ;;  %1563 = vst [vmem:[%s3762_s2 + $0x358] sm:$0xff] %v3274_v10 }
 0x1af   :  { %v1118_v15 = vpop.f32.mrf.mxu0  ;;  %v1374_v16 = vpop.f32.mrf.mxu1 }
 0x1b0   :  { %v1615_v16 = vadd.f32 %v3132_v58, %v3140_v1 }
 0x1b1   :  { %v3284_v19 = vpop.f32.mrf.mxu0  ;;  %v3286_v22 = vpop.f32.mrf.mxu1 }
 0x1b2   :  { %1500 = vst [vmem:[%s3762_s2 + $0x160] sm:$0xff] %v3284_v19  ;;  %1564 = vst [vmem:[%s3762_s2 + $0x360] sm:$0xff] %v3286_v22 }
 0x1b3   :  { %v1123_v25 = vpop.f32.mrf.mxu0  ;;  %v1379_v26 = vpop.f32.mrf.mxu1 }
 0x1b4   :  { %v1750_v25 = vmul.f32 %v3152_v6, %v3152_v6 }
 0x1b5   :  { %v3296_v31 = vpop.f32.mrf.mxu0  ;;  %v3298_v32 = vpop.f32.mrf.mxu1 }
 0x1b6   :  { %1501 = vst [vmem:[%s3762_s2 + $0x168] sm:$0xff] %v3296_v31  ;;  %1565 = vst [vmem:[%s3762_s2 + $0x368] sm:$0xff] %v3298_v32 }
 0x1b7   :  { %v1126_v37 = vpop.f32.mrf.mxu0  ;;  %v1382_v39 = vpop.f32.mrf.mxu1 }
 0x1b8   :  { %v1876_v39 = vadd.f32 %v3138_v63, %v1749_v3 }
 0x1b9   :  { %v3308_v43 = vpop.f32.mrf.mxu0  ;;  %v3310_v45 = vpop.f32.mrf.mxu1 }
 0x1ba   :  { %3773 = vst [vmem:[#allocation2_spill] sm:$0xff] %v3310_v45  ;;  %1502 = vst [vmem:[%s3762_s2 + $0x170] sm:$0xff] %v3308_v43 }
 0x1bb   :  { %1566 = vst [vmem:[%s3762_s2 + $0x370] sm:$0xff] %v3310_v45  ;;  %v1131_v49 = vpop.f32.mrf.mxu0  ;;  %v1387_v51 = vpop.f32.mrf.mxu1  ;;  %v1753_v45 = vmul.f32 %v3188_v23, %v3188_v23 }
 0x1bc   :  { %v1616_v49 = vadd.f32 %v1615_v16, %v3152_v6  ;;  %v1751_v51 = vmul.f32 %v3164_v11, %v3164_v11  ;;  %v1752_v6 = vmul.f32 %v3176_v17, %v3176_v17 }
 0x1bd   :  { %v3320_v55 = vpop.f32.mrf.mxu0  ;;  %v3322_v59 = vpop.f32.mrf.mxu1 }
 0x1be   :  { %3774 = vst [vmem:[#allocation3_spill] sm:$0xff] %v3322_v59  ;;  %1503 = vst [vmem:[%s3762_s2 + $0x178] sm:$0xff] %v3320_v55  ;;  %v1617_v63 = vadd.f32 %v1616_v49, %v3164_v11 }
 0x1bf   :  { %1567 = vst [vmem:[%s3762_s2 + $0x378] sm:$0xff] %v3322_v59  ;;  %v1134_v5 = vpop.f32.mrf.mxu0  ;;  %v1390_v15 = vpop.f32.mrf.mxu1 }
 0x1c0   :  { %v1877_v5 = vadd.f32 %v1876_v39, %v1750_v25  ;;  %v1618_v59 = vadd.f32 %v1617_v63, %v3176_v17  ;;  %v1754_v17 = vmul.f32 %v3200_v27, %v3200_v27  ;;  %v1755_v63 = vmul.f32 %v3212_v33, %v3212_v33 }
 0x1c1   :  { %v3338_v26 = vpop.f32.mrf.mxu0  ;;  %v3340_v37 = vpop.f32.mrf.mxu1 }
 0x1c2   :  { %1504 = vst [vmem:[%s3762_s2 + $0x180] sm:$0xff] %v3338_v26  ;;  %1568 = vst [vmem:[%s3762_s2 + $0x380] sm:$0xff] %v3340_v37  ;;  %v1878_v16 = vadd.f32 %v1877_v5, %v1751_v51  ;;  %v1619_v49 = vadd.f32 %v1618_v59, %v3188_v23 }
 0x1c3   :  { %v1139_v58 = vpop.f32.mrf.mxu0  ;;  %v1395_v1 = vpop.f32.mrf.mxu1 }
 0x1c4   :  { %v1879_v39 = vadd.f32 %v1878_v16, %v1752_v6  ;;  %v1620_v5 = vadd.f32 %v1619_v49, %v3200_v27  ;;  %v1756_v27 = vmul.f32 %v3224_v40, %v3224_v40  ;;  %v1757_v49 = vmul.f32 %v3236_v46, %v3236_v46 }
 0x1c5   :  { %v3357_v3 = vpop.f32.mrf.mxu0  ;;  %v3359_v15 = vpop.f32.mrf.mxu1 }
 0x1c6   :  { %1505 = vst [vmem:[%s3762_s2 + $0x188] sm:$0xff] %v3357_v3  ;;  %1569 = vst [vmem:[%s3762_s2 + $0x388] sm:$0xff] %v3359_v15  ;;  %v1880_v1 = vadd.f32 %v1879_v39, %v1753_v45  ;;  %v1621_v45 = vadd.f32 %v1620_v5, %v3212_v33 }
 0x1c7   :  { %v1142_v11 = vpop.f32.mrf.mxu0  ;;  %v1398_v25 = vpop.f32.mrf.mxu1 }
 0x1c8   :  { %v1881_v6 = vadd.f32 %v1880_v1, %v1754_v17  ;;  %v1622_v39 = vadd.f32 %v1621_v45, %v3224_v40  ;;  %v1758_v40 = vmul.f32 %v3248_v53, %v3248_v53  ;;  %v1759_v45 = vmul.f32 %v3260_v61, %v3260_v61 }
 0x1c9   :  { %v3375_v51 = vpop.f32.mrf.mxu0  ;;  %v3377_v58 = vpop.f32.mrf.mxu1 }
 0x1ca   :  { %1506 = vst [vmem:[%s3762_s2 + $0x190] sm:$0xff] %v3375_v51  ;;  %1570 = vst [vmem:[%s3762_s2 + $0x390] sm:$0xff] %v3377_v58  ;;  %v1882_v25 = vadd.f32 %v1881_v6, %v1755_v63  ;;  %v1623_v5 = vadd.f32 %v1622_v39, %v3236_v46 }
 0x1cb   :  { %v1147_v23 = vpop.f32.mrf.mxu0  ;;  %v1403_v59 = vpop.f32.mrf.mxu1 }
 0x1cc   :  { %v1883_v1 = vadd.f32 %v1882_v25, %v1756_v27  ;;  %v1624_v6 = vadd.f32 %v1623_v5, %v3248_v53  ;;  %v1760_v53 = vmul.f32 %v3272_v9, %v3272_v9  ;;  %v1761_v5 = vmul.f32 %v3284_v19, %v3284_v19 }
 0x1cd   :  { %v3393_v16 = vpop.f32.mrf.mxu0  ;;  %v3395_v11 = vpop.f32.mrf.mxu1 }
 0x1ce   :  { %1507 = vst [vmem:[%s3762_s2 + $0x198] sm:$0xff] %v3393_v16  ;;  %1571 = vst [vmem:[%s3762_s2 + $0x398] sm:$0xff] %v3395_v11  ;;  %v1884_v59 = vadd.f32 %v1883_v1, %v1757_v49  ;;  %v1625_v39 = vadd.f32 %v1624_v6, %v3260_v61 }
 0x1cf   :  { %v1150_v33 = vpop.f32.mrf.mxu0  ;;  %v1406_v17 = vpop.f32.mrf.mxu1 }
 0x1d0   :  { %v1885_v25 = vadd.f32 %v1884_v59, %v1758_v40  ;;  %v1626_v1 = vadd.f32 %v1625_v39, %v3272_v9  ;;  %v1762_v9 = vmul.f32 %v3296_v31, %v3296_v31  ;;  %v1763_v39 = vmul.f32 %v3308_v43, %v3308_v43 }
 0x1d1   :  { %v3411_v63 = vpop.f32.mrf.mxu0  ;;  %v3413_v23 = vpop.f32.mrf.mxu1 }
 0x1d2   :  { %1508 = vst [vmem:[%s3762_s2 + $0x1a0] sm:$0xff] %v3411_v63  ;;  %1572 = vst [vmem:[%s3762_s2 + $0x3a0] sm:$0xff] %v3413_v23  ;;  %v1886_v17 = vadd.f32 %v1885_v25, %v1759_v45  ;;  %v1627_v6 = vadd.f32 %v1626_v1, %v3284_v19 }
 0x1d3   :  { %v1155_v46 = vpop.f32.mrf.mxu0  ;;  %v1411_v27 = vpop.f32.mrf.mxu1 }
 0x1d4   :  { %v1887_v59 = vadd.f32 %v1886_v17, %v1760_v53  ;;  %v1628_v25 = vadd.f32 %v1627_v6, %v3296_v31  ;;  %v1764_v31 = vmul.f32 %v3320_v55, %v3320_v55  ;;  %v1765_v6 = vmul.f32 %v3338_v26, %v3338_v26 }
 0x1d5   :  { %v3429_v49 = vpop.f32.mrf.mxu0  ;;  %v3431_v33 = vpop.f32.mrf.mxu1 }
 0x1d6   :  { %1509 = vst [vmem:[%s3762_s2 + $0x1a8] sm:$0xff] %v3429_v49  ;;  %1573 = vst [vmem:[%s3762_s2 + $0x3a8] sm:$0xff] %v3431_v33  ;;  %v1888_v27 = vadd.f32 %v1887_v59, %v1761_v5  ;;  %v1629_v1 = vadd.f32 %v1628_v25, %v3308_v43 }
 0x1d7   :  { %v1158_v61 = vpop.f32.mrf.mxu0  ;;  %v1414_v40 = vpop.f32.mrf.mxu1 }
 0x1d8   :  { %v1889_v17 = vadd.f32 %v1888_v27, %v1762_v9  ;;  %v1630_v59 = vadd.f32 %v1629_v1, %v3320_v55  ;;  %v1766_v55 = vmul.f32 %v3357_v3, %v3357_v3  ;;  %v1767_v1 = vmul.f32 %v3375_v51, %v3375_v51 }
 0x1d9   :  { %v1161_v45 = vpop.f32.mrf.mxu0  ;;  %v3447_v46 = vpop.f32.mrf.mxu1 }
 0x1da   :  { %1510 = vst [vmem:[%s3762_s2 + $0x1b0] sm:$0xff] %v1161_v45  ;;  %1574 = vst [vmem:[%s3762_s2 + $0x3b0] sm:$0xff] %v3447_v46  ;;  %v1890_v40 = vadd.f32 %v1889_v17, %v1763_v39  ;;  %v1631_v25 = vadd.f32 %v1630_v59, %v3338_v26 }
 0x1db   :  { %v1163_v19 = vpop.f32.mrf.mxu0  ;;  %v1419_v53 = vpop.f32.mrf.mxu1 }
 0x1dc   :  { %v1891_v27 = vadd.f32 %v1890_v40, %v1764_v31  ;;  %v1632_v17 = vadd.f32 %v1631_v25, %v3357_v3  ;;  %v1768_v3 = vmul.f32 %v3393_v16, %v3393_v16  ;;  %v1769_v25 = vmul.f32 %v3411_v63, %v3411_v63 }
 0x1dd   :  { %v1164_v5 = vpop.f32.mrf.mxu0  ;;  %v3462_v61 = vpop.f32.mrf.mxu1 }
 0x1de   :  { %1511 = vst [vmem:[%s3762_s2 + $0x1b8] sm:$0xff] %v1164_v5  ;;  %1575 = vst [vmem:[%s3762_s2 + $0x3b8] sm:$0xff] %v3462_v61  ;;  %v1892_v53 = vadd.f32 %v1891_v27, %v1765_v6  ;;  %v1633_v59 = vadd.f32 %v1632_v17, %v3375_v51 }
 0x1df   :  { %v1166_v43 = vpop.f32.mrf.mxu0  ;;  %v1422_v9 = vpop.f32.mrf.mxu1 }
 0x1e0   :  { %v1893_v40 = vadd.f32 %v1892_v53, %v1766_v55  ;;  %v1634_v27 = vadd.f32 %v1633_v59, %v3393_v16  ;;  %v1770_v16 = vmul.f32 %v3429_v49, %v3429_v49  ;;  %v1771_v59 = vmul.f32 %v1161_v45, %v1161_v45 }
 0x1e1   :  { %v1169_v39 = vpop.f32.mrf.mxu0  ;;  %v3477_v19 = vpop.f32.mrf.mxu1 }
 0x1e2   :  { %1512 = vst [vmem:[%s3762_s2 + $0x1c0] sm:$0xff] %v1169_v39  ;;  %1576 = vst [vmem:[%s3762_s2 + $0x3c0] sm:$0xff] %v3477_v19  ;;  %v1894_v9 = vadd.f32 %v1893_v40, %v1767_v1  ;;  %v1635_v17 = vadd.f32 %v1634_v27, %v3411_v63 }
 0x1e3   :  { %v1171_v26 = vpop.f32.mrf.mxu0  ;;  %v1427_v31 = vpop.f32.mrf.mxu1 }
 0x1e4   :  { %v1895_v53 = vadd.f32 %v1894_v9, %v1768_v3  ;;  %v1636_v40 = vadd.f32 %v1635_v17, %v3429_v49 }
 0x1e5   :  { %v1172_v6 = vpop.f32.mrf.mxu0  ;;  %v3492_v43 = vpop.f32.mrf.mxu1 }
 0x1e6   :  { %3775 = vst [vmem:[#allocation4_spill] sm:$0xff] %v3492_v43  ;;  %1513 = vst [vmem:[%s3762_s2 + $0x1c8] sm:$0xff] %v1172_v6  ;;  %v1896_v31 = vadd.f32 %v1895_v53, %v1769_v25  ;;  %v1637_v27 = vadd.f32 %v1636_v40, %v1161_v45  ;;  %v1773_v53 = vmul.f32 %v1169_v39, %v1169_v39 }
 0x1e7   :  { %1577 = vst [vmem:[%s3762_s2 + $0x3c8] sm:$0xff] %v3492_v43  ;;  %v1174_v51 = vpop.f32.mrf.mxu0  ;;  %v1430_v55 = vpop.f32.mrf.mxu1 }
 0x1e8   :  { %v1897_v9 = vadd.f32 %v1896_v31, %v1770_v16  ;;  %v1772_v51 = vmul.f32 %v1164_v5, %v1164_v5  ;;  %v1638_v49 = vadd.f32 %v1637_v27, %v1164_v5  ;;  %v1774_v31 = vmul.f32 %v1172_v6, %v1172_v6 }
 0x1e9   :  { %v1177_v1 = vpop.f32.mrf.mxu0  ;;  %v3507_v26 = vpop.f32.mrf.mxu1 }
 0x1ea   :  { %1514 = vst [vmem:[%s3762_s2 + $0x1d0] sm:$0xff] %v1177_v1  ;;  %1578 = vst [vmem:[%s3762_s2 + $0x3d0] sm:$0xff] %v3507_v26  ;;  %v1898_v25 = vadd.f32 %v1897_v9, %v1771_v59  ;;  %v1639_v45 = vadd.f32 %v1638_v49, %v1169_v39  ;;  %v1775_v9 = vmul.f32 %v1177_v1, %v1177_v1 }
 0x1eb   :  { %v1179_v63 = vpop.f32.mrf.mxu0  ;;  %v1435_v3 = vpop.f32.mrf.mxu1 }
 0x1ec   :  { %v1899_v16 = vadd.f32 %v1898_v25, %v1772_v51  ;;  %v1640_v5 = vadd.f32 %v1639_v45, %v1172_v6 }
 0x1ed   :  { %v1180_v55 = vpop.f32.mrf.mxu0  ;;  %v3517_v43 = vpop.f32.mrf.mxu1 }
 0x1ee   :  { %1515 = vst [vmem:[%s3762_s2 + $0x1d8] sm:$0xff] %v1180_v55  ;;  %1579 = vst [vmem:[%s3762_s2 + $0x3d8] sm:$0xff] %v3517_v43  ;;  %v1900_v59 = vadd.f32 %v1899_v16, %v1773_v53  ;;  %v1641_v39 = vadd.f32 %v1640_v5, %v1177_v1  ;;  %v1776_v25 = vmul.f32 %v1180_v55, %v1180_v55 }
 0x1ef   :  { %v1182_v17 = vpop.f32.mrf.mxu0  ;;  %v1438_v63 = vpop.f32.mrf.mxu1 }
 0x1f0   :  { %v1901_v51 = vadd.f32 %v1900_v59, %v1774_v31  ;;  %v1642_v6 = vadd.f32 %v1641_v39, %v1180_v55 }
 0x1f1   :  { %v1185_v40 = vpop.f32.mrf.mxu0  ;;  %v3526_v3 = vpop.f32.mrf.mxu1 }
 0x1f2   :  { %1516 = vst [vmem:[%s3762_s2 + $0x1e0] sm:$0xff] %v1185_v40  ;;  %1580 = vst [vmem:[%s3762_s2 + $0x3e0] sm:$0xff] %v3526_v3  ;;  %v1902_v53 = vadd.f32 %v1901_v51, %v1775_v9  ;;  %v1777_v16 = vmul.f32 %v1185_v40, %v1185_v40  ;;  %v1643_v1 = vadd.f32 %v1642_v6, %v1185_v40 }
 0x1f3   :  { %v1187_v27 = vpop.f32.mrf.mxu0  ;;  %v1443_v17 = vpop.f32.mrf.mxu1 }
 0x1f4   :  { %v1903_v31 = vadd.f32 %v1902_v53, %v1776_v25 }
 0x1f5   :  { %v1188_v49 = vpop.f32.mrf.mxu0  ;;  %v3535_v63 = vpop.f32.mrf.mxu1 }
 0x1f6   :  { %1517 = vst [vmem:[%s3762_s2 + $0x1e8] sm:$0xff] %v1188_v49  ;;  %1581 = vst [vmem:[%s3762_s2 + $0x3e8] sm:$0xff] %v3535_v63  ;;  %v1778_v59 = vmul.f32 %v1188_v49, %v1188_v49  ;;  %v1904_v9 = vadd.f32 %v1903_v31, %v1777_v16  ;;  %v1644_v55 = vadd.f32 %v1643_v1, %v1188_v49 }
 0x1f7   :  { %v1190_v45 = vpop.f32.mrf.mxu0  ;;  %v1446_v27 = vpop.f32.mrf.mxu1 }
 0x1f8   :  { %v1905_v25 = vadd.f32 %v1904_v9, %v1778_v59  ;;  %v2382_v59 = vld [vmem:[%s3762_s2 + $0x200] sm:$0xff] }
 0x1f9   :  { %v1193_v5 = vpop.f32.mrf.mxu0  ;;  %v3544_v17 = vpop.f32.mrf.mxu1 }
 0x1fa   :  { %1518 = vst [vmem:[%s3762_s2 + $0x1f0] sm:$0xff] %v1193_v5  ;;  %v1779_v51 = vmul.f32 %v1193_v5, %v1193_v5  ;;  %1582 = vst [vmem:[%s3762_s2 + $0x3f0] sm:$0xff] %v3544_v17  ;;  %v1645_v40 = vadd.f32 %v1644_v55, %v1193_v5  ;;  %v1781_v5 = vmul.f32 %v2382_v59, %v2382_v59 }
 0x1fb   :  { %v1195_v39 = vpop.f32.mrf.mxu0  ;;  %v1451_v45 = vpop.f32.mrf.mxu1 }
 0x1fc   :  { %v1906_v27 = vadd.f32 %v1905_v25, %v1779_v51  ;;  %v2383_v51 = vld [vmem:[%s3762_s2 + $0x208] sm:$0xff] }
 0x1fd   :  { %v1196_v53 = vpop.f32.mrf.mxu0  ;;  %v3553_v6 = vpop.f32.mrf.mxu1  ;;  %v1782_v39 = vmul.f32 %v2383_v51, %v2383_v51 }
 0x1fe   :  { %3776 = vst [vmem:[#allocation5_spill] sm:$0xff] %v3553_v6  ;;  %1519 = vst [vmem:[%s3762_s2 + $0x1f8] sm:$0xff] %v1196_v53  ;;  %v1646_v49 = vadd.f32 %v1645_v40, %v1196_v53  ;;  %v1780_v16 = vmul.f32 %v1196_v53, %v1196_v53  ;;  %v2384_v40 = vld [vmem:[%s3762_s2 + $0x210] sm:$0xff] }
 0x1ff   :  { %1583 = vst [vmem:[%s3762_s2 + $0x3f8] sm:$0xff] %v3553_v6  ;;  %v1198_v31 = vpop.f32.mrf.mxu0  ;;  %v1454_v1 = vpop.f32.mrf.mxu1  ;;  %v1783_v53 = vmul.f32 %v2384_v40, %v2384_v40  ;;  %v2385_v6 = vld [vmem:[%s3762_s2 + $0x218] sm:$0xff] }
 0x200   :  { %v1647_v9 = vadd.f32 %v2382_v59, %v1646_v49  ;;  %v1907_v55 = vadd.f32 %v1906_v27, %v1780_v16  ;;  %v1784_v49 = vmul.f32 %v2385_v6, %v2385_v6  ;;  %v2386_v59 = vld [vmem:[%s3762_s2 + $0x220] sm:$0xff] }
 0x202   :  { %v1648_v45 = vadd.f32 %v2383_v51, %v1647_v9  ;;  %v1908_v25 = vadd.f32 %v1907_v55, %v1781_v5  ;;  %v1785_v9 = vmul.f32 %v2386_v59, %v2386_v59  ;;  %v2387_v51 = vld [vmem:[%s3762_s2 + $0x228] sm:$0xff] }
 0x204   :  { %v1649_v31 = vadd.f32 %v2384_v40, %v1648_v45  ;;  %v1909_v1 = vadd.f32 %v1908_v25, %v1782_v39  ;;  %v1786_v45 = vmul.f32 %v2387_v51, %v2387_v51  ;;  %v2388_v40 = vld [vmem:[%s3762_s2 + $0x230] sm:$0xff] }
 0x206   :  { %v1650_v27 = vadd.f32 %v2385_v6, %v1649_v31  ;;  %v1910_v16 = vadd.f32 %v1909_v1, %v1783_v53  ;;  %v1787_v6 = vmul.f32 %v2388_v40, %v2388_v40  ;;  %v2389_v1 = vld [vmem:[%s3762_s2 + $0x238] sm:$0xff] }
 0x208   :  { %v1651_v5 = vadd.f32 %v2386_v59, %v1650_v27  ;;  %v1911_v55 = vadd.f32 %v1910_v16, %v1784_v49  ;;  %v1788_v27 = vmul.f32 %v2389_v1, %v2389_v1  ;;  %v2390_v59 = vld [vmem:[%s3762_s2 + $0x240] sm:$0xff] }
 0x20a   :  { %v1652_v39 = vadd.f32 %v2387_v51, %v1651_v5  ;;  %v1912_v25 = vadd.f32 %v1911_v55, %v1785_v9  ;;  %v1789_v5 = vmul.f32 %v2390_v59, %v2390_v59  ;;  %v2391_v51 = vld [vmem:[%s3762_s2 + $0x248] sm:$0xff] }
 0x20c   :  { %v1653_v53 = vadd.f32 %v2388_v40, %v1652_v39  ;;  %v1913_v31 = vadd.f32 %v1912_v25, %v1786_v45  ;;  %v1790_v39 = vmul.f32 %v2391_v51, %v2391_v51  ;;  %v2392_v40 = vld [vmem:[%s3762_s2 + $0x250] sm:$0xff] }
 0x20e   :  { %v1654_v49 = vadd.f32 %v2389_v1, %v1653_v53  ;;  %v1914_v16 = vadd.f32 %v1913_v31, %v1787_v6  ;;  %v1791_v53 = vmul.f32 %v2392_v40, %v2392_v40  ;;  %v2393_v1 = vld [vmem:[%s3762_s2 + $0x258] sm:$0xff] }
 0x210   :  { %v1655_v9 = vadd.f32 %v2390_v59, %v1654_v49  ;;  %v1915_v55 = vadd.f32 %v1914_v16, %v1788_v27  ;;  %v1792_v49 = vmul.f32 %v2393_v1, %v2393_v1  ;;  %v1793_v59 = vmul.f32 %v2950_v34, %v2950_v34 }
 0x212   :  { %v1656_v45 = vadd.f32 %v2391_v51, %v1655_v9  ;;  %v1916_v25 = vadd.f32 %v1915_v55, %v1789_v5  ;;  %v1794_v55 = vmul.f32 %v2962_v42, %v2962_v42 }
 0x214   :  { %v1657_v6 = vadd.f32 %v2392_v40, %v1656_v45  ;;  %v1917_v31 = vadd.f32 %v1916_v25, %v1790_v39  ;;  %v1795_v39 = vmul.f32 %v2974_v50, %v2974_v50 }
 0x216   :  { %v1658_v27 = vadd.f32 %v2393_v1, %v1657_v6  ;;  %v1918_v16 = vadd.f32 %v1917_v31, %v1791_v53  ;;  %v1796_v53 = vmul.f32 %v2983_v57, %v2983_v57 }
 0x218   :  { %v1659_v9 = vadd.f32 %v1658_v27, %v2950_v34  ;;  %v1919_v5 = vadd.f32 %v1918_v16, %v1792_v49  ;;  %v1797_v34 = vmul.f32 %v2992_v0, %v2992_v0 }
 0x21a   :  { %v1660_v51 = vadd.f32 %v1659_v9, %v2962_v42  ;;  %v1920_v45 = vadd.f32 %v1919_v5, %v1793_v59  ;;  %v1798_v42 = vmul.f32 %v3001_v7, %v3001_v7 }
 0x21c   :  { %v1661_v25 = vadd.f32 %v1660_v51, %v2974_v50  ;;  %v1921_v40 = vadd.f32 %v1920_v45, %v1794_v55  ;;  %v1799_v50 = vmul.f32 %v3010_v14, %v3010_v14 }
 0x21e   :  { %v1662_v6 = vadd.f32 %v1661_v25, %v2983_v57  ;;  %v1922_v31 = vadd.f32 %v1921_v40, %v1795_v39  ;;  %v1800_v57 = vmul.f32 %v3019_v21, %v3019_v21 }
 0x220   :  { %v1663_v1 = vadd.f32 %v1662_v6, %v2992_v0  ;;  %v1923_v49 = vadd.f32 %v1922_v31, %v1796_v53  ;;  %v1801_v0 = vmul.f32 %v3028_v28, %v3028_v28 }
 0x222   :  { %v1924_v27 = vadd.f32 %v1923_v49, %v1797_v34  ;;  %v1664_v16 = vadd.f32 %v1663_v1, %v3001_v7  ;;  %v1802_v7 = vmul.f32 %v3037_v36, %v3037_v36 }
 0x224   :  { %v1665_v59 = vadd.f32 %v1664_v16, %v3010_v14  ;;  %v1925_v9 = vadd.f32 %v1924_v27, %v1798_v42  ;;  %v1803_v14 = vmul.f32 %v3046_v44, %v3046_v44 }
 0x226   :  { %v1666_v5 = vadd.f32 %v1665_v59, %v3019_v21  ;;  %v1926_v55 = vadd.f32 %v1925_v9, %v1799_v50  ;;  %v1804_v21 = vmul.f32 %v3055_v52, %v3055_v52 }
 0x228   :  { %v1667_v51 = vadd.f32 %v1666_v5, %v3028_v28  ;;  %v1927_v45 = vadd.f32 %v1926_v55, %v1800_v57  ;;  %v1805_v28 = vmul.f32 %v3064_v60, %v3064_v60 }
 0x22a   :  { %v1668_v39 = vadd.f32 %v1667_v51, %v3037_v36  ;;  %v1928_v25 = vadd.f32 %v1927_v45, %v1801_v0  ;;  %v1806_v36 = vmul.f32 %v3073_v4, %v3073_v4 }
 0x22c   :  { %v1669_v40 = vadd.f32 %v1668_v39, %v3046_v44  ;;  %v1929_v53 = vadd.f32 %v1928_v25, %v1802_v7  ;;  %v1807_v44 = vmul.f32 %v3082_v12, %v3082_v12 }
 0x22e   :  { %v1670_v6 = vadd.f32 %v1669_v40, %v3055_v52  ;;  %v1930_v31 = vadd.f32 %v1929_v53, %v1803_v14  ;;  %v1808_v52 = vmul.f32 %v3091_v20, %v3091_v20  ;;  %v1814_v14 = vmul.f32 %v3154_v8, %v3154_v8 }
 0x230   :  { %v1671_v34 = vadd.f32 %v1670_v6, %v3064_v60  ;;  %v1931_v1 = vadd.f32 %v1930_v31, %v1804_v21  ;;  %v1809_v60 = vmul.f32 %v3100_v29, %v3100_v29  ;;  %v1815_v21 = vmul.f32 %v3166_v13, %v3166_v13 }
 0x231   :  { %v1816_v31 = vmul.f32 %v3178_v18, %v3178_v18 }
 0x232   :  { %v1672_v49 = vadd.f32 %v1671_v34, %v3073_v4  ;;  %v1932_v42 = vadd.f32 %v1931_v1, %v1805_v28  ;;  %v1810_v4 = vmul.f32 %v3109_v38, %v3109_v38  ;;  %v1817_v34 = vmul.f32 %v3190_v24, %v3190_v24 }
 0x234   :  { %v1673_v27 = vadd.f32 %v1672_v49, %v3082_v12  ;;  %v1933_v16 = vadd.f32 %v1932_v42, %v1806_v36  ;;  %v1811_v12 = vmul.f32 %v3118_v47, %v3118_v47  ;;  %v1818_v36 = vmul.f32 %v3202_v30, %v3202_v30 }
 0x235   :  { %v1819_v42 = vmul.f32 %v3214_v35, %v3214_v35 }
 0x236   :  { %v1674_v50 = vadd.f32 %v1673_v27, %v3091_v20  ;;  %v1934_v59 = vadd.f32 %v1933_v16, %v1807_v44  ;;  %v1812_v20 = vmul.f32 %v3127_v56, %v3127_v56  ;;  %v1820_v27 = vmul.f32 %v3226_v41, %v3226_v41 }
 0x238   :  { %v1675_v9 = vadd.f32 %v1674_v50, %v3100_v29  ;;  %v1935_v57 = vadd.f32 %v1934_v59, %v1808_v52  ;;  %v1813_v29 = vmul.f32 %v3142_v2, %v3142_v2  ;;  %v1821_v52 = vmul.f32 %v3238_v48, %v3238_v48 }
 0x239   :  { %v1822_v59 = vmul.f32 %v3250_v54, %v3250_v54 }
 0x23a   :  { %v1676_v5 = vadd.f32 %v1675_v9, %v3109_v38  ;;  %v1936_v55 = vadd.f32 %v1935_v57, %v1809_v60  ;;  %v1823_v9 = vmul.f32 %v3262_v62, %v3262_v62 }
 0x23c   :  { %v1677_v0 = vadd.f32 %v1676_v5, %v3118_v47  ;;  %v1937_v51 = vadd.f32 %v1936_v55, %v1810_v4  ;;  %v1824_v4 = vmul.f32 %v3274_v10, %v3274_v10  ;;  %v1825_v55 = vmul.f32 %v3286_v22, %v3286_v22 }
 0x23e   :  { %v1678_v45 = vadd.f32 %v1677_v0, %v3127_v56  ;;  %v1938_v7 = vadd.f32 %v1937_v51, %v1811_v12  ;;  %v1826_v0 = vmul.f32 %v3298_v32, %v3298_v32 }
 0x240   :  { %v1679_v39 = vadd.f32 %v1678_v45, %v3142_v2  ;;  %v1939_v25 = vadd.f32 %v1938_v7, %v1812_v20 }
 0x242   :  { %v1680_v38 = vadd.f32 %v1679_v39, %v3154_v8  ;;  %v1940_v40 = vadd.f32 %v1939_v25, %v1813_v29 }
 0x244   :  { %v1941_v47 = vadd.f32 %v1940_v40, %v1814_v14  ;;  %v1681_v53 = vadd.f32 %v1680_v38, %v3166_v13  ;;  %v1829_v38 = vmul.f32 %v3340_v37, %v3340_v37  ;;  %v1830_v40 = vmul.f32 %v3359_v15, %v3359_v15 }
 0x246   :  { %v1942_v56 = vadd.f32 %v1941_v47, %v1815_v21  ;;  %v1682_v6 = vadd.f32 %v1681_v53, %v3178_v18  ;;  %v1831_v21 = vmul.f32 %v3377_v58, %v3377_v58 }
 0x248   :  { %v1943_v2 = vadd.f32 %v1942_v56, %v1816_v31  ;;  %v1683_v28 = vadd.f32 %v1682_v6, %v3190_v24  ;;  %v1832_v31 = vmul.f32 %v3395_v11, %v3395_v11 }
 0x24a   :  { %v1944_v8 = vadd.f32 %v1943_v2, %v1817_v34  ;;  %v1684_v1 = vadd.f32 %v1683_v28, %v3202_v30  ;;  %v1833_v28 = vmul.f32 %v3413_v23, %v3413_v23 }
 0x24c   :  { %v1945_v49 = vadd.f32 %v1944_v8, %v1818_v36  ;;  %v1685_v13 = vadd.f32 %v1684_v1, %v3214_v35  ;;  %v1834_v8 = vmul.f32 %v3431_v33, %v3431_v33  ;;  %v1835_v36 = vmul.f32 %v3447_v46, %v3447_v46 }
 0x24e   :  { %v1946_v44 = vadd.f32 %v1945_v49, %v1819_v42  ;;  %v1686_v18 = vadd.f32 %v1685_v13, %v3226_v41  ;;  %v1836_v13 = vmul.f32 %v3462_v61, %v3462_v61 }
 0x250   :  { %v1947_v16 = vadd.f32 %v1946_v44, %v1820_v27  ;;  %v1687_v24 = vadd.f32 %v1686_v18, %v3238_v48  ;;  %v1837_v44 = vmul.f32 %v3477_v19, %v3477_v19 }
 0x252   :  { %v1948_v50 = vadd.f32 %v1947_v16, %v1821_v52  ;;  %v1688_v30 = vadd.f32 %v1687_v24, %v3250_v54  ;;  %v1839_v52 = vmul.f32 %v3507_v26, %v3507_v26 }
 0x254   :  { %v1949_v60 = vadd.f32 %v1948_v50, %v1822_v59  ;;  %v1689_v35 = vadd.f32 %v1688_v30, %v3262_v62  ;;  %v3777_v62 = vld [vmem:[#allocation2_spill] sm:$0xff]  ;;  %v1840_v30 = vmul.f32 %v3517_v43, %v3517_v43 }
 0x255   :  { %v1827_v45 = vmul.f32 %v3777_v62, %v3777_v62 }
 0x256   :  { %v1950_v57 = vadd.f32 %v1949_v60, %v1823_v9  ;;  %v1690_v41 = vadd.f32 %v1689_v35, %v3274_v10  ;;  %v3778_v10 = vld [vmem:[#allocation3_spill] sm:$0xff]  ;;  %v1841_v60 = vmul.f32 %v3526_v3, %v3526_v3 }
 0x257   :  { %v1828_v39 = vmul.f32 %v3778_v10, %v3778_v10 }
 0x258   :  { %v1951_v5 = vadd.f32 %v1950_v57, %v1824_v4  ;;  %v1691_v48 = vadd.f32 %v1690_v41, %v3286_v22  ;;  %v1842_v57 = vmul.f32 %v3535_v63, %v3535_v63  ;;  %v1843_v4 = vmul.f32 %v3544_v17, %v3544_v17 }
 0x25a   :  { %v1952_v12 = vadd.f32 %v1951_v5, %v1825_v55  ;;  %v1692_v54 = vadd.f32 %v1691_v48, %v3298_v32 }
 0x25c   :  { %v1953_v51 = vadd.f32 %v1952_v12, %v1826_v0  ;;  %v1693_v20 = vadd.f32 %v1692_v54, %v3777_v62  ;;  %v1978_v54 = vlaneseq }
 0x25e   :  { %v1954_v7 = vadd.f32 %v1953_v51, %v1827_v45  ;;  %v1694_v29 = vadd.f32 %v1693_v20, %v3778_v10 }
 0x260   :  { %v1955_v25 = vadd.f32 %v1954_v7, %v1828_v39  ;;  %v1695_v22 = vadd.f32 %v1694_v29, %v3340_v37 }
 0x262   :  { %v1956_v14 = vadd.f32 %v1955_v25, %v1829_v38  ;;  %v1696_v32 = vadd.f32 %v1695_v22, %v3359_v15 }
 0x264   :  { %v1957_v47 = vadd.f32 %v1956_v14, %v1830_v40  ;;  %v1697_v53 = vadd.f32 %v1696_v32, %v3377_v58 }
 0x266   :  { %v1958_v56 = vadd.f32 %v1957_v47, %v1831_v21  ;;  %v1698_v6 = vadd.f32 %v1697_v53, %v3395_v11 }
 0x268   :  { %v1959_v2 = vadd.f32 %v1958_v56, %v1832_v31  ;;  %v1699_v37 = vadd.f32 %v1698_v6, %v3413_v23 }
 0x26a   :  { %v1960_v34 = vadd.f32 %v1959_v2, %v1833_v28  ;;  %v1700_v15 = vadd.f32 %v1699_v37, %v3431_v33  ;;  %v3779_v33 = vld [vmem:[#allocation4_spill] sm:$0xff] }
 0x26b   :  { %v1838_v16 = vmul.f32 %v3779_v33, %v3779_v33 }
 0x26c   :  { %v1961_v1 = vadd.f32 %v1960_v34, %v1834_v8  ;;  %v1701_v58 = vadd.f32 %v1700_v15, %v3447_v46 }
 0x26e   :  { %v1962_v49 = vadd.f32 %v1961_v1, %v1835_v36  ;;  %v1702_v11 = vadd.f32 %v1701_v58, %v3462_v61 }
 0x270   :  { %v1963_v42 = vadd.f32 %v1962_v49, %v1836_v13  ;;  %v1703_v23 = vadd.f32 %v1702_v11, %v3477_v19 }
 0x272   :  { %v1964_v18 = vadd.f32 %v1963_v42, %v1837_v44  ;;  %v1704_v27 = vadd.f32 %v1703_v23, %v3779_v33 }
 0x274   :  { %v1965_v24 = vadd.f32 %v1964_v18, %v1838_v16  ;;  %v1705_v46 = vadd.f32 %v1704_v27, %v3507_v26 }
 0x276   :  { %v1966_v50 = vadd.f32 %v1965_v24, %v1839_v52  ;;  %v1706_v61 = vadd.f32 %v1705_v46, %v3517_v43  ;;  %v3780_v43 = vld [vmem:[#allocation5_spill] sm:$0xff] }
 0x277   :  { %v1844_v55 = vmul.f32 %v3780_v43, %v3780_v43 }
 0x278   :  { %v1967_v59 = vadd.f32 %v1966_v50, %v1840_v30  ;;  %v1707_v19 = vadd.f32 %v1706_v61, %v3526_v3 }
 0x27a   :  { %v1968_v35 = vadd.f32 %v1967_v59, %v1841_v60  ;;  %v1708_v9 = vadd.f32 %v1707_v19, %v3535_v63  ;;  %v1979_v63 = vshrl.u32 %v1978_v54, 7 }
 0x27c   :  { %v1969_v41 = vadd.f32 %v1968_v35, %v1842_v57  ;;  %v1709_v26 = vadd.f32 %v1708_v9, %v3544_v17  ;;  %vm1980_vm0 = vcmp.eq.s32.totalorder %v1979_v63, 0 }
 0x27e   :  { %v1970_v5 = vadd.f32 %v1969_v41, %v1843_v4  ;;  %v1710_v48 = vadd.f32 %v1709_v26, %v3780_v43 }
 0x280   :  { %v1711_v12 = vrot.slane %v1710_v48, 4  ;;  %v1971_v3 = vadd.f32 %v1970_v5, %v1844_v55 }
 0x282   :  { %v1712_v0 = vadd.f32 %v1711_v12, %v1710_v48  ;;  %v1972_v51 = vrot.slane %v1971_v3, 4 }
 0x284   :  { %v1713_v62 = vrot.slane %v1712_v0, 2  ;;  %v1973_v20 = vadd.f32 %v1972_v51, %v1971_v3 }
 0x286   :  { %v1714_v45 = vadd.f32 %v1713_v62, %v1712_v0  ;;  %v1974_v7 = vrot.slane %v1973_v20, 2 }
 0x288   :  { %v1715_v10 = vrot.slane %v1714_v45, 1  ;;  %v1975_v29 = vadd.f32 %v1974_v7, %v1973_v20 }
 0x28a   :  { %v1716_v17 = vadd.f32 %v1715_v10, %v1714_v45  ;;  %v1976_v39 = vrot.slane %v1975_v29, 1 }
 0x28c   :  { %v1977_v25 = vadd.f32 %v1976_v39, %v1975_v29  ;;  %v1981_v22 = vsel %vm1980_vm0, %v1716_v17, 0.0 }
 0x28d   :  { %1982 = vst [vmem:[%s3763_s3] sm:$0xff] %v1981_v22 }
 0x28e   :  { %v1983_v38 = vsel %vm1980_vm0, %v1977_v25, 0.0 }
 0x28f   :  { %1984 = vst [vmem:[%s3764_s4] sm:$0xff] %v1983_v38 }

</bundles_post_ra>
